<compile_context>
chip_gen: v7x
topology: tpu7x:2x2x1
jax: 0.10.0
libtpu: 0.0.40
codegen_flags: <defaults>
</compile_context>

<pallas_src>
import functools

import numpy as np
import jax
import jax.numpy as jnp
from jax.experimental import pallas as pl
from jax.experimental.pallas import tpu as pltpu


# ---------------------------------------------------------------------------
# Pallas kernel: fused two-direction LSTM recurrence over the whole sequence.
#
#   z_ref   : (T, B, 8H) f32   precomputed input-projection gate pre-activations,
#                              column layout (gate, dir, h) with gate order i,f,o,g
#   whh_ref : (2H, 8H)  bf16   block-diagonal recurrent weights (same layout)
#   out_ref : (T, B, 2H) f32   hidden states, [:, :, :H] = dir0, [:, :, H:] = dir1
# ---------------------------------------------------------------------------
def _fused_lstm_kernel(unroll, z_ref, whh_ref, out_ref, h_scr, c_scr):
    T = z_ref.shape[0]
    G = z_ref.shape[-1]          # 8H
    H2 = G // 4                  # 2H

    h_scr[...] = jnp.zeros_like(h_scr)
    c_scr[...] = jnp.zeros_like(c_scr)
    whh = whh_ref[...]           # (2H, 8H) bf16, kept resident across the loop

    def _sigmoid(x):
        return 1.0 / (1.0 + jnp.exp(-x))

    def step(t, carry):
        # gates: (B, 8H) = Z[t] + h @ Whh  (bf16 MXU matmul, f32 accumulate)
        gates = z_ref[t] + jnp.dot(h_scr[...].astype(whh.dtype), whh,
                                   preferred_element_type=jnp.float32)
        sig = _sigmoid(gates)                      # full-width EUP pass
        i = sig[:, 0 * H2:1 * H2]                  # (B, 2H) = [dir0 | dir1]
        f = sig[:, 1 * H2:2 * H2]
        o = sig[:, 2 * H2:3 * H2]
        g = jnp.tanh(gates[:, 3 * H2:4 * H2])

        c_new = f * c_scr[...] + i * g
        h_new = o * jnp.tanh(c_new)

        c_scr[...] = c_new
        h_scr[...] = h_new
        out_ref[t] = h_new                         # single 2H-wide store
        return carry

    jax.lax.fori_loop(0, T, step, 0, unroll=unroll)


def fused_lstm_recurrence(z, whh_fused):
    """Run the fused two-direction LSTM recurrence.

    z: (T, B, 8H) f32, whh_fused: (2H, 8H) bf16. Returns (T, B, 2H) f32."""
    T, B, G = z.shape
    H2 = G // 4
    unroll = T if T <= 16 else 8
    kernel = functools.partial(_fused_lstm_kernel, unroll)
    return pl.pallas_call(
        kernel,
        out_shape=jax.ShapeDtypeStruct((T, B, H2), jnp.float32),
        grid_spec=pltpu.PrefetchScalarGridSpec(
            num_scalar_prefetch=0,
            grid=(1,),
            in_specs=[
                pl.BlockSpec((T, B, G), lambda i: (0, 0, 0)),
                pl.BlockSpec((H2, G), lambda i: (0, 0)),
            ],
            out_specs=pl.BlockSpec((T, B, H2), lambda i: (0, 0, 0)),
            scratch_shapes=[
                pltpu.VMEM((B, H2), jnp.float32),   # h (both directions)
                pltpu.VMEM((B, H2), jnp.float32),   # c (both directions)
            ],
        ),
        compiler_params=pltpu.CompilerParams(
            dimension_semantics=("arbitrary",)),
    )(z, whh_fused)


# ---------------------------------------------------------------------------
# Parameter construction: PyTorch-like per-direction init, then fused layouts.
# Per-direction weights use PyTorch gate order (i, f, g, o); fused layouts use
# gate order (i, f, o, g) with columns grouped (gate, dir, h).
# ---------------------------------------------------------------------------
_GATE_REORDER = np.array([0, 1, 3, 2])   # (i,f,g,o) -> (i,f,o,g)


def _init_single_lstm(key, input_dim, hidden_dim):
    k1, k2, k3, k4 = jax.random.split(key, 4)
    s = 1.0 / np.sqrt(hidden_dim)
    wih = jax.random.uniform(k1, (input_dim, 4 * hidden_dim),
                             minval=-s, maxval=s, dtype=jnp.float32)
    whh = jax.random.uniform(k2, (hidden_dim, 4 * hidden_dim),
                             minval=-s, maxval=s, dtype=jnp.float32)
    b_ih = jax.random.uniform(k3, (4 * hidden_dim,),
                              minval=-s, maxval=s, dtype=jnp.float32)
    b_hh = jax.random.uniform(k4, (4 * hidden_dim,),
                              minval=-s, maxval=s, dtype=jnp.float32)
    return wih, whh, b_ih + b_hh          # bias folded


def _reorder_gates(w, hidden_dim):
    """(..., 4H) -> (..., 4, H) with gate order (i, f, o, g)."""
    w = w.reshape(w.shape[:-1] + (4, hidden_dim))
    return w[..., _GATE_REORDER, :]


def _fuse_direction_pair(p0, p1, hidden_dim):
    """Fuse two same-sized LSTMs (dir0, dir1) into the kernel's fused layout."""
    wih0, whh0, b0 = p0
    wih1, whh1, b1 = p1
    H = hidden_dim
    # input projection weights for the wrapper einsum: (2, D, 4, H)
    wih = jnp.stack([_reorder_gates(wih0, H), _reorder_gates(wih1, H)], axis=0)
    # block-diagonal recurrent weights: (2H, 8H), columns in (gate, dir, h) order
    whh = jnp.zeros((2, H, 4, 2, H), jnp.float32)
    whh = whh.at[0, :, :, 0, :].set(_reorder_gates(whh0, H))
    whh = whh.at[1, :, :, 1, :].set(_reorder_gates(whh1, H))
    whh = whh.reshape(2 * H, 8 * H).astype(jnp.bfloat16)
    # fused bias: (8H,) in (gate, dir, h) order
    b = jnp.stack([_reorder_gates(b0, H), _reorder_gates(b1, H)], axis=1)  # (4,2,H)
    b = b.reshape(8 * H)
    return {"wih": wih, "whh": whh, "b": b}


def init_word_rep_params(key, char_size, char_embedding_dim, char_hidden_dim,
                         word_embedding_dim, word_hidden_dim, vocab_size):
    keys = jax.random.split(key, 6)
    forw_char = _init_single_lstm(keys[2], char_embedding_dim, char_hidden_dim)
    back_char = _init_single_lstm(keys[3], char_embedding_dim, char_hidden_dim)
    hw2 = word_hidden_dim // 2
    word_in = word_embedding_dim + 2 * char_hidden_dim
    word_fwd = _init_single_lstm(keys[4], word_in, hw2)
    word_bwd = _init_single_lstm(keys[5], word_in, hw2)
    return {
        "char_embeds": jax.random.normal(
            keys[0], (char_size, char_embedding_dim), dtype=jnp.float32),
        "word_embeds": jax.random.normal(
            keys[1], (vocab_size, word_embedding_dim), dtype=jnp.float32),
        "char_lstm": _fuse_direction_pair(forw_char, back_char, char_hidden_dim),
        "word_lstm": _fuse_direction_pair(word_fwd, word_bwd, hw2),
        # NOTE: no plain Python ints in here (they would become tracers under jit)
    }


# ---------------------------------------------------------------------------
# Wrapper-side helpers
# ---------------------------------------------------------------------------
def _pad_batch_to(x, b_pad):
    b = x.shape[1]
    if b == b_pad:
        return x
    pad = [(0, 0)] * x.ndim
    pad[1] = (0, b_pad - b)
    return jnp.pad(x, pad)


def _input_projection(x_stack, fused):
    """x_stack: (2, T, B, D) per-direction inputs -> Z: (T, B, 8H) f32."""
    z = jnp.einsum("stbd,sdgh->tbgsh", x_stack, fused["wih"])  # (T,B,4,2,H)
    T, B = z.shape[0], z.shape[1]
    return z.reshape(T, B, -1) + fused["b"][None, None, :]


# ---------------------------------------------------------------------------
# WORD_REP.forward  (char_lstm=True -> lm_lstm).  Dropout == identity.
# ---------------------------------------------------------------------------
def word_rep_forward(params, forw_sentence, forw_position,
                     back_sentence, back_position, word_seq):
    char_fused = params["char_lstm"]
    word_fused = params["word_lstm"]
    Hc = char_fused["whh"].shape[0] // 2       # concrete (shape-derived)
    Hw2 = word_fused["whh"].shape[0] // 2

    Tc, B = forw_sentence.shape
    Tw = forw_position.shape[0]
    Bp = max(8, -(-B // 8) * 8)                # pad batch to a full f32 sublane

    # pad the small integer tensors once; padded rows produce garbage that is
    # sliced off at the very end (nothing reduces across batch).
    forw_sentence = _pad_batch_to(forw_sentence, Bp)
    back_sentence = _pad_batch_to(back_sentence, Bp)
    forw_position = _pad_batch_to(forw_position, Bp)
    back_position = _pad_batch_to(back_position, Bp)
    word_seq = _pad_batch_to(word_seq, Bp)

    # --- char-level LSTMs: two independent LSTMs fused into one kernel -------
    forw_emb = params["char_embeds"][forw_sentence]        # (Tc, Bp, Dc)
    back_emb = params["char_embeds"][back_sentence]        # (Tc, Bp, Dc)
    z_char = _input_projection(jnp.stack([forw_emb, back_emb], axis=0), char_fused)
    char_out = fused_lstm_recurrence(z_char, char_fused["whh"])   # (Tc, Bp, 2Hc)

    # --- torch.gather along time (both halves with a single gather) ----------
    f_idx = jnp.broadcast_to(forw_position[:, :, None], (Tw, Bp, Hc))
    b_idx = jnp.broadcast_to(back_position[:, :, None], (Tw, Bp, Hc))
    fb_lstm_out = jnp.take_along_axis(
        char_out, jnp.concatenate([f_idx, b_idx], axis=-1), axis=0)  # (Tw,Bp,2Hc)

    # --- word-level bidirectional LSTM ---------------------------------------
    word_emb = params["word_embeds"][word_seq]                       # (Tw, Bp, Dw)
    word_input = jnp.concatenate([word_emb, fb_lstm_out], axis=-1)   # (Tw,Bp,Dw+2Hc)
    z_word = _input_projection(
        jnp.stack([word_input, word_input[::-1]], axis=0), word_fused)
    word_out = fused_lstm_recurrence(z_word, word_fused["whh"])      # (Tw,Bp,2Hw2)

    # direction 1 consumed time-reversed input; un-reverse its output half so
    # out[t] = [h_fwd(t), h_bwd(t)] like nn.LSTM(bidirectional=True).
    out = jnp.concatenate([word_out[:, :, :Hw2], word_out[::-1, :, Hw2:]], axis=-1)

    # TODO(synk): nn.Dropout is identity here (inference semantics); stochastic
    # training-mode dropout and multi-layer LSTM stacking are not reproduced.
    return out[:, :B]


# ---------------------------------------------------------------------------
if __name__ == "__main__":
    # small config consistent with WORD_REP.__init__
    char_size = 30
    char_embedding_dim = 16
    char_hidden_dim = 32
    word_embedding_dim = 32
    word_hidden_dim = 64          # per-direction hidden = 32
    vocab_size = 50

    char_seq_len = 12
    word_seq_len = 8
    batch = 2

    key = jax.random.PRNGKey(0)
    kp, k1, k2, k3, k4 = jax.random.split(key, 5)

    params = init_word_rep_params(
        kp, char_size, char_embedding_dim, char_hidden_dim,
        word_embedding_dim, word_hidden_dim, vocab_size)

    forw_sentence = jax.random.randint(
        k1, (char_seq_len, batch), 0, char_size, dtype=jnp.int32)
    back_sentence = forw_sentence[::-1]
    forw_position = jax.random.randint(
        k2, (word_seq_len, batch), 0, char_seq_len, dtype=jnp.int32)
    back_position = jax.random.randint(
        k3, (word_seq_len, batch), 0, char_seq_len, dtype=jnp.int32)
    word_seq = jax.random.randint(
        k4, (word_seq_len, batch), 0, vocab_size, dtype=jnp.int32)

    fwd = jax.jit(word_rep_forward)
    out = jax.block_until_ready(
        fwd(params, forw_sentence, forw_position,
            back_sentence, back_position, word_seq))

    assert out.shape == (word_seq_len, batch, word_hidden_dim), out.shape
    assert out.dtype == jnp.float32
    assert bool(jnp.all(jnp.isfinite(out)))
    print("KERNEL_OK")
</pallas_src>

<mosaic_0001>
module attributes {stable_mosaic.version = 11 : i64} {
  func.func @_fused_lstm_kernel(%arg0: i32, %arg1: memref<12x8x256xf32, #tpu.memory_space<vmem>>, %arg2: memref<64x256xbf16, #tpu.memory_space<vmem>>, %arg3: memref<12x8x64xf32, #tpu.memory_space<vmem>>, %arg4: memref<8x64xf32, #tpu.memory_space<vmem>>, %arg5: memref<8x64xf32, #tpu.memory_space<vmem>>) attributes {dimension_semantics = [#tpu.dimension_semantics<arbitrary>], iteration_bounds = array<i64: 1>, scalar_prefetch = 0 : i64, scratch_operands = 2 : i64, tpu.core_type = #tpu.core_type<tc>, window_params = [{pipeline_mode = #tpu.pipeline_mode<synchronous>, transform_indices = @transform_0, window_bounds = array<i64: 12, 8, 256>}, {pipeline_mode = #tpu.pipeline_mode<synchronous>, transform_indices = @transform_1, window_bounds = array<i64: 64, 256>}, {pipeline_mode = #tpu.pipeline_mode<synchronous>, transform_indices = @transform_2, window_bounds = array<i64: 12, 8, 64>}]} {
    %cst = arith.constant 0.000000e+00 : f32
    %0 = vector.broadcast %cst : f32 to vector<8x64xf32>
    %c0 = arith.constant 0 : index
    %c0_0 = arith.constant 0 : index
    %1 = vector.load %arg4[%c0, %c0_0] : memref<8x64xf32, #tpu.memory_space<vmem>>, vector<8x64xf32>
    tpu.vector_store %arg4[%c0, %c0_0], %0 {strides = array<i32>} : memref<8x64xf32, #tpu.memory_space<vmem>>, vector<8x64xf32>,
    %cst_1 = arith.constant 0.000000e+00 : f32
    %2 = vector.broadcast %cst_1 : f32 to vector<8x64xf32>
    %c0_2 = arith.constant 0 : index
    %c0_3 = arith.constant 0 : index
    %3 = vector.load %arg5[%c0_2, %c0_3] : memref<8x64xf32, #tpu.memory_space<vmem>>, vector<8x64xf32>
    tpu.vector_store %arg5[%c0_2, %c0_3], %2 {strides = array<i32>} : memref<8x64xf32, #tpu.memory_space<vmem>>, vector<8x64xf32>,
    %c0_4 = arith.constant 0 : index
    %c0_5 = arith.constant 0 : index
    %4 = vector.load %arg2[%c0_4, %c0_5] : memref<64x256xbf16, #tpu.memory_space<vmem>>, vector<64x256xbf16>
    %c0_i32 = arith.constant 0 : i32
    %5 = arith.index_cast %c0_i32 : i32 to index
    %c0_6 = arith.constant 0 : index
    %c0_7 = arith.constant 0 : index
    %6 = vector.load %arg1[%5, %c0_6, %c0_7] : memref<12x8x256xf32, #tpu.memory_space<vmem>>, vector<1x8x256xf32>
    %7 = vector.shape_cast %6 : vector<1x8x256xf32> to vector<8x256xf32>
    %c0_8 = arith.constant 0 : index
    %c0_9 = arith.constant 0 : index
    %8 = vector.load %arg4[%c0_8, %c0_9] : memref<8x64xf32, #tpu.memory_space<vmem>>, vector<8x64xf32>
    %9 = arith.truncf %8 : vector<8x64xf32> to vector<8x64xbf16>
    %cst_10 = arith.constant dense<0.000000e+00> : vector<8x256xf32>
    %10 = tpu.matmul %9, %4, %cst_10 {dimension_numbers = #tpu.dot_dimension_numbers<[1], [0], [0], [1], [0, 0, 1, 1], [], []>} : vector<8x64xbf16>, vector<64x256xbf16>, vector<8x256xf32> -> vector<8x256xf32>
    %11 = arith.addf %7, %10 : vector<8x256xf32>
    %cst_11 = arith.constant 0.000000e+00 : f32
    %12 = vector.broadcast %cst_11 : f32 to vector<8x256xf32>
    %13 = arith.subf %12, %11 : vector<8x256xf32>
    %14 = math.exp %13 : vector<8x256xf32>
    %cst_12 = arith.constant 1.000000e+00 : f32
    %15 = vector.broadcast %cst_12 : f32 to vector<8x256xf32>
    %16 = arith.addf %15, %14 : vector<8x256xf32>
    %cst_13 = arith.constant 1.000000e+00 : f32
    %17 = vector.broadcast %cst_13 : f32 to vector<8x256xf32>
    %18 = arith.divf %17, %16 : vector<8x256xf32>
    %19 = vector.extract_strided_slice %18 {offsets = [0, 0], sizes = [8, 64], strides = [1, 1]} : vector<8x256xf32> to vector<8x64xf32>
    %20 = vector.extract_strided_slice %18 {offsets = [0, 64], sizes = [8, 64], strides = [1, 1]} : vector<8x256xf32> to vector<8x64xf32>
    %21 = vector.extract_strided_slice %18 {offsets = [0, 128], sizes = [8, 64], strides = [1, 1]} : vector<8x256xf32> to vector<8x64xf32>
    %22 = vector.extract_strided_slice %11 {offsets = [0, 192], sizes = [8, 64], strides = [1, 1]} : vector<8x256xf32> to vector<8x64xf32>
    %23 = math.tanh %22 : vector<8x64xf32>
    %c0_14 = arith.constant 0 : index
    %c0_15 = arith.constant 0 : index
    %24 = vector.load %arg5[%c0_14, %c0_15] : memref<8x64xf32, #tpu.memory_space<vmem>>, vector<8x64xf32>
    %25 = arith.mulf %20, %24 : vector<8x64xf32>
    %26 = arith.mulf %19, %23 : vector<8x64xf32>
    %27 = arith.addf %25, %26 : vector<8x64xf32>
    %28 = math.tanh %27 : vector<8x64xf32>
    %29 = arith.mulf %21, %28 : vector<8x64xf32>
    %c0_16 = arith.constant 0 : index
    %c0_17 = arith.constant 0 : index
    %30 = vector.load %arg5[%c0_16, %c0_17] : memref<8x64xf32, #tpu.memory_space<vmem>>, vector<8x64xf32>
    tpu.vector_store %arg5[%c0_16, %c0_17], %27 {strides = array<i32>} : memref<8x64xf32, #tpu.memory_space<vmem>>, vector<8x64xf32>,
    %c0_18 = arith.constant 0 : index
    %c0_19 = arith.constant 0 : index
    %31 = vector.load %arg4[%c0_18, %c0_19] : memref<8x64xf32, #tpu.memory_space<vmem>>, vector<8x64xf32>
    tpu.vector_store %arg4[%c0_18, %c0_19], %29 {strides = array<i32>} : memref<8x64xf32, #tpu.memory_space<vmem>>, vector<8x64xf32>,
    %32 = arith.index_cast %c0_i32 : i32 to index
    %c0_20 = arith.constant 0 : index
    %c0_21 = arith.constant 0 : index
    %33 = vector.load %arg3[%32, %c0_20, %c0_21] : memref<12x8x64xf32, #tpu.memory_space<vmem>>, vector<1x8x64xf32>
    %34 = vector.shape_cast %33 : vector<1x8x64xf32> to vector<8x64xf32>
    %35 = vector.shape_cast %29 : vector<8x64xf32> to vector<1x8x64xf32>
    tpu.vector_store %arg3[%32, %c0_20, %c0_21], %35 {strides = array<i32>} : memref<12x8x64xf32, #tpu.memory_space<vmem>>, vector<1x8x64xf32>,
    %c1_i32 = arith.constant 1 : i32
    %36 = arith.index_cast %c1_i32 : i32 to index
    %c0_22 = arith.constant 0 : index
    %c0_23 = arith.constant 0 : index
    %37 = vector.load %arg1[%36, %c0_22, %c0_23] : memref<12x8x256xf32, #tpu.memory_space<vmem>>, vector<1x8x256xf32>
    %38 = vector.shape_cast %37 : vector<1x8x256xf32> to vector<8x256xf32>
    %c0_24 = arith.constant 0 : index
    %c0_25 = arith.constant 0 : index
    %39 = vector.load %arg4[%c0_24, %c0_25] : memref<8x64xf32, #tpu.memory_space<vmem>>, vector<8x64xf32>
    %40 = arith.truncf %39 : vector<8x64xf32> to vector<8x64xbf16>
    %cst_26 = arith.constant dense<0.000000e+00> : vector<8x256xf32>
    %41 = tpu.matmul %40, %4, %cst_26 {dimension_numbers = #tpu.dot_dimension_numbers<[1], [0], [0], [1], [0, 0, 1, 1], [], []>} : vector<8x64xbf16>, vector<64x256xbf16>, vector<8x256xf32> -> vector<8x256xf32>
    %42 = arith.addf %38, %41 : vector<8x256xf32>
    %cst_27 = arith.constant 0.000000e+00 : f32
    %43 = vector.broadcast %cst_27 : f32 to vector<8x256xf32>
    %44 = arith.subf %43, %42 : vector<8x256xf32>
    %45 = math.exp %44 : vector<8x256xf32>
    %cst_28 = arith.constant 1.000000e+00 : f32
    %46 = vector.broadcast %cst_28 : f32 to vector<8x256xf32>
    %47 = arith.addf %46, %45 : vector<8x256xf32>
    %cst_29 = arith.constant 1.000000e+00 : f32
    %48 = vector.broadcast %cst_29 : f32 to vector<8x256xf32>
    %49 = arith.divf %48, %47 : vector<8x256xf32>
    %50 = vector.extract_strided_slice %49 {offsets = [0, 0], sizes = [8, 64], strides = [1, 1]} : vector<8x256xf32> to vector<8x64xf32>
    %51 = vector.extract_strided_slice %49 {offsets = [0, 64], sizes = [8, 64], strides = [1, 1]} : vector<8x256xf32> to vector<8x64xf32>
    %52 = vector.extract_strided_slice %49 {offsets = [0, 128], sizes = [8, 64], strides = [1, 1]} : vector<8x256xf32> to vector<8x64xf32>
    %53 = vector.extract_strided_slice %42 {offsets = [0, 192], sizes = [8, 64], strides = [1, 1]} : vector<8x256xf32> to vector<8x64xf32>
    %54 = math.tanh %53 : vector<8x64xf32>
    %c0_30 = arith.constant 0 : index
    %c0_31 = arith.constant 0 : index
    %55 = vector.load %arg5[%c0_30, %c0_31] : memref<8x64xf32, #tpu.memory_space<vmem>>, vector<8x64xf32>
    %56 = arith.mulf %51, %55 : vector<8x64xf32>
    %57 = arith.mulf %50, %54 : vector<8x64xf32>
    %58 = arith.addf %56, %57 : vector<8x64xf32>
    %59 = math.tanh %58 : vector<8x64xf32>
    %60 = arith.mulf %52, %59 : vector<8x64xf32>
    %c0_32 = arith.constant 0 : index
    %c0_33 = arith.constant 0 : index
    %61 = vector.load %arg5[%c0_32, %c0_33] : memref<8x64xf32, #tpu.memory_space<vmem>>, vector<8x64xf32>
    tpu.vector_store %arg5[%c0_32, %c0_33], %58 {strides = array<i32>} : memref<8x64xf32, #tpu.memory_space<vmem>>, vector<8x64xf32>,
    %c0_34 = arith.constant 0 : index
    %c0_35 = arith.constant 0 : index
    %62 = vector.load %arg4[%c0_34, %c0_35] : memref<8x64xf32, #tpu.memory_space<vmem>>, vector<8x64xf32>
    tpu.vector_store %arg4[%c0_34, %c0_35], %60 {strides = array<i32>} : memref<8x64xf32, #tpu.memory_space<vmem>>, vector<8x64xf32>,
    %63 = arith.index_cast %c1_i32 : i32 to index
    %c0_36 = arith.constant 0 : index
    %c0_37 = arith.constant 0 : index
    %64 = vector.load %arg3[%63, %c0_36, %c0_37] : memref<12x8x64xf32, #tpu.memory_space<vmem>>, vector<1x8x64xf32>
    %65 = vector.shape_cast %64 : vector<1x8x64xf32> to vector<8x64xf32>
    %66 = vector.shape_cast %60 : vector<8x64xf32> to vector<1x8x64xf32>
    tpu.vector_store %arg3[%63, %c0_36, %c0_37], %66 {strides = array<i32>} : memref<12x8x64xf32, #tpu.memory_space<vmem>>, vector<1x8x64xf32>,
    %c2_i32 = arith.constant 2 : i32
    %67 = arith.index_cast %c2_i32 : i32 to index
    %c0_38 = arith.constant 0 : index
    %c0_39 = arith.constant 0 : index
    %68 = vector.load %arg1[%67, %c0_38, %c0_39] : memref<12x8x256xf32, #tpu.memory_space<vmem>>, vector<1x8x256xf32>
    %69 = vector.shape_cast %68 : vector<1x8x256xf32> to vector<8x256xf32>
    %c0_40 = arith.constant 0 : index
    %c0_41 = arith.constant 0 : index
    %70 = vector.load %arg4[%c0_40, %c0_41] : memref<8x64xf32, #tpu.memory_space<vmem>>, vector<8x64xf32>
    %71 = arith.truncf %70 : vector<8x64xf32> to vector<8x64xbf16>
    %cst_42 = arith.constant dense<0.000000e+00> : vector<8x256xf32>
    %72 = tpu.matmul %71, %4, %cst_42 {dimension_numbers = #tpu.dot_dimension_numbers<[1], [0], [0], [1], [0, 0, 1, 1], [], []>} : vector<8x64xbf16>, vector<64x256xbf16>, vector<8x256xf32> -> vector<8x256xf32>
    %73 = arith.addf %69, %72 : vector<8x256xf32>
    %cst_43 = arith.constant 0.000000e+00 : f32
    %74 = vector.broadcast %cst_43 : f32 to vector<8x256xf32>
    %75 = arith.subf %74, %73 : vector<8x256xf32>
    %76 = math.exp %75 : vector<8x256xf32>
    %cst_44 = arith.constant 1.000000e+00 : f32
    %77 = vector.broadcast %cst_44 : f32 to vector<8x256xf32>
    %78 = arith.addf %77, %76 : vector<8x256xf32>
    %cst_45 = arith.constant 1.000000e+00 : f32
    %79 = vector.broadcast %cst_45 : f32 to vector<8x256xf32>
    %80 = arith.divf %79, %78 : vector<8x256xf32>
    %81 = vector.extract_strided_slice %80 {offsets = [0, 0], sizes = [8, 64], strides = [1, 1]} : vector<8x256xf32> to vector<8x64xf32>
    %82 = vector.extract_strided_slice %80 {offsets = [0, 64], sizes = [8, 64], strides = [1, 1]} : vector<8x256xf32> to vector<8x64xf32>
    %83 = vector.extract_strided_slice %80 {offsets = [0, 128], sizes = [8, 64], strides = [1, 1]} : vector<8x256xf32> to vector<8x64xf32>
    %84 = vector.extract_strided_slice %73 {offsets = [0, 192], sizes = [8, 64], strides = [1, 1]} : vector<8x256xf32> to vector<8x64xf32>
    %85 = math.tanh %84 : vector<8x64xf32>
    %c0_46 = arith.constant 0 : index
    %c0_47 = arith.constant 0 : index
    %86 = vector.load %arg5[%c0_46, %c0_47] : memref<8x64xf32, #tpu.memory_space<vmem>>, vector<8x64xf32>
    %87 = arith.mulf %82, %86 : vector<8x64xf32>
    %88 = arith.mulf %81, %85 : vector<8x64xf32>
    %89 = arith.addf %87, %88 : vector<8x64xf32>
    %90 = math.tanh %89 : vector<8x64xf32>
    %91 = arith.mulf %83, %90 : vector<8x64xf32>
    %c0_48 = arith.constant 0 : index
    %c0_49 = arith.constant 0 : index
    %92 = vector.load %arg5[%c0_48, %c0_49] : memref<8x64xf32, #tpu.memory_space<vmem>>, vector<8x64xf32>
    tpu.vector_store %arg5[%c0_48, %c0_49], %89 {strides = array<i32>} : memref<8x64xf32, #tpu.memory_space<vmem>>, vector<8x64xf32>,
    %c0_50 = arith.constant 0 : index
    %c0_51 = arith.constant 0 : index
    %93 = vector.load %arg4[%c0_50, %c0_51] : memref<8x64xf32, #tpu.memory_space<vmem>>, vector<8x64xf32>
    tpu.vector_store %arg4[%c0_50, %c0_51], %91 {strides = array<i32>} : memref<8x64xf32, #tpu.memory_space<vmem>>, vector<8x64xf32>,
    %94 = arith.index_cast %c2_i32 : i32 to index
    %c0_52 = arith.constant 0 : index
    %c0_53 = arith.constant 0 : index
    %95 = vector.load %arg3[%94, %c0_52, %c0_53] : memref<12x8x64xf32, #tpu.memory_space<vmem>>, vector<1x8x64xf32>
    %96 = vector.shape_cast %95 : vector<1x8x64xf32> to vector<8x64xf32>
    %97 = vector.shape_cast %91 : vector<8x64xf32> to vector<1x8x64xf32>
    tpu.vector_store %arg3[%94, %c0_52, %c0_53], %97 {strides = array<i32>} : memref<12x8x64xf32, #tpu.memory_space<vmem>>, vector<1x8x64xf32>,
    %c3_i32 = arith.constant 3 : i32
    %98 = arith.index_cast %c3_i32 : i32 to index
    %c0_54 = arith.constant 0 : index
    %c0_55 = arith.constant 0 : index
    %99 = vector.load %arg1[%98, %c0_54, %c0_55] : memref<12x8x256xf32, #tpu.memory_space<vmem>>, vector<1x8x256xf32>
    %100 = vector.shape_cast %99 : vector<1x8x256xf32> to vector<8x256xf32>
    %c0_56 = arith.constant 0 : index
    %c0_57 = arith.constant 0 : index
    %101 = vector.load %arg4[%c0_56, %c0_57] : memref<8x64xf32, #tpu.memory_space<vmem>>, vector<8x64xf32>
    %102 = arith.truncf %101 : vector<8x64xf32> to vector<8x64xbf16>
    %cst_58 = arith.constant dense<0.000000e+00> : vector<8x256xf32>
    %103 = tpu.matmul %102, %4, %cst_58 {dimension_numbers = #tpu.dot_dimension_numbers<[1], [0], [0], [1], [0, 0, 1, 1], [], []>} : vector<8x64xbf16>, vector<64x256xbf16>, vector<8x256xf32> -> vector<8x256xf32>
    %104 = arith.addf %100, %103 : vector<8x256xf32>
    %cst_59 = arith.constant 0.000000e+00 : f32
    %105 = vector.broadcast %cst_59 : f32 to vector<8x256xf32>
    %106 = arith.subf %105, %104 : vector<8x256xf32>
    %107 = math.exp %106 : vector<8x256xf32>
    %cst_60 = arith.constant 1.000000e+00 : f32
    %108 = vector.broadcast %cst_60 : f32 to vector<8x256xf32>
    %109 = arith.addf %108, %107 : vector<8x256xf32>
    %cst_61 = arith.constant 1.000000e+00 : f32
    %110 = vector.broadcast %cst_61 : f32 to vector<8x256xf32>
    %111 = arith.divf %110, %109 : vector<8x256xf32>
    %112 = vector.extract_strided_slice %111 {offsets = [0, 0], sizes = [8, 64], strides = [1, 1]} : vector<8x256xf32> to vector<8x64xf32>
    %113 = vector.extract_strided_slice %111 {offsets = [0, 64], sizes = [8, 64], strides = [1, 1]} : vector<8x256xf32> to vector<8x64xf32>
    %114 = vector.extract_strided_slice %111 {offsets = [0, 128], sizes = [8, 64], strides = [1, 1]} : vector<8x256xf32> to vector<8x64xf32>
    %115 = vector.extract_strided_slice %104 {offsets = [0, 192], sizes = [8, 64], strides = [1, 1]} : vector<8x256xf32> to vector<8x64xf32>
    %116 = math.tanh %115 : vector<8x64xf32>
    %c0_62 = arith.constant 0 : index
    %c0_63 = arith.constant 0 : index
    %117 = vector.load %arg5[%c0_62, %c0_63] : memref<8x64xf32, #tpu.memory_space<vmem>>, vector<8x64xf32>
    %118 = arith.mulf %113, %117 : vector<8x64xf32>
    %119 = arith.mulf %112, %116 : vector<8x64xf32>
    %120 = arith.addf %118, %119 : vector<8x64xf32>
    %121 = math.tanh %120 : vector<8x64xf32>
    %122 = arith.mulf %114, %121 : vector<8x64xf32>
    %c0_64 = arith.constant 0 : index
    %c0_65 = arith.constant 0 : index
    %123 = vector.load %arg5[%c0_64, %c0_65] : memref<8x64xf32, #tpu.memory_space<vmem>>, vector<8x64xf32>
    tpu.vector_store %arg5[%c0_64, %c0_65], %120 {strides = array<i32>} : memref<8x64xf32, #tpu.memory_space<vmem>>, vector<8x64xf32>,
    %c0_66 = arith.constant 0 : index
    %c0_67 = arith.constant 0 : index
    %124 = vector.load %arg4[%c0_66, %c0_67] : memref<8x64xf32, #tpu.memory_space<vmem>>, vector<8x64xf32>
    tpu.vector_store %arg4[%c0_66, %c0_67], %122 {strides = array<i32>} : memref<8x64xf32, #tpu.memory_space<vmem>>, vector<8x64xf32>,
    %125 = arith.index_cast %c3_i32 : i32 to index
    %c0_68 = arith.constant 0 : index
    %c0_69 = arith.constant 0 : index
    %126 = vector.load %arg3[%125, %c0_68, %c0_69] : memref<12x8x64xf32, #tpu.memory_space<vmem>>, vector<1x8x64xf32>
    %127 = vector.shape_cast %126 : vector<1x8x64xf32> to vector<8x64xf32>
    %128 = vector.shape_cast %122 : vector<8x64xf32> to vector<1x8x64xf32>
    tpu.vector_store %arg3[%125, %c0_68, %c0_69], %128 {strides = array<i32>} : memref<12x8x64xf32, #tpu.memory_space<vmem>>, vector<1x8x64xf32>,
    %c4_i32 = arith.constant 4 : i32
    %129 = arith.index_cast %c4_i32 : i32 to index
    %c0_70 = arith.constant 0 : index
    %c0_71 = arith.constant 0 : index
    %130 = vector.load %arg1[%129, %c0_70, %c0_71] : memref<12x8x256xf32, #tpu.memory_space<vmem>>, vector<1x8x256xf32>
    %131 = vector.shape_cast %130 : vector<1x8x256xf32> to vector<8x256xf32>
    %c0_72 = arith.constant 0 : index
    %c0_73 = arith.constant 0 : index
    %132 = vector.load %arg4[%c0_72, %c0_73] : memref<8x64xf32, #tpu.memory_space<vmem>>, vector<8x64xf32>
    %133 = arith.truncf %132 : vector<8x64xf32> to vector<8x64xbf16>
    %cst_74 = arith.constant dense<0.000000e+00> : vector<8x256xf32>
    %134 = tpu.matmul %133, %4, %cst_74 {dimension_numbers = #tpu.dot_dimension_numbers<[1], [0], [0], [1], [0, 0, 1, 1], [], []>} : vector<8x64xbf16>, vector<64x256xbf16>, vector<8x256xf32> -> vector<8x256xf32>
    %135 = arith.addf %131, %134 : vector<8x256xf32>
    %cst_75 = arith.constant 0.000000e+00 : f32
    %136 = vector.broadcast %cst_75 : f32 to vector<8x256xf32>
    %137 = arith.subf %136, %135 : vector<8x256xf32>
    %138 = math.exp %137 : vector<8x256xf32>
    %cst_76 = arith.constant 1.000000e+00 : f32
    %139 = vector.broadcast %cst_76 : f32 to vector<8x256xf32>
    %140 = arith.addf %139, %138 : vector<8x256xf32>
    %cst_77 = arith.constant 1.000000e+00 : f32
    %141 = vector.broadcast %cst_77 : f32 to vector<8x256xf32>
    %142 = arith.divf %141, %140 : vector<8x256xf32>
    %143 = vector.extract_strided_slice %142 {offsets = [0, 0], sizes = [8, 64], strides = [1, 1]} : vector<8x256xf32> to vector<8x64xf32>
    %144 = vector.extract_strided_slice %142 {offsets = [0, 64], sizes = [8, 64], strides = [1, 1]} : vector<8x256xf32> to vector<8x64xf32>
    %145 = vector.extract_strided_slice %142 {offsets = [0, 128], sizes = [8, 64], strides = [1, 1]} : vector<8x256xf32> to vector<8x64xf32>
    %146 = vector.extract_strided_slice %135 {offsets = [0, 192], sizes = [8, 64], strides = [1, 1]} : vector<8x256xf32> to vector<8x64xf32>
    %147 = math.tanh %146 : vector<8x64xf32>
    %c0_78 = arith.constant 0 : index
    %c0_79 = arith.constant 0 : index
    %148 = vector.load %arg5[%c0_78, %c0_79] : memref<8x64xf32, #tpu.memory_space<vmem>>, vector<8x64xf32>
    %149 = arith.mulf %144, %148 : vector<8x64xf32>
    %150 = arith.mulf %143, %147 : vector<8x64xf32>
    %151 = arith.addf %149, %150 : vector<8x64xf32>
    %152 = math.tanh %151 : vector<8x64xf32>
    %153 = arith.mulf %145, %152 : vector<8x64xf32>
    %c0_80 = arith.constant 0 : index
    %c0_81 = arith.constant 0 : index
    %154 = vector.load %arg5[%c0_80, %c0_81] : memref<8x64xf32, #tpu.memory_space<vmem>>, vector<8x64xf32>
    tpu.vector_store %arg5[%c0_80, %c0_81], %151 {strides = array<i32>} : memref<8x64xf32, #tpu.memory_space<vmem>>, vector<8x64xf32>,
    %c0_82 = arith.constant 0 : index
    %c0_83 = arith.constant 0 : index
    %155 = vector.load %arg4[%c0_82, %c0_83] : memref<8x64xf32, #tpu.memory_space<vmem>>, vector<8x64xf32>
    tpu.vector_store %arg4[%c0_82, %c0_83], %153 {strides = array<i32>} : memref<8x64xf32, #tpu.memory_space<vmem>>, vector<8x64xf32>,
    %156 = arith.index_cast %c4_i32 : i32 to index
    %c0_84 = arith.constant 0 : index
    %c0_85 = arith.constant 0 : index
    %157 = vector.load %arg3[%156, %c0_84, %c0_85] : memref<12x8x64xf32, #tpu.memory_space<vmem>>, vector<1x8x64xf32>
    %158 = vector.shape_cast %157 : vector<1x8x64xf32> to vector<8x64xf32>
    %159 = vector.shape_cast %153 : vector<8x64xf32> to vector<1x8x64xf32>
    tpu.vector_store %arg3[%156, %c0_84, %c0_85], %159 {strides = array<i32>} : memref<12x8x64xf32, #tpu.memory_space<vmem>>, vector<1x8x64xf32>,
    %c5_i32 = arith.constant 5 : i32
    %160 = arith.index_cast %c5_i32 : i32 to index
    %c0_86 = arith.constant 0 : index
    %c0_87 = arith.constant 0 : index
    %161 = vector.load %arg1[%160, %c0_86, %c0_87] : memref<12x8x256xf32, #tpu.memory_space<vmem>>, vector<1x8x256xf32>
    %162 = vector.shape_cast %161 : vector<1x8x256xf32> to vector<8x256xf32>
    %c0_88 = arith.constant 0 : index
    %c0_89 = arith.constant 0 : index
    %163 = vector.load %arg4[%c0_88, %c0_89] : memref<8x64xf32, #tpu.memory_space<vmem>>, vector<8x64xf32>
    %164 = arith.truncf %163 : vector<8x64xf32> to vector<8x64xbf16>
    %cst_90 = arith.constant dense<0.000000e+00> : vector<8x256xf32>
    %165 = tpu.matmul %164, %4, %cst_90 {dimension_numbers = #tpu.dot_dimension_numbers<[1], [0], [0], [1], [0, 0, 1, 1], [], []>} : vector<8x64xbf16>, vector<64x256xbf16>, vector<8x256xf32> -> vector<8x256xf32>
    %166 = arith.addf %162, %165 : vector<8x256xf32>
    %cst_91 = arith.constant 0.000000e+00 : f32
    %167 = vector.broadcast %cst_91 : f32 to vector<8x256xf32>
    %168 = arith.subf %167, %166 : vector<8x256xf32>
    %169 = math.exp %168 : vector<8x256xf32>
    %cst_92 = arith.constant 1.000000e+00 : f32
    %170 = vector.broadcast %cst_92 : f32 to vector<8x256xf32>
    %171 = arith.addf %170, %169 : vector<8x256xf32>
    %cst_93 = arith.constant 1.000000e+00 : f32
    %172 = vector.broadcast %cst_93 : f32 to vector<8x256xf32>
    %173 = arith.divf %172, %171 : vector<8x256xf32>
    %174 = vector.extract_strided_slice %173 {offsets = [0, 0], sizes = [8, 64], strides = [1, 1]} : vector<8x256xf32> to vector<8x64xf32>
    %175 = vector.extract_strided_slice %173 {offsets = [0, 64], sizes = [8, 64], strides = [1, 1]} : vector<8x256xf32> to vector<8x64xf32>
    %176 = vector.extract_strided_slice %173 {offsets = [0, 128], sizes = [8, 64], strides = [1, 1]} : vector<8x256xf32> to vector<8x64xf32>
    %177 = vector.extract_strided_slice %166 {offsets = [0, 192], sizes = [8, 64], strides = [1, 1]} : vector<8x256xf32> to vector<8x64xf32>
    %178 = math.tanh %177 : vector<8x64xf32>
    %c0_94 = arith.constant 0 : index
    %c0_95 = arith.constant 0 : index
    %179 = vector.load %arg5[%c0_94, %c0_95] : memref<8x64xf32, #tpu.memory_space<vmem>>, vector<8x64xf32>
    %180 = arith.mulf %175, %179 : vector<8x64xf32>
    %181 = arith.mulf %174, %178 : vector<8x64xf32>
    %182 = arith.addf %180, %181 : vector<8x64xf32>
    %183 = math.tanh %182 : vector<8x64xf32>
    %184 = arith.mulf %176, %183 : vector<8x64xf32>
    %c0_96 = arith.constant 0 : index
    %c0_97 = arith.constant 0 : index
    %185 = vector.load %arg5[%c0_96, %c0_97] : memref<8x64xf32, #tpu.memory_space<vmem>>, vector<8x64xf32>
    tpu.vector_store %arg5[%c0_96, %c0_97], %182 {strides = array<i32>} : memref<8x64xf32, #tpu.memory_space<vmem>>, vector<8x64xf32>,
    %c0_98 = arith.constant 0 : index
    %c0_99 = arith.constant 0 : index
    %186 = vector.load %arg4[%c0_98, %c0_99] : memref<8x64xf32, #tpu.memory_space<vmem>>, vector<8x64xf32>
    tpu.vector_store %arg4[%c0_98, %c0_99], %184 {strides = array<i32>} : memref<8x64xf32, #tpu.memory_space<vmem>>, vector<8x64xf32>,
    %187 = arith.index_cast %c5_i32 : i32 to index
    %c0_100 = arith.constant 0 : index
    %c0_101 = arith.constant 0 : index
    %188 = vector.load %arg3[%187, %c0_100, %c0_101] : memref<12x8x64xf32, #tpu.memory_space<vmem>>, vector<1x8x64xf32>
    %189 = vector.shape_cast %188 : vector<1x8x64xf32> to vector<8x64xf32>
    %190 = vector.shape_cast %184 : vector<8x64xf32> to vector<1x8x64xf32>
    tpu.vector_store %arg3[%187, %c0_100, %c0_101], %190 {strides = array<i32>} : memref<12x8x64xf32, #tpu.memory_space<vmem>>, vector<1x8x64xf32>,
    %c6_i32 = arith.constant 6 : i32
    %191 = arith.index_cast %c6_i32 : i32 to index
    %c0_102 = arith.constant 0 : index
    %c0_103 = arith.constant 0 : index
    %192 = vector.load %arg1[%191, %c0_102, %c0_103] : memref<12x8x256xf32, #tpu.memory_space<vmem>>, vector<1x8x256xf32>
    %193 = vector.shape_cast %192 : vector<1x8x256xf32> to vector<8x256xf32>
    %c0_104 = arith.constant 0 : index
    %c0_105 = arith.constant 0 : index
    %194 = vector.load %arg4[%c0_104, %c0_105] : memref<8x64xf32, #tpu.memory_space<vmem>>, vector<8x64xf32>
    %195 = arith.truncf %194 : vector<8x64xf32> to vector<8x64xbf16>
    %cst_106 = arith.constant dense<0.000000e+00> : vector<8x256xf32>
    %196 = tpu.matmul %195, %4, %cst_106 {dimension_numbers = #tpu.dot_dimension_numbers<[1], [0], [0], [1], [0, 0, 1, 1], [], []>} : vector<8x64xbf16>, vector<64x256xbf16>, vector<8x256xf32> -> vector<8x256xf32>
    %197 = arith.addf %193, %196 : vector<8x256xf32>
    %cst_107 = arith.constant 0.000000e+00 : f32
    %198 = vector.broadcast %cst_107 : f32 to vector<8x256xf32>
    %199 = arith.subf %198, %197 : vector<8x256xf32>
    %200 = math.exp %199 : vector<8x256xf32>
    %cst_108 = arith.constant 1.000000e+00 : f32
    %201 = vector.broadcast %cst_108 : f32 to vector<8x256xf32>
    %202 = arith.addf %201, %200 : vector<8x256xf32>
    %cst_109 = arith.constant 1.000000e+00 : f32
    %203 = vector.broadcast %cst_109 : f32 to vector<8x256xf32>
    %204 = arith.divf %203, %202 : vector<8x256xf32>
    %205 = vector.extract_strided_slice %204 {offsets = [0, 0], sizes = [8, 64], strides = [1, 1]} : vector<8x256xf32> to vector<8x64xf32>
    %206 = vector.extract_strided_slice %204 {offsets = [0, 64], sizes = [8, 64], strides = [1, 1]} : vector<8x256xf32> to vector<8x64xf32>
    %207 = vector.extract_strided_slice %204 {offsets = [0, 128], sizes = [8, 64], strides = [1, 1]} : vector<8x256xf32> to vector<8x64xf32>
    %208 = vector.extract_strided_slice %197 {offsets = [0, 192], sizes = [8, 64], strides = [1, 1]} : vector<8x256xf32> to vector<8x64xf32>
    %209 = math.tanh %208 : vector<8x64xf32>
    %c0_110 = arith.constant 0 : index
    %c0_111 = arith.constant 0 : index
    %210 = vector.load %arg5[%c0_110, %c0_111] : memref<8x64xf32, #tpu.memory_space<vmem>>, vector<8x64xf32>
    %211 = arith.mulf %206, %210 : vector<8x64xf32>
    %212 = arith.mulf %205, %209 : vector<8x64xf32>
    %213 = arith.addf %211, %212 : vector<8x64xf32>
    %214 = math.tanh %213 : vector<8x64xf32>
    %215 = arith.mulf %207, %214 : vector<8x64xf32>
    %c0_112 = arith.constant 0 : index
    %c0_113 = arith.constant 0 : index
    %216 = vector.load %arg5[%c0_112, %c0_113] : memref<8x64xf32, #tpu.memory_space<vmem>>, vector<8x64xf32>
    tpu.vector_store %arg5[%c0_112, %c0_113], %213 {strides = array<i32>} : memref<8x64xf32, #tpu.memory_space<vmem>>, vector<8x64xf32>,
    %c0_114 = arith.constant 0 : index
    %c0_115 = arith.constant 0 : index
    %217 = vector.load %arg4[%c0_114, %c0_115] : memref<8x64xf32, #tpu.memory_space<vmem>>, vector<8x64xf32>
    tpu.vector_store %arg4[%c0_114, %c0_115], %215 {strides = array<i32>} : memref<8x64xf32, #tpu.memory_space<vmem>>, vector<8x64xf32>,
    %218 = arith.index_cast %c6_i32 : i32 to index
    %c0_116 = arith.constant 0 : index
    %c0_117 = arith.constant 0 : index
    %219 = vector.load %arg3[%218, %c0_116, %c0_117] : memref<12x8x64xf32, #tpu.memory_space<vmem>>, vector<1x8x64xf32>
    %220 = vector.shape_cast %219 : vector<1x8x64xf32> to vector<8x64xf32>
    %221 = vector.shape_cast %215 : vector<8x64xf32> to vector<1x8x64xf32>
    tpu.vector_store %arg3[%218, %c0_116, %c0_117], %221 {strides = array<i32>} : memref<12x8x64xf32, #tpu.memory_space<vmem>>, vector<1x8x64xf32>,
    %c7_i32 = arith.constant 7 : i32
    %222 = arith.index_cast %c7_i32 : i32 to index
    %c0_118 = arith.constant 0 : index
    %c0_119 = arith.constant 0 : index
    %223 = vector.load %arg1[%222, %c0_118, %c0_119] : memref<12x8x256xf32, #tpu.memory_space<vmem>>, vector<1x8x256xf32>
    %224 = vector.shape_cast %223 : vector<1x8x256xf32> to vector<8x256xf32>
    %c0_120 = arith.constant 0 : index
    %c0_121 = arith.constant 0 : index
    %225 = vector.load %arg4[%c0_120, %c0_121] : memref<8x64xf32, #tpu.memory_space<vmem>>, vector<8x64xf32>
    %226 = arith.truncf %225 : vector<8x64xf32> to vector<8x64xbf16>
    %cst_122 = arith.constant dense<0.000000e+00> : vector<8x256xf32>
    %227 = tpu.matmul %226, %4, %cst_122 {dimension_numbers = #tpu.dot_dimension_numbers<[1], [0], [0], [1], [0, 0, 1, 1], [], []>} : vector<8x64xbf16>, vector<64x256xbf16>, vector<8x256xf32> -> vector<8x256xf32>
    %228 = arith.addf %224, %227 : vector<8x256xf32>
    %cst_123 = arith.constant 0.000000e+00 : f32
    %229 = vector.broadcast %cst_123 : f32 to vector<8x256xf32>
    %230 = arith.subf %229, %228 : vector<8x256xf32>
    %231 = math.exp %230 : vector<8x256xf32>
    %cst_124 = arith.constant 1.000000e+00 : f32
    %232 = vector.broadcast %cst_124 : f32 to vector<8x256xf32>
    %233 = arith.addf %232, %231 : vector<8x256xf32>
    %cst_125 = arith.constant 1.000000e+00 : f32
    %234 = vector.broadcast %cst_125 : f32 to vector<8x256xf32>
    %235 = arith.divf %234, %233 : vector<8x256xf32>
    %236 = vector.extract_strided_slice %235 {offsets = [0, 0], sizes = [8, 64], strides = [1, 1]} : vector<8x256xf32> to vector<8x64xf32>
    %237 = vector.extract_strided_slice %235 {offsets = [0, 64], sizes = [8, 64], strides = [1, 1]} : vector<8x256xf32> to vector<8x64xf32>
    %238 = vector.extract_strided_slice %235 {offsets = [0, 128], sizes = [8, 64], strides = [1, 1]} : vector<8x256xf32> to vector<8x64xf32>
    %239 = vector.extract_strided_slice %228 {offsets = [0, 192], sizes = [8, 64], strides = [1, 1]} : vector<8x256xf32> to vector<8x64xf32>
    %240 = math.tanh %239 : vector<8x64xf32>
    %c0_126 = arith.constant 0 : index
    %c0_127 = arith.constant 0 : index
    %241 = vector.load %arg5[%c0_126, %c0_127] : memref<8x64xf32, #tpu.memory_space<vmem>>, vector<8x64xf32>
    %242 = arith.mulf %237, %241 : vector<8x64xf32>
    %243 = arith.mulf %236, %240 : vector<8x64xf32>
    %244 = arith.addf %242, %243 : vector<8x64xf32>
    %245 = math.tanh %244 : vector<8x64xf32>
    %246 = arith.mulf %238, %245 : vector<8x64xf32>
    %c0_128 = arith.constant 0 : index
    %c0_129 = arith.constant 0 : index
    %247 = vector.load %arg5[%c0_128, %c0_129] : memref<8x64xf32, #tpu.memory_space<vmem>>, vector<8x64xf32>
    tpu.vector_store %arg5[%c0_128, %c0_129], %244 {strides = array<i32>} : memref<8x64xf32, #tpu.memory_space<vmem>>, vector<8x64xf32>,
    %c0_130 = arith.constant 0 : index
    %c0_131 = arith.constant 0 : index
    %248 = vector.load %arg4[%c0_130, %c0_131] : memref<8x64xf32, #tpu.memory_space<vmem>>, vector<8x64xf32>
    tpu.vector_store %arg4[%c0_130, %c0_131], %246 {strides = array<i32>} : memref<8x64xf32, #tpu.memory_space<vmem>>, vector<8x64xf32>,
    %249 = arith.index_cast %c7_i32 : i32 to index
    %c0_132 = arith.constant 0 : index
    %c0_133 = arith.constant 0 : index
    %250 = vector.load %arg3[%249, %c0_132, %c0_133] : memref<12x8x64xf32, #tpu.memory_space<vmem>>, vector<1x8x64xf32>
    %251 = vector.shape_cast %250 : vector<1x8x64xf32> to vector<8x64xf32>
    %252 = vector.shape_cast %246 : vector<8x64xf32> to vector<1x8x64xf32>
    tpu.vector_store %arg3[%249, %c0_132, %c0_133], %252 {strides = array<i32>} : memref<12x8x64xf32, #tpu.memory_space<vmem>>, vector<1x8x64xf32>,
    %c8_i32 = arith.constant 8 : i32
    %253 = arith.index_cast %c8_i32 : i32 to index
    %c0_134 = arith.constant 0 : index
    %c0_135 = arith.constant 0 : index
    %254 = vector.load %arg1[%253, %c0_134, %c0_135] : memref<12x8x256xf32, #tpu.memory_space<vmem>>, vector<1x8x256xf32>
    %255 = vector.shape_cast %254 : vector<1x8x256xf32> to vector<8x256xf32>
    %c0_136 = arith.constant 0 : index
    %c0_137 = arith.constant 0 : index
    %256 = vector.load %arg4[%c0_136, %c0_137] : memref<8x64xf32, #tpu.memory_space<vmem>>, vector<8x64xf32>
    %257 = arith.truncf %256 : vector<8x64xf32> to vector<8x64xbf16>
    %cst_138 = arith.constant dense<0.000000e+00> : vector<8x256xf32>
    %258 = tpu.matmul %257, %4, %cst_138 {dimension_numbers = #tpu.dot_dimension_numbers<[1], [0], [0], [1], [0, 0, 1, 1], [], []>} : vector<8x64xbf16>, vector<64x256xbf16>, vector<8x256xf32> -> vector<8x256xf32>
    %259 = arith.addf %255, %258 : vector<8x256xf32>
    %cst_139 = arith.constant 0.000000e+00 : f32
    %260 = vector.broadcast %cst_139 : f32 to vector<8x256xf32>
    %261 = arith.subf %260, %259 : vector<8x256xf32>
    %262 = math.exp %261 : vector<8x256xf32>
    %cst_140 = arith.constant 1.000000e+00 : f32
    %263 = vector.broadcast %cst_140 : f32 to vector<8x256xf32>
    %264 = arith.addf %263, %262 : vector<8x256xf32>
    %cst_141 = arith.constant 1.000000e+00 : f32
    %265 = vector.broadcast %cst_141 : f32 to vector<8x256xf32>
    %266 = arith.divf %265, %264 : vector<8x256xf32>
    %267 = vector.extract_strided_slice %266 {offsets = [0, 0], sizes = [8, 64], strides = [1, 1]} : vector<8x256xf32> to vector<8x64xf32>
    %268 = vector.extract_strided_slice %266 {offsets = [0, 64], sizes = [8, 64], strides = [1, 1]} : vector<8x256xf32> to vector<8x64xf32>
    %269 = vector.extract_strided_slice %266 {offsets = [0, 128], sizes = [8, 64], strides = [1, 1]} : vector<8x256xf32> to vector<8x64xf32>
    %270 = vector.extract_strided_slice %259 {offsets = [0, 192], sizes = [8, 64], strides = [1, 1]} : vector<8x256xf32> to vector<8x64xf32>
    %271 = math.tanh %270 : vector<8x64xf32>
    %c0_142 = arith.constant 0 : index
    %c0_143 = arith.constant 0 : index
    %272 = vector.load %arg5[%c0_142, %c0_143] : memref<8x64xf32, #tpu.memory_space<vmem>>, vector<8x64xf32>
    %273 = arith.mulf %268, %272 : vector<8x64xf32>
    %274 = arith.mulf %267, %271 : vector<8x64xf32>
    %275 = arith.addf %273, %274 : vector<8x64xf32>
    %276 = math.tanh %275 : vector<8x64xf32>
    %277 = arith.mulf %269, %276 : vector<8x64xf32>
    %c0_144 = arith.constant 0 : index
    %c0_145 = arith.constant 0 : index
    %278 = vector.load %arg5[%c0_144, %c0_145] : memref<8x64xf32, #tpu.memory_space<vmem>>, vector<8x64xf32>
    tpu.vector_store %arg5[%c0_144, %c0_145], %275 {strides = array<i32>} : memref<8x64xf32, #tpu.memory_space<vmem>>, vector<8x64xf32>,
    %c0_146 = arith.constant 0 : index
    %c0_147 = arith.constant 0 : index
    %279 = vector.load %arg4[%c0_146, %c0_147] : memref<8x64xf32, #tpu.memory_space<vmem>>, vector<8x64xf32>
    tpu.vector_store %arg4[%c0_146, %c0_147], %277 {strides = array<i32>} : memref<8x64xf32, #tpu.memory_space<vmem>>, vector<8x64xf32>,
    %280 = arith.index_cast %c8_i32 : i32 to index
    %c0_148 = arith.constant 0 : index
    %c0_149 = arith.constant 0 : index
    %281 = vector.load %arg3[%280, %c0_148, %c0_149] : memref<12x8x64xf32, #tpu.memory_space<vmem>>, vector<1x8x64xf32>
    %282 = vector.shape_cast %281 : vector<1x8x64xf32> to vector<8x64xf32>
    %283 = vector.shape_cast %277 : vector<8x64xf32> to vector<1x8x64xf32>
    tpu.vector_store %arg3[%280, %c0_148, %c0_149], %283 {strides = array<i32>} : memref<12x8x64xf32, #tpu.memory_space<vmem>>, vector<1x8x64xf32>,
    %c9_i32 = arith.constant 9 : i32
    %284 = arith.index_cast %c9_i32 : i32 to index
    %c0_150 = arith.constant 0 : index
    %c0_151 = arith.constant 0 : index
    %285 = vector.load %arg1[%284, %c0_150, %c0_151] : memref<12x8x256xf32, #tpu.memory_space<vmem>>, vector<1x8x256xf32>
    %286 = vector.shape_cast %285 : vector<1x8x256xf32> to vector<8x256xf32>
    %c0_152 = arith.constant 0 : index
    %c0_153 = arith.constant 0 : index
    %287 = vector.load %arg4[%c0_152, %c0_153] : memref<8x64xf32, #tpu.memory_space<vmem>>, vector<8x64xf32>
    %288 = arith.truncf %287 : vector<8x64xf32> to vector<8x64xbf16>
    %cst_154 = arith.constant dense<0.000000e+00> : vector<8x256xf32>
    %289 = tpu.matmul %288, %4, %cst_154 {dimension_numbers = #tpu.dot_dimension_numbers<[1], [0], [0], [1], [0, 0, 1, 1], [], []>} : vector<8x64xbf16>, vector<64x256xbf16>, vector<8x256xf32> -> vector<8x256xf32>
    %290 = arith.addf %286, %289 : vector<8x256xf32>
    %cst_155 = arith.constant 0.000000e+00 : f32
    %291 = vector.broadcast %cst_155 : f32 to vector<8x256xf32>
    %292 = arith.subf %291, %290 : vector<8x256xf32>
    %293 = math.exp %292 : vector<8x256xf32>
    %cst_156 = arith.constant 1.000000e+00 : f32
    %294 = vector.broadcast %cst_156 : f32 to vector<8x256xf32>
    %295 = arith.addf %294, %293 : vector<8x256xf32>
    %cst_157 = arith.constant 1.000000e+00 : f32
    %296 = vector.broadcast %cst_157 : f32 to vector<8x256xf32>
    %297 = arith.divf %296, %295 : vector<8x256xf32>
    %298 = vector.extract_strided_slice %297 {offsets = [0, 0], sizes = [8, 64], strides = [1, 1]} : vector<8x256xf32> to vector<8x64xf32>
    %299 = vector.extract_strided_slice %297 {offsets = [0, 64], sizes = [8, 64], strides = [1, 1]} : vector<8x256xf32> to vector<8x64xf32>
    %300 = vector.extract_strided_slice %297 {offsets = [0, 128], sizes = [8, 64], strides = [1, 1]} : vector<8x256xf32> to vector<8x64xf32>
    %301 = vector.extract_strided_slice %290 {offsets = [0, 192], sizes = [8, 64], strides = [1, 1]} : vector<8x256xf32> to vector<8x64xf32>
    %302 = math.tanh %301 : vector<8x64xf32>
    %c0_158 = arith.constant 0 : index
    %c0_159 = arith.constant 0 : index
    %303 = vector.load %arg5[%c0_158, %c0_159] : memref<8x64xf32, #tpu.memory_space<vmem>>, vector<8x64xf32>
    %304 = arith.mulf %299, %303 : vector<8x64xf32>
    %305 = arith.mulf %298, %302 : vector<8x64xf32>
    %306 = arith.addf %304, %305 : vector<8x64xf32>
    %307 = math.tanh %306 : vector<8x64xf32>
    %308 = arith.mulf %300, %307 : vector<8x64xf32>
    %c0_160 = arith.constant 0 : index
    %c0_161 = arith.constant 0 : index
    %309 = vector.load %arg5[%c0_160, %c0_161] : memref<8x64xf32, #tpu.memory_space<vmem>>, vector<8x64xf32>
    tpu.vector_store %arg5[%c0_160, %c0_161], %306 {strides = array<i32>} : memref<8x64xf32, #tpu.memory_space<vmem>>, vector<8x64xf32>,
    %c0_162 = arith.constant 0 : index
    %c0_163 = arith.constant 0 : index
    %310 = vector.load %arg4[%c0_162, %c0_163] : memref<8x64xf32, #tpu.memory_space<vmem>>, vector<8x64xf32>
    tpu.vector_store %arg4[%c0_162, %c0_163], %308 {strides = array<i32>} : memref<8x64xf32, #tpu.memory_space<vmem>>, vector<8x64xf32>,
    %311 = arith.index_cast %c9_i32 : i32 to index
    %c0_164 = arith.constant 0 : index
    %c0_165 = arith.constant 0 : index
    %312 = vector.load %arg3[%311, %c0_164, %c0_165] : memref<12x8x64xf32, #tpu.memory_space<vmem>>, vector<1x8x64xf32>
    %313 = vector.shape_cast %312 : vector<1x8x64xf32> to vector<8x64xf32>
    %314 = vector.shape_cast %308 : vector<8x64xf32> to vector<1x8x64xf32>
    tpu.vector_store %arg3[%311, %c0_164, %c0_165], %314 {strides = array<i32>} : memref<12x8x64xf32, #tpu.memory_space<vmem>>, vector<1x8x64xf32>,
    %c10_i32 = arith.constant 10 : i32
    %315 = arith.index_cast %c10_i32 : i32 to index
    %c0_166 = arith.constant 0 : index
    %c0_167 = arith.constant 0 : index
    %316 = vector.load %arg1[%315, %c0_166, %c0_167] : memref<12x8x256xf32, #tpu.memory_space<vmem>>, vector<1x8x256xf32>
    %317 = vector.shape_cast %316 : vector<1x8x256xf32> to vector<8x256xf32>
    %c0_168 = arith.constant 0 : index
    %c0_169 = arith.constant 0 : index
    %318 = vector.load %arg4[%c0_168, %c0_169] : memref<8x64xf32, #tpu.memory_space<vmem>>, vector<8x64xf32>
    %319 = arith.truncf %318 : vector<8x64xf32> to vector<8x64xbf16>
    %cst_170 = arith.constant dense<0.000000e+00> : vector<8x256xf32>
    %320 = tpu.matmul %319, %4, %cst_170 {dimension_numbers = #tpu.dot_dimension_numbers<[1], [0], [0], [1], [0, 0, 1, 1], [], []>} : vector<8x64xbf16>, vector<64x256xbf16>, vector<8x256xf32> -> vector<8x256xf32>
    %321 = arith.addf %317, %320 : vector<8x256xf32>
    %cst_171 = arith.constant 0.000000e+00 : f32
    %322 = vector.broadcast %cst_171 : f32 to vector<8x256xf32>
    %323 = arith.subf %322, %321 : vector<8x256xf32>
    %324 = math.exp %323 : vector<8x256xf32>
    %cst_172 = arith.constant 1.000000e+00 : f32
    %325 = vector.broadcast %cst_172 : f32 to vector<8x256xf32>
    %326 = arith.addf %325, %324 : vector<8x256xf32>
    %cst_173 = arith.constant 1.000000e+00 : f32
    %327 = vector.broadcast %cst_173 : f32 to vector<8x256xf32>
    %328 = arith.divf %327, %326 : vector<8x256xf32>
    %329 = vector.extract_strided_slice %328 {offsets = [0, 0], sizes = [8, 64], strides = [1, 1]} : vector<8x256xf32> to vector<8x64xf32>
    %330 = vector.extract_strided_slice %328 {offsets = [0, 64], sizes = [8, 64], strides = [1, 1]} : vector<8x256xf32> to vector<8x64xf32>
    %331 = vector.extract_strided_slice %328 {offsets = [0, 128], sizes = [8, 64], strides = [1, 1]} : vector<8x256xf32> to vector<8x64xf32>
    %332 = vector.extract_strided_slice %321 {offsets = [0, 192], sizes = [8, 64], strides = [1, 1]} : vector<8x256xf32> to vector<8x64xf32>
    %333 = math.tanh %332 : vector<8x64xf32>
    %c0_174 = arith.constant 0 : index
    %c0_175 = arith.constant 0 : index
    %334 = vector.load %arg5[%c0_174, %c0_175] : memref<8x64xf32, #tpu.memory_space<vmem>>, vector<8x64xf32>
    %335 = arith.mulf %330, %334 : vector<8x64xf32>
    %336 = arith.mulf %329, %333 : vector<8x64xf32>
    %337 = arith.addf %335, %336 : vector<8x64xf32>
    %338 = math.tanh %337 : vector<8x64xf32>
    %339 = arith.mulf %331, %338 : vector<8x64xf32>
    %c0_176 = arith.constant 0 : index
    %c0_177 = arith.constant 0 : index
    %340 = vector.load %arg5[%c0_176, %c0_177] : memref<8x64xf32, #tpu.memory_space<vmem>>, vector<8x64xf32>
    tpu.vector_store %arg5[%c0_176, %c0_177], %337 {strides = array<i32>} : memref<8x64xf32, #tpu.memory_space<vmem>>, vector<8x64xf32>,
    %c0_178 = arith.constant 0 : index
    %c0_179 = arith.constant 0 : index
    %341 = vector.load %arg4[%c0_178, %c0_179] : memref<8x64xf32, #tpu.memory_space<vmem>>, vector<8x64xf32>
    tpu.vector_store %arg4[%c0_178, %c0_179], %339 {strides = array<i32>} : memref<8x64xf32, #tpu.memory_space<vmem>>, vector<8x64xf32>,
    %342 = arith.index_cast %c10_i32 : i32 to index
    %c0_180 = arith.constant 0 : index
    %c0_181 = arith.constant 0 : index
    %343 = vector.load %arg3[%342, %c0_180, %c0_181] : memref<12x8x64xf32, #tpu.memory_space<vmem>>, vector<1x8x64xf32>
    %344 = vector.shape_cast %343 : vector<1x8x64xf32> to vector<8x64xf32>
    %345 = vector.shape_cast %339 : vector<8x64xf32> to vector<1x8x64xf32>
    tpu.vector_store %arg3[%342, %c0_180, %c0_181], %345 {strides = array<i32>} : memref<12x8x64xf32, #tpu.memory_space<vmem>>, vector<1x8x64xf32>,
    %c11_i32 = arith.constant 11 : i32
    %346 = arith.index_cast %c11_i32 : i32 to index
    %c0_182 = arith.constant 0 : index
    %c0_183 = arith.constant 0 : index
    %347 = vector.load %arg1[%346, %c0_182, %c0_183] : memref<12x8x256xf32, #tpu.memory_space<vmem>>, vector<1x8x256xf32>
    %348 = vector.shape_cast %347 : vector<1x8x256xf32> to vector<8x256xf32>
    %c0_184 = arith.constant 0 : index
    %c0_185 = arith.constant 0 : index
    %349 = vector.load %arg4[%c0_184, %c0_185] : memref<8x64xf32, #tpu.memory_space<vmem>>, vector<8x64xf32>
    %350 = arith.truncf %349 : vector<8x64xf32> to vector<8x64xbf16>
    %cst_186 = arith.constant dense<0.000000e+00> : vector<8x256xf32>
    %351 = tpu.matmul %350, %4, %cst_186 {dimension_numbers = #tpu.dot_dimension_numbers<[1], [0], [0], [1], [0, 0, 1, 1], [], []>} : vector<8x64xbf16>, vector<64x256xbf16>, vector<8x256xf32> -> vector<8x256xf32>
    %352 = arith.addf %348, %351 : vector<8x256xf32>
    %cst_187 = arith.constant 0.000000e+00 : f32
    %353 = vector.broadcast %cst_187 : f32 to vector<8x256xf32>
    %354 = arith.subf %353, %352 : vector<8x256xf32>
    %355 = math.exp %354 : vector<8x256xf32>
    %cst_188 = arith.constant 1.000000e+00 : f32
    %356 = vector.broadcast %cst_188 : f32 to vector<8x256xf32>
    %357 = arith.addf %356, %355 : vector<8x256xf32>
    %cst_189 = arith.constant 1.000000e+00 : f32
    %358 = vector.broadcast %cst_189 : f32 to vector<8x256xf32>
    %359 = arith.divf %358, %357 : vector<8x256xf32>
    %360 = vector.extract_strided_slice %359 {offsets = [0, 0], sizes = [8, 64], strides = [1, 1]} : vector<8x256xf32> to vector<8x64xf32>
    %361 = vector.extract_strided_slice %359 {offsets = [0, 64], sizes = [8, 64], strides = [1, 1]} : vector<8x256xf32> to vector<8x64xf32>
    %362 = vector.extract_strided_slice %359 {offsets = [0, 128], sizes = [8, 64], strides = [1, 1]} : vector<8x256xf32> to vector<8x64xf32>
    %363 = vector.extract_strided_slice %352 {offsets = [0, 192], sizes = [8, 64], strides = [1, 1]} : vector<8x256xf32> to vector<8x64xf32>
    %364 = math.tanh %363 : vector<8x64xf32>
    %c0_190 = arith.constant 0 : index
    %c0_191 = arith.constant 0 : index
    %365 = vector.load %arg5[%c0_190, %c0_191] : memref<8x64xf32, #tpu.memory_space<vmem>>, vector<8x64xf32>
    %366 = arith.mulf %361, %365 : vector<8x64xf32>
    %367 = arith.mulf %360, %364 : vector<8x64xf32>
    %368 = arith.addf %366, %367 : vector<8x64xf32>
    %369 = math.tanh %368 : vector<8x64xf32>
    %370 = arith.mulf %362, %369 : vector<8x64xf32>
    %c0_192 = arith.constant 0 : index
    %c0_193 = arith.constant 0 : index
    %371 = vector.load %arg5[%c0_192, %c0_193] : memref<8x64xf32, #tpu.memory_space<vmem>>, vector<8x64xf32>
    tpu.vector_store %arg5[%c0_192, %c0_193], %368 {strides = array<i32>} : memref<8x64xf32, #tpu.memory_space<vmem>>, vector<8x64xf32>,
    %c0_194 = arith.constant 0 : index
    %c0_195 = arith.constant 0 : index
    %372 = vector.load %arg4[%c0_194, %c0_195] : memref<8x64xf32, #tpu.memory_space<vmem>>, vector<8x64xf32>
    tpu.vector_store %arg4[%c0_194, %c0_195], %370 {strides = array<i32>} : memref<8x64xf32, #tpu.memory_space<vmem>>, vector<8x64xf32>,
    %373 = arith.index_cast %c11_i32 : i32 to index
    %c0_196 = arith.constant 0 : index
    %c0_197 = arith.constant 0 : index
    %374 = vector.load %arg3[%373, %c0_196, %c0_197] : memref<12x8x64xf32, #tpu.memory_space<vmem>>, vector<1x8x64xf32>
    %375 = vector.shape_cast %374 : vector<1x8x64xf32> to vector<8x64xf32>
    %376 = vector.shape_cast %370 : vector<8x64xf32> to vector<1x8x64xf32>
    tpu.vector_store %arg3[%373, %c0_196, %c0_197], %376 {strides = array<i32>} : memref<12x8x64xf32, #tpu.memory_space<vmem>>, vector<1x8x64xf32>,
    %c12_i32 = arith.constant 12 : i32
    return
  }
  func.func @transform_0(%arg0: i32) -> (i32, i32, i32) {
    %c0_i32 = arith.constant 0 : i32
    %c0_i32_0 = arith.constant 0 : i32
    %c0_i32_1 = arith.constant 0 : i32
    %c0_i32_2 = arith.constant 0 : i32
    return %c0_i32, %c0_i32_0, %c0_i32_1 : i32, i32, i32
  }
  func.func @transform_1(%arg0: i32) -> (i32, i32) {
    %c0_i32 = arith.constant 0 : i32
    %c0_i32_0 = arith.constant 0 : i32
    %c0_i32_1 = arith.constant 0 : i32
    return %c0_i32, %c0_i32_0 : i32, i32
  }
  func.func @transform_2(%arg0: i32) -> (i32, i32, i32) {
    %c0_i32 = arith.constant 0 : i32
    %c0_i32_0 = arith.constant 0 : i32
    %c0_i32_1 = arith.constant 0 : i32
    %c0_i32_2 = arith.constant 0 : i32
    return %c0_i32, %c0_i32_0, %c0_i32_1 : i32, i32, i32
  }
}

module attributes {stable_mosaic.version = 11 : i64} {
  func.func @_fused_lstm_kernel(%arg0: i32, %arg1: memref<8x8x256xf32, #tpu.memory_space<vmem>>, %arg2: memref<64x256xbf16, #tpu.memory_space<vmem>>, %arg3: memref<8x8x64xf32, #tpu.memory_space<vmem>>, %arg4: memref<8x64xf32, #tpu.memory_space<vmem>>, %arg5: memref<8x64xf32, #tpu.memory_space<vmem>>) attributes {dimension_semantics = [#tpu.dimension_semantics<arbitrary>], iteration_bounds = array<i64: 1>, scalar_prefetch = 0 : i64, scratch_operands = 2 : i64, tpu.core_type = #tpu.core_type<tc>, window_params = [{pipeline_mode = #tpu.pipeline_mode<synchronous>, transform_indices = @transform_0, window_bounds = array<i64: 8, 8, 256>}, {pipeline_mode = #tpu.pipeline_mode<synchronous>, transform_indices = @transform_1, window_bounds = array<i64: 64, 256>}, {pipeline_mode = #tpu.pipeline_mode<synchronous>, transform_indices = @transform_2, window_bounds = array<i64: 8, 8, 64>}]} {
    %cst = arith.constant 0.000000e+00 : f32
    %0 = vector.broadcast %cst : f32 to vector<8x64xf32>
    %c0 = arith.constant 0 : index
    %c0_0 = arith.constant 0 : index
    %1 = vector.load %arg4[%c0, %c0_0] : memref<8x64xf32, #tpu.memory_space<vmem>>, vector<8x64xf32>
    tpu.vector_store %arg4[%c0, %c0_0], %0 {strides = array<i32>} : memref<8x64xf32, #tpu.memory_space<vmem>>, vector<8x64xf32>,
    %cst_1 = arith.constant 0.000000e+00 : f32
    %2 = vector.broadcast %cst_1 : f32 to vector<8x64xf32>
    %c0_2 = arith.constant 0 : index
    %c0_3 = arith.constant 0 : index
    %3 = vector.load %arg5[%c0_2, %c0_3] : memref<8x64xf32, #tpu.memory_space<vmem>>, vector<8x64xf32>
    tpu.vector_store %arg5[%c0_2, %c0_3], %2 {strides = array<i32>} : memref<8x64xf32, #tpu.memory_space<vmem>>, vector<8x64xf32>,
    %c0_4 = arith.constant 0 : index
    %c0_5 = arith.constant 0 : index
    %4 = vector.load %arg2[%c0_4, %c0_5] : memref<64x256xbf16, #tpu.memory_space<vmem>>, vector<64x256xbf16>
    %c0_i32 = arith.constant 0 : i32
    %5 = arith.index_cast %c0_i32 : i32 to index
    %c0_6 = arith.constant 0 : index
    %c0_7 = arith.constant 0 : index
    %6 = vector.load %arg1[%5, %c0_6, %c0_7] : memref<8x8x256xf32, #tpu.memory_space<vmem>>, vector<1x8x256xf32>
    %7 = vector.shape_cast %6 : vector<1x8x256xf32> to vector<8x256xf32>
    %c0_8 = arith.constant 0 : index
    %c0_9 = arith.constant 0 : index
    %8 = vector.load %arg4[%c0_8, %c0_9] : memref<8x64xf32, #tpu.memory_space<vmem>>, vector<8x64xf32>
    %9 = arith.truncf %8 : vector<8x64xf32> to vector<8x64xbf16>
    %cst_10 = arith.constant dense<0.000000e+00> : vector<8x256xf32>
    %10 = tpu.matmul %9, %4, %cst_10 {dimension_numbers = #tpu.dot_dimension_numbers<[1], [0], [0], [1], [0, 0, 1, 1], [], []>} : vector<8x64xbf16>, vector<64x256xbf16>, vector<8x256xf32> -> vector<8x256xf32>
    %11 = arith.addf %7, %10 : vector<8x256xf32>
    %cst_11 = arith.constant 0.000000e+00 : f32
    %12 = vector.broadcast %cst_11 : f32 to vector<8x256xf32>
    %13 = arith.subf %12, %11 : vector<8x256xf32>
    %14 = math.exp %13 : vector<8x256xf32>
    %cst_12 = arith.constant 1.000000e+00 : f32
    %15 = vector.broadcast %cst_12 : f32 to vector<8x256xf32>
    %16 = arith.addf %15, %14 : vector<8x256xf32>
    %cst_13 = arith.constant 1.000000e+00 : f32
    %17 = vector.broadcast %cst_13 : f32 to vector<8x256xf32>
    %18 = arith.divf %17, %16 : vector<8x256xf32>
    %19 = vector.extract_strided_slice %18 {offsets = [0, 0], sizes = [8, 64], strides = [1, 1]} : vector<8x256xf32> to vector<8x64xf32>
    %20 = vector.extract_strided_slice %18 {offsets = [0, 64], sizes = [8, 64], strides = [1, 1]} : vector<8x256xf32> to vector<8x64xf32>
    %21 = vector.extract_strided_slice %18 {offsets = [0, 128], sizes = [8, 64], strides = [1, 1]} : vector<8x256xf32> to vector<8x64xf32>
    %22 = vector.extract_strided_slice %11 {offsets = [0, 192], sizes = [8, 64], strides = [1, 1]} : vector<8x256xf32> to vector<8x64xf32>
    %23 = math.tanh %22 : vector<8x64xf32>
    %c0_14 = arith.constant 0 : index
    %c0_15 = arith.constant 0 : index
    %24 = vector.load %arg5[%c0_14, %c0_15] : memref<8x64xf32, #tpu.memory_space<vmem>>, vector<8x64xf32>
    %25 = arith.mulf %20, %24 : vector<8x64xf32>
    %26 = arith.mulf %19, %23 : vector<8x64xf32>
    %27 = arith.addf %25, %26 : vector<8x64xf32>
    %28 = math.tanh %27 : vector<8x64xf32>
    %29 = arith.mulf %21, %28 : vector<8x64xf32>
    %c0_16 = arith.constant 0 : index
    %c0_17 = arith.constant 0 : index
    %30 = vector.load %arg5[%c0_16, %c0_17] : memref<8x64xf32, #tpu.memory_space<vmem>>, vector<8x64xf32>
    tpu.vector_store %arg5[%c0_16, %c0_17], %27 {strides = array<i32>} : memref<8x64xf32, #tpu.memory_space<vmem>>, vector<8x64xf32>,
    %c0_18 = arith.constant 0 : index
    %c0_19 = arith.constant 0 : index
    %31 = vector.load %arg4[%c0_18, %c0_19] : memref<8x64xf32, #tpu.memory_space<vmem>>, vector<8x64xf32>
    tpu.vector_store %arg4[%c0_18, %c0_19], %29 {strides = array<i32>} : memref<8x64xf32, #tpu.memory_space<vmem>>, vector<8x64xf32>,
    %32 = arith.index_cast %c0_i32 : i32 to index
    %c0_20 = arith.constant 0 : index
    %c0_21 = arith.constant 0 : index
    %33 = vector.load %arg3[%32, %c0_20, %c0_21] : memref<8x8x64xf32, #tpu.memory_space<vmem>>, vector<1x8x64xf32>
    %34 = vector.shape_cast %33 : vector<1x8x64xf32> to vector<8x64xf32>
    %35 = vector.shape_cast %29 : vector<8x64xf32> to vector<1x8x64xf32>
    tpu.vector_store %arg3[%32, %c0_20, %c0_21], %35 {strides = array<i32>} : memref<8x8x64xf32, #tpu.memory_space<vmem>>, vector<1x8x64xf32>,
    %c1_i32 = arith.constant 1 : i32
    %36 = arith.index_cast %c1_i32 : i32 to index
    %c0_22 = arith.constant 0 : index
    %c0_23 = arith.constant 0 : index
    %37 = vector.load %arg1[%36, %c0_22, %c0_23] : memref<8x8x256xf32, #tpu.memory_space<vmem>>, vector<1x8x256xf32>
    %38 = vector.shape_cast %37 : vector<1x8x256xf32> to vector<8x256xf32>
    %c0_24 = arith.constant 0 : index
    %c0_25 = arith.constant 0 : index
    %39 = vector.load %arg4[%c0_24, %c0_25] : memref<8x64xf32, #tpu.memory_space<vmem>>, vector<8x64xf32>
    %40 = arith.truncf %39 : vector<8x64xf32> to vector<8x64xbf16>
    %cst_26 = arith.constant dense<0.000000e+00> : vector<8x256xf32>
    %41 = tpu.matmul %40, %4, %cst_26 {dimension_numbers = #tpu.dot_dimension_numbers<[1], [0], [0], [1], [0, 0, 1, 1], [], []>} : vector<8x64xbf16>, vector<64x256xbf16>, vector<8x256xf32> -> vector<8x256xf32>
    %42 = arith.addf %38, %41 : vector<8x256xf32>
    %cst_27 = arith.constant 0.000000e+00 : f32
    %43 = vector.broadcast %cst_27 : f32 to vector<8x256xf32>
    %44 = arith.subf %43, %42 : vector<8x256xf32>
    %45 = math.exp %44 : vector<8x256xf32>
    %cst_28 = arith.constant 1.000000e+00 : f32
    %46 = vector.broadcast %cst_28 : f32 to vector<8x256xf32>
    %47 = arith.addf %46, %45 : vector<8x256xf32>
    %cst_29 = arith.constant 1.000000e+00 : f32
    %48 = vector.broadcast %cst_29 : f32 to vector<8x256xf32>
    %49 = arith.divf %48, %47 : vector<8x256xf32>
    %50 = vector.extract_strided_slice %49 {offsets = [0, 0], sizes = [8, 64], strides = [1, 1]} : vector<8x256xf32> to vector<8x64xf32>
    %51 = vector.extract_strided_slice %49 {offsets = [0, 64], sizes = [8, 64], strides = [1, 1]} : vector<8x256xf32> to vector<8x64xf32>
    %52 = vector.extract_strided_slice %49 {offsets = [0, 128], sizes = [8, 64], strides = [1, 1]} : vector<8x256xf32> to vector<8x64xf32>
    %53 = vector.extract_strided_slice %42 {offsets = [0, 192], sizes = [8, 64], strides = [1, 1]} : vector<8x256xf32> to vector<8x64xf32>
    %54 = math.tanh %53 : vector<8x64xf32>
    %c0_30 = arith.constant 0 : index
    %c0_31 = arith.constant 0 : index
    %55 = vector.load %arg5[%c0_30, %c0_31] : memref<8x64xf32, #tpu.memory_space<vmem>>, vector<8x64xf32>
    %56 = arith.mulf %51, %55 : vector<8x64xf32>
    %57 = arith.mulf %50, %54 : vector<8x64xf32>
    %58 = arith.addf %56, %57 : vector<8x64xf32>
    %59 = math.tanh %58 : vector<8x64xf32>
    %60 = arith.mulf %52, %59 : vector<8x64xf32>
    %c0_32 = arith.constant 0 : index
    %c0_33 = arith.constant 0 : index
    %61 = vector.load %arg5[%c0_32, %c0_33] : memref<8x64xf32, #tpu.memory_space<vmem>>, vector<8x64xf32>
    tpu.vector_store %arg5[%c0_32, %c0_33], %58 {strides = array<i32>} : memref<8x64xf32, #tpu.memory_space<vmem>>, vector<8x64xf32>,
    %c0_34 = arith.constant 0 : index
    %c0_35 = arith.constant 0 : index
    %62 = vector.load %arg4[%c0_34, %c0_35] : memref<8x64xf32, #tpu.memory_space<vmem>>, vector<8x64xf32>
    tpu.vector_store %arg4[%c0_34, %c0_35], %60 {strides = array<i32>} : memref<8x64xf32, #tpu.memory_space<vmem>>, vector<8x64xf32>,
    %63 = arith.index_cast %c1_i32 : i32 to index
    %c0_36 = arith.constant 0 : index
    %c0_37 = arith.constant 0 : index
    %64 = vector.load %arg3[%63, %c0_36, %c0_37] : memref<8x8x64xf32, #tpu.memory_space<vmem>>, vector<1x8x64xf32>
    %65 = vector.shape_cast %64 : vector<1x8x64xf32> to vector<8x64xf32>
    %66 = vector.shape_cast %60 : vector<8x64xf32> to vector<1x8x64xf32>
    tpu.vector_store %arg3[%63, %c0_36, %c0_37], %66 {strides = array<i32>} : memref<8x8x64xf32, #tpu.memory_space<vmem>>, vector<1x8x64xf32>,
    %c2_i32 = arith.constant 2 : i32
    %67 = arith.index_cast %c2_i32 : i32 to index
    %c0_38 = arith.constant 0 : index
    %c0_39 = arith.constant 0 : index
    %68 = vector.load %arg1[%67, %c0_38, %c0_39] : memref<8x8x256xf32, #tpu.memory_space<vmem>>, vector<1x8x256xf32>
    %69 = vector.shape_cast %68 : vector<1x8x256xf32> to vector<8x256xf32>
    %c0_40 = arith.constant 0 : index
    %c0_41 = arith.constant 0 : index
    %70 = vector.load %arg4[%c0_40, %c0_41] : memref<8x64xf32, #tpu.memory_space<vmem>>, vector<8x64xf32>
    %71 = arith.truncf %70 : vector<8x64xf32> to vector<8x64xbf16>
    %cst_42 = arith.constant dense<0.000000e+00> : vector<8x256xf32>
    %72 = tpu.matmul %71, %4, %cst_42 {dimension_numbers = #tpu.dot_dimension_numbers<[1], [0], [0], [1], [0, 0, 1, 1], [], []>} : vector<8x64xbf16>, vector<64x256xbf16>, vector<8x256xf32> -> vector<8x256xf32>
    %73 = arith.addf %69, %72 : vector<8x256xf32>
    %cst_43 = arith.constant 0.000000e+00 : f32
    %74 = vector.broadcast %cst_43 : f32 to vector<8x256xf32>
    %75 = arith.subf %74, %73 : vector<8x256xf32>
    %76 = math.exp %75 : vector<8x256xf32>
    %cst_44 = arith.constant 1.000000e+00 : f32
    %77 = vector.broadcast %cst_44 : f32 to vector<8x256xf32>
    %78 = arith.addf %77, %76 : vector<8x256xf32>
    %cst_45 = arith.constant 1.000000e+00 : f32
    %79 = vector.broadcast %cst_45 : f32 to vector<8x256xf32>
    %80 = arith.divf %79, %78 : vector<8x256xf32>
    %81 = vector.extract_strided_slice %80 {offsets = [0, 0], sizes = [8, 64], strides = [1, 1]} : vector<8x256xf32> to vector<8x64xf32>
    %82 = vector.extract_strided_slice %80 {offsets = [0, 64], sizes = [8, 64], strides = [1, 1]} : vector<8x256xf32> to vector<8x64xf32>
    %83 = vector.extract_strided_slice %80 {offsets = [0, 128], sizes = [8, 64], strides = [1, 1]} : vector<8x256xf32> to vector<8x64xf32>
    %84 = vector.extract_strided_slice %73 {offsets = [0, 192], sizes = [8, 64], strides = [1, 1]} : vector<8x256xf32> to vector<8x64xf32>
    %85 = math.tanh %84 : vector<8x64xf32>
    %c0_46 = arith.constant 0 : index
    %c0_47 = arith.constant 0 : index
    %86 = vector.load %arg5[%c0_46, %c0_47] : memref<8x64xf32, #tpu.memory_space<vmem>>, vector<8x64xf32>
    %87 = arith.mulf %82, %86 : vector<8x64xf32>
    %88 = arith.mulf %81, %85 : vector<8x64xf32>
    %89 = arith.addf %87, %88 : vector<8x64xf32>
    %90 = math.tanh %89 : vector<8x64xf32>
    %91 = arith.mulf %83, %90 : vector<8x64xf32>
    %c0_48 = arith.constant 0 : index
    %c0_49 = arith.constant 0 : index
    %92 = vector.load %arg5[%c0_48, %c0_49] : memref<8x64xf32, #tpu.memory_space<vmem>>, vector<8x64xf32>
    tpu.vector_store %arg5[%c0_48, %c0_49], %89 {strides = array<i32>} : memref<8x64xf32, #tpu.memory_space<vmem>>, vector<8x64xf32>,
    %c0_50 = arith.constant 0 : index
    %c0_51 = arith.constant 0 : index
    %93 = vector.load %arg4[%c0_50, %c0_51] : memref<8x64xf32, #tpu.memory_space<vmem>>, vector<8x64xf32>
    tpu.vector_store %arg4[%c0_50, %c0_51], %91 {strides = array<i32>} : memref<8x64xf32, #tpu.memory_space<vmem>>, vector<8x64xf32>,
    %94 = arith.index_cast %c2_i32 : i32 to index
    %c0_52 = arith.constant 0 : index
    %c0_53 = arith.constant 0 : index
    %95 = vector.load %arg3[%94, %c0_52, %c0_53] : memref<8x8x64xf32, #tpu.memory_space<vmem>>, vector<1x8x64xf32>
    %96 = vector.shape_cast %95 : vector<1x8x64xf32> to vector<8x64xf32>
    %97 = vector.shape_cast %91 : vector<8x64xf32> to vector<1x8x64xf32>
    tpu.vector_store %arg3[%94, %c0_52, %c0_53], %97 {strides = array<i32>} : memref<8x8x64xf32, #tpu.memory_space<vmem>>, vector<1x8x64xf32>,
    %c3_i32 = arith.constant 3 : i32
    %98 = arith.index_cast %c3_i32 : i32 to index
    %c0_54 = arith.constant 0 : index
    %c0_55 = arith.constant 0 : index
    %99 = vector.load %arg1[%98, %c0_54, %c0_55] : memref<8x8x256xf32, #tpu.memory_space<vmem>>, vector<1x8x256xf32>
    %100 = vector.shape_cast %99 : vector<1x8x256xf32> to vector<8x256xf32>
    %c0_56 = arith.constant 0 : index
    %c0_57 = arith.constant 0 : index
    %101 = vector.load %arg4[%c0_56, %c0_57] : memref<8x64xf32, #tpu.memory_space<vmem>>, vector<8x64xf32>
    %102 = arith.truncf %101 : vector<8x64xf32> to vector<8x64xbf16>
    %cst_58 = arith.constant dense<0.000000e+00> : vector<8x256xf32>
    %103 = tpu.matmul %102, %4, %cst_58 {dimension_numbers = #tpu.dot_dimension_numbers<[1], [0], [0], [1], [0, 0, 1, 1], [], []>} : vector<8x64xbf16>, vector<64x256xbf16>, vector<8x256xf32> -> vector<8x256xf32>
    %104 = arith.addf %100, %103 : vector<8x256xf32>
    %cst_59 = arith.constant 0.000000e+00 : f32
    %105 = vector.broadcast %cst_59 : f32 to vector<8x256xf32>
    %106 = arith.subf %105, %104 : vector<8x256xf32>
    %107 = math.exp %106 : vector<8x256xf32>
    %cst_60 = arith.constant 1.000000e+00 : f32
    %108 = vector.broadcast %cst_60 : f32 to vector<8x256xf32>
    %109 = arith.addf %108, %107 : vector<8x256xf32>
    %cst_61 = arith.constant 1.000000e+00 : f32
    %110 = vector.broadcast %cst_61 : f32 to vector<8x256xf32>
    %111 = arith.divf %110, %109 : vector<8x256xf32>
    %112 = vector.extract_strided_slice %111 {offsets = [0, 0], sizes = [8, 64], strides = [1, 1]} : vector<8x256xf32> to vector<8x64xf32>
    %113 = vector.extract_strided_slice %111 {offsets = [0, 64], sizes = [8, 64], strides = [1, 1]} : vector<8x256xf32> to vector<8x64xf32>
    %114 = vector.extract_strided_slice %111 {offsets = [0, 128], sizes = [8, 64], strides = [1, 1]} : vector<8x256xf32> to vector<8x64xf32>
    %115 = vector.extract_strided_slice %104 {offsets = [0, 192], sizes = [8, 64], strides = [1, 1]} : vector<8x256xf32> to vector<8x64xf32>
    %116 = math.tanh %115 : vector<8x64xf32>
    %c0_62 = arith.constant 0 : index
    %c0_63 = arith.constant 0 : index
    %117 = vector.load %arg5[%c0_62, %c0_63] : memref<8x64xf32, #tpu.memory_space<vmem>>, vector<8x64xf32>
    %118 = arith.mulf %113, %117 : vector<8x64xf32>
    %119 = arith.mulf %112, %116 : vector<8x64xf32>
    %120 = arith.addf %118, %119 : vector<8x64xf32>
    %121 = math.tanh %120 : vector<8x64xf32>
    %122 = arith.mulf %114, %121 : vector<8x64xf32>
    %c0_64 = arith.constant 0 : index
    %c0_65 = arith.constant 0 : index
    %123 = vector.load %arg5[%c0_64, %c0_65] : memref<8x64xf32, #tpu.memory_space<vmem>>, vector<8x64xf32>
    tpu.vector_store %arg5[%c0_64, %c0_65], %120 {strides = array<i32>} : memref<8x64xf32, #tpu.memory_space<vmem>>, vector<8x64xf32>,
    %c0_66 = arith.constant 0 : index
    %c0_67 = arith.constant 0 : index
    %124 = vector.load %arg4[%c0_66, %c0_67] : memref<8x64xf32, #tpu.memory_space<vmem>>, vector<8x64xf32>
    tpu.vector_store %arg4[%c0_66, %c0_67], %122 {strides = array<i32>} : memref<8x64xf32, #tpu.memory_space<vmem>>, vector<8x64xf32>,
    %125 = arith.index_cast %c3_i32 : i32 to index
    %c0_68 = arith.constant 0 : index
    %c0_69 = arith.constant 0 : index
    %126 = vector.load %arg3[%125, %c0_68, %c0_69] : memref<8x8x64xf32, #tpu.memory_space<vmem>>, vector<1x8x64xf32>
    %127 = vector.shape_cast %126 : vector<1x8x64xf32> to vector<8x64xf32>
    %128 = vector.shape_cast %122 : vector<8x64xf32> to vector<1x8x64xf32>
    tpu.vector_store %arg3[%125, %c0_68, %c0_69], %128 {strides = array<i32>} : memref<8x8x64xf32, #tpu.memory_space<vmem>>, vector<1x8x64xf32>,
    %c4_i32 = arith.constant 4 : i32
    %129 = arith.index_cast %c4_i32 : i32 to index
    %c0_70 = arith.constant 0 : index
    %c0_71 = arith.constant 0 : index
    %130 = vector.load %arg1[%129, %c0_70, %c0_71] : memref<8x8x256xf32, #tpu.memory_space<vmem>>, vector<1x8x256xf32>
    %131 = vector.shape_cast %130 : vector<1x8x256xf32> to vector<8x256xf32>
    %c0_72 = arith.constant 0 : index
    %c0_73 = arith.constant 0 : index
    %132 = vector.load %arg4[%c0_72, %c0_73] : memref<8x64xf32, #tpu.memory_space<vmem>>, vector<8x64xf32>
    %133 = arith.truncf %132 : vector<8x64xf32> to vector<8x64xbf16>
    %cst_74 = arith.constant dense<0.000000e+00> : vector<8x256xf32>
    %134 = tpu.matmul %133, %4, %cst_74 {dimension_numbers = #tpu.dot_dimension_numbers<[1], [0], [0], [1], [0, 0, 1, 1], [], []>} : vector<8x64xbf16>, vector<64x256xbf16>, vector<8x256xf32> -> vector<8x256xf32>
    %135 = arith.addf %131, %134 : vector<8x256xf32>
    %cst_75 = arith.constant 0.000000e+00 : f32
    %136 = vector.broadcast %cst_75 : f32 to vector<8x256xf32>
    %137 = arith.subf %136, %135 : vector<8x256xf32>
    %138 = math.exp %137 : vector<8x256xf32>
    %cst_76 = arith.constant 1.000000e+00 : f32
    %139 = vector.broadcast %cst_76 : f32 to vector<8x256xf32>
    %140 = arith.addf %139, %138 : vector<8x256xf32>
    %cst_77 = arith.constant 1.000000e+00 : f32
    %141 = vector.broadcast %cst_77 : f32 to vector<8x256xf32>
    %142 = arith.divf %141, %140 : vector<8x256xf32>
    %143 = vector.extract_strided_slice %142 {offsets = [0, 0], sizes = [8, 64], strides = [1, 1]} : vector<8x256xf32> to vector<8x64xf32>
    %144 = vector.extract_strided_slice %142 {offsets = [0, 64], sizes = [8, 64], strides = [1, 1]} : vector<8x256xf32> to vector<8x64xf32>
    %145 = vector.extract_strided_slice %142 {offsets = [0, 128], sizes = [8, 64], strides = [1, 1]} : vector<8x256xf32> to vector<8x64xf32>
    %146 = vector.extract_strided_slice %135 {offsets = [0, 192], sizes = [8, 64], strides = [1, 1]} : vector<8x256xf32> to vector<8x64xf32>
    %147 = math.tanh %146 : vector<8x64xf32>
    %c0_78 = arith.constant 0 : index
    %c0_79 = arith.constant 0 : index
    %148 = vector.load %arg5[%c0_78, %c0_79] : memref<8x64xf32, #tpu.memory_space<vmem>>, vector<8x64xf32>
    %149 = arith.mulf %144, %148 : vector<8x64xf32>
    %150 = arith.mulf %143, %147 : vector<8x64xf32>
    %151 = arith.addf %149, %150 : vector<8x64xf32>
    %152 = math.tanh %151 : vector<8x64xf32>
    %153 = arith.mulf %145, %152 : vector<8x64xf32>
    %c0_80 = arith.constant 0 : index
    %c0_81 = arith.constant 0 : index
    %154 = vector.load %arg5[%c0_80, %c0_81] : memref<8x64xf32, #tpu.memory_space<vmem>>, vector<8x64xf32>
    tpu.vector_store %arg5[%c0_80, %c0_81], %151 {strides = array<i32>} : memref<8x64xf32, #tpu.memory_space<vmem>>, vector<8x64xf32>,
    %c0_82 = arith.constant 0 : index
    %c0_83 = arith.constant 0 : index
    %155 = vector.load %arg4[%c0_82, %c0_83] : memref<8x64xf32, #tpu.memory_space<vmem>>, vector<8x64xf32>
    tpu.vector_store %arg4[%c0_82, %c0_83], %153 {strides = array<i32>} : memref<8x64xf32, #tpu.memory_space<vmem>>, vector<8x64xf32>,
    %156 = arith.index_cast %c4_i32 : i32 to index
    %c0_84 = arith.constant 0 : index
    %c0_85 = arith.constant 0 : index
    %157 = vector.load %arg3[%156, %c0_84, %c0_85] : memref<8x8x64xf32, #tpu.memory_space<vmem>>, vector<1x8x64xf32>
    %158 = vector.shape_cast %157 : vector<1x8x64xf32> to vector<8x64xf32>
    %159 = vector.shape_cast %153 : vector<8x64xf32> to vector<1x8x64xf32>
    tpu.vector_store %arg3[%156, %c0_84, %c0_85], %159 {strides = array<i32>} : memref<8x8x64xf32, #tpu.memory_space<vmem>>, vector<1x8x64xf32>,
    %c5_i32 = arith.constant 5 : i32
    %160 = arith.index_cast %c5_i32 : i32 to index
    %c0_86 = arith.constant 0 : index
    %c0_87 = arith.constant 0 : index
    %161 = vector.load %arg1[%160, %c0_86, %c0_87] : memref<8x8x256xf32, #tpu.memory_space<vmem>>, vector<1x8x256xf32>
    %162 = vector.shape_cast %161 : vector<1x8x256xf32> to vector<8x256xf32>
    %c0_88 = arith.constant 0 : index
    %c0_89 = arith.constant 0 : index
    %163 = vector.load %arg4[%c0_88, %c0_89] : memref<8x64xf32, #tpu.memory_space<vmem>>, vector<8x64xf32>
    %164 = arith.truncf %163 : vector<8x64xf32> to vector<8x64xbf16>
    %cst_90 = arith.constant dense<0.000000e+00> : vector<8x256xf32>
    %165 = tpu.matmul %164, %4, %cst_90 {dimension_numbers = #tpu.dot_dimension_numbers<[1], [0], [0], [1], [0, 0, 1, 1], [], []>} : vector<8x64xbf16>, vector<64x256xbf16>, vector<8x256xf32> -> vector<8x256xf32>
    %166 = arith.addf %162, %165 : vector<8x256xf32>
    %cst_91 = arith.constant 0.000000e+00 : f32
    %167 = vector.broadcast %cst_91 : f32 to vector<8x256xf32>
    %168 = arith.subf %167, %166 : vector<8x256xf32>
    %169 = math.exp %168 : vector<8x256xf32>
    %cst_92 = arith.constant 1.000000e+00 : f32
    %170 = vector.broadcast %cst_92 : f32 to vector<8x256xf32>
    %171 = arith.addf %170, %169 : vector<8x256xf32>
    %cst_93 = arith.constant 1.000000e+00 : f32
    %172 = vector.broadcast %cst_93 : f32 to vector<8x256xf32>
    %173 = arith.divf %172, %171 : vector<8x256xf32>
    %174 = vector.extract_strided_slice %173 {offsets = [0, 0], sizes = [8, 64], strides = [1, 1]} : vector<8x256xf32> to vector<8x64xf32>
    %175 = vector.extract_strided_slice %173 {offsets = [0, 64], sizes = [8, 64], strides = [1, 1]} : vector<8x256xf32> to vector<8x64xf32>
    %176 = vector.extract_strided_slice %173 {offsets = [0, 128], sizes = [8, 64], strides = [1, 1]} : vector<8x256xf32> to vector<8x64xf32>
    %177 = vector.extract_strided_slice %166 {offsets = [0, 192], sizes = [8, 64], strides = [1, 1]} : vector<8x256xf32> to vector<8x64xf32>
    %178 = math.tanh %177 : vector<8x64xf32>
    %c0_94 = arith.constant 0 : index
    %c0_95 = arith.constant 0 : index
    %179 = vector.load %arg5[%c0_94, %c0_95] : memref<8x64xf32, #tpu.memory_space<vmem>>, vector<8x64xf32>
    %180 = arith.mulf %175, %179 : vector<8x64xf32>
    %181 = arith.mulf %174, %178 : vector<8x64xf32>
    %182 = arith.addf %180, %181 : vector<8x64xf32>
    %183 = math.tanh %182 : vector<8x64xf32>
    %184 = arith.mulf %176, %183 : vector<8x64xf32>
    %c0_96 = arith.constant 0 : index
    %c0_97 = arith.constant 0 : index
    %185 = vector.load %arg5[%c0_96, %c0_97] : memref<8x64xf32, #tpu.memory_space<vmem>>, vector<8x64xf32>
    tpu.vector_store %arg5[%c0_96, %c0_97], %182 {strides = array<i32>} : memref<8x64xf32, #tpu.memory_space<vmem>>, vector<8x64xf32>,
    %c0_98 = arith.constant 0 : index
    %c0_99 = arith.constant 0 : index
    %186 = vector.load %arg4[%c0_98, %c0_99] : memref<8x64xf32, #tpu.memory_space<vmem>>, vector<8x64xf32>
    tpu.vector_store %arg4[%c0_98, %c0_99], %184 {strides = array<i32>} : memref<8x64xf32, #tpu.memory_space<vmem>>, vector<8x64xf32>,
    %187 = arith.index_cast %c5_i32 : i32 to index
    %c0_100 = arith.constant 0 : index
    %c0_101 = arith.constant 0 : index
    %188 = vector.load %arg3[%187, %c0_100, %c0_101] : memref<8x8x64xf32, #tpu.memory_space<vmem>>, vector<1x8x64xf32>
    %189 = vector.shape_cast %188 : vector<1x8x64xf32> to vector<8x64xf32>
    %190 = vector.shape_cast %184 : vector<8x64xf32> to vector<1x8x64xf32>
    tpu.vector_store %arg3[%187, %c0_100, %c0_101], %190 {strides = array<i32>} : memref<8x8x64xf32, #tpu.memory_space<vmem>>, vector<1x8x64xf32>,
    %c6_i32 = arith.constant 6 : i32
    %191 = arith.index_cast %c6_i32 : i32 to index
    %c0_102 = arith.constant 0 : index
    %c0_103 = arith.constant 0 : index
    %192 = vector.load %arg1[%191, %c0_102, %c0_103] : memref<8x8x256xf32, #tpu.memory_space<vmem>>, vector<1x8x256xf32>
    %193 = vector.shape_cast %192 : vector<1x8x256xf32> to vector<8x256xf32>
    %c0_104 = arith.constant 0 : index
    %c0_105 = arith.constant 0 : index
    %194 = vector.load %arg4[%c0_104, %c0_105] : memref<8x64xf32, #tpu.memory_space<vmem>>, vector<8x64xf32>
    %195 = arith.truncf %194 : vector<8x64xf32> to vector<8x64xbf16>
    %cst_106 = arith.constant dense<0.000000e+00> : vector<8x256xf32>
    %196 = tpu.matmul %195, %4, %cst_106 {dimension_numbers = #tpu.dot_dimension_numbers<[1], [0], [0], [1], [0, 0, 1, 1], [], []>} : vector<8x64xbf16>, vector<64x256xbf16>, vector<8x256xf32> -> vector<8x256xf32>
    %197 = arith.addf %193, %196 : vector<8x256xf32>
    %cst_107 = arith.constant 0.000000e+00 : f32
    %198 = vector.broadcast %cst_107 : f32 to vector<8x256xf32>
    %199 = arith.subf %198, %197 : vector<8x256xf32>
    %200 = math.exp %199 : vector<8x256xf32>
    %cst_108 = arith.constant 1.000000e+00 : f32
    %201 = vector.broadcast %cst_108 : f32 to vector<8x256xf32>
    %202 = arith.addf %201, %200 : vector<8x256xf32>
    %cst_109 = arith.constant 1.000000e+00 : f32
    %203 = vector.broadcast %cst_109 : f32 to vector<8x256xf32>
    %204 = arith.divf %203, %202 : vector<8x256xf32>
    %205 = vector.extract_strided_slice %204 {offsets = [0, 0], sizes = [8, 64], strides = [1, 1]} : vector<8x256xf32> to vector<8x64xf32>
    %206 = vector.extract_strided_slice %204 {offsets = [0, 64], sizes = [8, 64], strides = [1, 1]} : vector<8x256xf32> to vector<8x64xf32>
    %207 = vector.extract_strided_slice %204 {offsets = [0, 128], sizes = [8, 64], strides = [1, 1]} : vector<8x256xf32> to vector<8x64xf32>
    %208 = vector.extract_strided_slice %197 {offsets = [0, 192], sizes = [8, 64], strides = [1, 1]} : vector<8x256xf32> to vector<8x64xf32>
    %209 = math.tanh %208 : vector<8x64xf32>
    %c0_110 = arith.constant 0 : index
    %c0_111 = arith.constant 0 : index
    %210 = vector.load %arg5[%c0_110, %c0_111] : memref<8x64xf32, #tpu.memory_space<vmem>>, vector<8x64xf32>
    %211 = arith.mulf %206, %210 : vector<8x64xf32>
    %212 = arith.mulf %205, %209 : vector<8x64xf32>
    %213 = arith.addf %211, %212 : vector<8x64xf32>
    %214 = math.tanh %213 : vector<8x64xf32>
    %215 = arith.mulf %207, %214 : vector<8x64xf32>
    %c0_112 = arith.constant 0 : index
    %c0_113 = arith.constant 0 : index
    %216 = vector.load %arg5[%c0_112, %c0_113] : memref<8x64xf32, #tpu.memory_space<vmem>>, vector<8x64xf32>
    tpu.vector_store %arg5[%c0_112, %c0_113], %213 {strides = array<i32>} : memref<8x64xf32, #tpu.memory_space<vmem>>, vector<8x64xf32>,
    %c0_114 = arith.constant 0 : index
    %c0_115 = arith.constant 0 : index
    %217 = vector.load %arg4[%c0_114, %c0_115] : memref<8x64xf32, #tpu.memory_space<vmem>>, vector<8x64xf32>
    tpu.vector_store %arg4[%c0_114, %c0_115], %215 {strides = array<i32>} : memref<8x64xf32, #tpu.memory_space<vmem>>, vector<8x64xf32>,
    %218 = arith.index_cast %c6_i32 : i32 to index
    %c0_116 = arith.constant 0 : index
    %c0_117 = arith.constant 0 : index
    %219 = vector.load %arg3[%218, %c0_116, %c0_117] : memref<8x8x64xf32, #tpu.memory_space<vmem>>, vector<1x8x64xf32>
    %220 = vector.shape_cast %219 : vector<1x8x64xf32> to vector<8x64xf32>
    %221 = vector.shape_cast %215 : vector<8x64xf32> to vector<1x8x64xf32>
    tpu.vector_store %arg3[%218, %c0_116, %c0_117], %221 {strides = array<i32>} : memref<8x8x64xf32, #tpu.memory_space<vmem>>, vector<1x8x64xf32>,
    %c7_i32 = arith.constant 7 : i32
    %222 = arith.index_cast %c7_i32 : i32 to index
    %c0_118 = arith.constant 0 : index
    %c0_119 = arith.constant 0 : index
    %223 = vector.load %arg1[%222, %c0_118, %c0_119] : memref<8x8x256xf32, #tpu.memory_space<vmem>>, vector<1x8x256xf32>
    %224 = vector.shape_cast %223 : vector<1x8x256xf32> to vector<8x256xf32>
    %c0_120 = arith.constant 0 : index
    %c0_121 = arith.constant 0 : index
    %225 = vector.load %arg4[%c0_120, %c0_121] : memref<8x64xf32, #tpu.memory_space<vmem>>, vector<8x64xf32>
    %226 = arith.truncf %225 : vector<8x64xf32> to vector<8x64xbf16>
    %cst_122 = arith.constant dense<0.000000e+00> : vector<8x256xf32>
    %227 = tpu.matmul %226, %4, %cst_122 {dimension_numbers = #tpu.dot_dimension_numbers<[1], [0], [0], [1], [0, 0, 1, 1], [], []>} : vector<8x64xbf16>, vector<64x256xbf16>, vector<8x256xf32> -> vector<8x256xf32>
    %228 = arith.addf %224, %227 : vector<8x256xf32>
    %cst_123 = arith.constant 0.000000e+00 : f32
    %229 = vector.broadcast %cst_123 : f32 to vector<8x256xf32>
    %230 = arith.subf %229, %228 : vector<8x256xf32>
    %231 = math.exp %230 : vector<8x256xf32>
    %cst_124 = arith.constant 1.000000e+00 : f32
    %232 = vector.broadcast %cst_124 : f32 to vector<8x256xf32>
    %233 = arith.addf %232, %231 : vector<8x256xf32>
    %cst_125 = arith.constant 1.000000e+00 : f32
    %234 = vector.broadcast %cst_125 : f32 to vector<8x256xf32>
    %235 = arith.divf %234, %233 : vector<8x256xf32>
    %236 = vector.extract_strided_slice %235 {offsets = [0, 0], sizes = [8, 64], strides = [1, 1]} : vector<8x256xf32> to vector<8x64xf32>
    %237 = vector.extract_strided_slice %235 {offsets = [0, 64], sizes = [8, 64], strides = [1, 1]} : vector<8x256xf32> to vector<8x64xf32>
    %238 = vector.extract_strided_slice %235 {offsets = [0, 128], sizes = [8, 64], strides = [1, 1]} : vector<8x256xf32> to vector<8x64xf32>
    %239 = vector.extract_strided_slice %228 {offsets = [0, 192], sizes = [8, 64], strides = [1, 1]} : vector<8x256xf32> to vector<8x64xf32>
    %240 = math.tanh %239 : vector<8x64xf32>
    %c0_126 = arith.constant 0 : index
    %c0_127 = arith.constant 0 : index
    %241 = vector.load %arg5[%c0_126, %c0_127] : memref<8x64xf32, #tpu.memory_space<vmem>>, vector<8x64xf32>
    %242 = arith.mulf %237, %241 : vector<8x64xf32>
    %243 = arith.mulf %236, %240 : vector<8x64xf32>
    %244 = arith.addf %242, %243 : vector<8x64xf32>
    %245 = math.tanh %244 : vector<8x64xf32>
    %246 = arith.mulf %238, %245 : vector<8x64xf32>
    %c0_128 = arith.constant 0 : index
    %c0_129 = arith.constant 0 : index
    %247 = vector.load %arg5[%c0_128, %c0_129] : memref<8x64xf32, #tpu.memory_space<vmem>>, vector<8x64xf32>
    tpu.vector_store %arg5[%c0_128, %c0_129], %244 {strides = array<i32>} : memref<8x64xf32, #tpu.memory_space<vmem>>, vector<8x64xf32>,
    %c0_130 = arith.constant 0 : index
    %c0_131 = arith.constant 0 : index
    %248 = vector.load %arg4[%c0_130, %c0_131] : memref<8x64xf32, #tpu.memory_space<vmem>>, vector<8x64xf32>
    tpu.vector_store %arg4[%c0_130, %c0_131], %246 {strides = array<i32>} : memref<8x64xf32, #tpu.memory_space<vmem>>, vector<8x64xf32>,
    %249 = arith.index_cast %c7_i32 : i32 to index
    %c0_132 = arith.constant 0 : index
    %c0_133 = arith.constant 0 : index
    %250 = vector.load %arg3[%249, %c0_132, %c0_133] : memref<8x8x64xf32, #tpu.memory_space<vmem>>, vector<1x8x64xf32>
    %251 = vector.shape_cast %250 : vector<1x8x64xf32> to vector<8x64xf32>
    %252 = vector.shape_cast %246 : vector<8x64xf32> to vector<1x8x64xf32>
    tpu.vector_store %arg3[%249, %c0_132, %c0_133], %252 {strides = array<i32>} : memref<8x8x64xf32, #tpu.memory_space<vmem>>, vector<1x8x64xf32>,
    %c8_i32 = arith.constant 8 : i32
    return
  }
  func.func @transform_0(%arg0: i32) -> (i32, i32, i32) {
    %c0_i32 = arith.constant 0 : i32
    %c0_i32_0 = arith.constant 0 : i32
    %c0_i32_1 = arith.constant 0 : i32
    %c0_i32_2 = arith.constant 0 : i32
    return %c0_i32, %c0_i32_0, %c0_i32_1 : i32, i32, i32
  }
  func.func @transform_1(%arg0: i32) -> (i32, i32) {
    %c0_i32 = arith.constant 0 : i32
    %c0_i32_0 = arith.constant 0 : i32
    %c0_i32_1 = arith.constant 0 : i32
    return %c0_i32, %c0_i32_0 : i32, i32
  }
  func.func @transform_2(%arg0: i32) -> (i32, i32, i32) {
    %c0_i32 = arith.constant 0 : i32
    %c0_i32_0 = arith.constant 0 : i32
    %c0_i32_1 = arith.constant 0 : i32
    %c0_i32_2 = arith.constant 0 : i32
    return %c0_i32, %c0_i32_0, %c0_i32_1 : i32, i32, i32
  }
}

</mosaic_0001>

<bundles_post_ra>
// kernel: word_rep_forward.2
= control target key start
LH: loop header
LB: loop body
LE: loop exit
PB: predicated region body
PF: predicated region fallthrough
CT: control target
= control target key end

     0   :  { %vm12_vm0 = vcmask 523264   ;;  %v1412_v1 = vmov 0   ;;  %v1413_v2 = vmov 0.0   ;;  %s1414_s27 = smov 64   ;;  %s1810_s1 = inlined_call_operand.vmem [shape: bf16[64,256], index: 1, kind: input, shape index: {}]   ;;  %s1811_s0 = inlined_call_operand.vmem [shape: f32[12,8,256], index: 0, kind: input, shape index: {}]   ;;  %s1812_s2 = inlined_call_operand.vmem [shape: f32[12,8,64], index: 2, kind: output, shape index: {}]  }
   0x1   :  { %v1433_v0 = vld [vmem:[%s1810_s1 + $0x4] ss:$8 sps:$4 sm:$0xff]   ;;  %102 = vmatprep.mubr.bf16.mxu0 %v1412_v1  ;;  %13 = vst.msk [vmem:[#allocation2] sm:$0xff] %vm12_vm0, %v1413_v2  ;;  %14 = vst.msk [vmem:[#allocation3] sm:$0xff] %vm12_vm0, %v1413_v2  ;;  %195 = vmatprep.mubr.bf16.mxu1 %v1412_v1  ;;  %v1442_v3 = vld [vmem:[%s1810_s1] ss:$8 sps:$4 sm:$0xff]  }
   0x2   :  { %70 = vmatprep.subr.bf16.mxu0 %v1433_v0  ;;  %v1448_v4 = vld [vmem:[%s1810_s1 + $0x14] ss:$8 sps:$4 sm:$0xff]   ;;  %163 = vmatprep.subr.bf16.mxu1 %v1433_v0  ;;  %v1455_v5 = vld [vmem:[%s1810_s1 + $0x10] ss:$8 sps:$4 sm:$0xff]   ;;  %v1462_v6 = vld [vmem:[%s1810_s1 + $0x24] ss:$8 sps:$4 sm:$0xff]  }
   0x3   :  { %71 = vmatpush1.bf16.msra.mxu0 %v1442_v3  ;;  %164 = vmatpush1.bf16.msra.mxu1 %v1442_v3  ;;  %v1469_v7 = vld [vmem:[%s1810_s1 + $0x20] ss:$8 sps:$4 sm:$0xff]   ;;  %v1476_v8 = vld [vmem:[%s1810_s1 + $0x34] ss:$8 sps:$4 sm:$0xff]   ;;  %v1483_v9 = vld [vmem:[%s1810_s1 + $0x30] ss:$8 sps:$4 sm:$0xff]  }
   0x4   :  { %72 = vmatprep.subr.bf16.mxu0 %v1448_v4  ;;  %165 = vmatprep.subr.bf16.mxu1 %v1448_v4  ;;  %v24_v12 = vld [vmem:[%s1811_s0 + $0x8] sm:$0xff]  ;;  %v23_v20 = vld [vmem:[%s1811_s0] sm:$0xff]  ;;  %v1203_v45 = vld [vmem:[%s1811_s0 + $0x18] sm:$0xff] }
   0x5   :  { %v1202_v52 = vld [vmem:[%s1811_s0 + $0x10] sm:$0xff] }
   0x7   :  { %73 = vmatpush1.bf16.msra.mxu0 %v1455_v5  ;;  %166 = vmatpush1.bf16.msra.mxu1 %v1455_v5 }
   0x8   :  { %74 = vmatprep.subr.bf16.mxu0 %v1462_v6  ;;  %167 = vmatprep.subr.bf16.mxu1 %v1462_v6  ;;  %v25_v10 = vld [vmem:[#allocation2] sm:$0xff]  ;;  %v126_v19 = vld [vmem:[#allocation3] sm:$0xff] }
   0x9   :  { %v26_v11 = vpack.c.bf16 %v25_v10, %v25_v10 }
   0xb   :  { %75 = vmatpush1.bf16.msra.mxu0 %v1469_v7  ;;  %168 = vmatpush1.bf16.msra.mxu1 %v1469_v7 }
   0xc   :  { %76 = vmatprep.subr.bf16.mxu0 %v1476_v8  ;;  %169 = vmatprep.subr.bf16.mxu1 %v1476_v8 }
   0xf   :  { %77 = vmatpush1.bf16.msra.mxu0 %v1483_v9  ;;  %170 = vmatpush1.bf16.msra.mxu1 %v1483_v9 }
  0x10   :  { %257 = vmatprep.subr.bf16.mxu0 %v1433_v0  ;;  %351 = vmatprep.subr.bf16.mxu1 %v1433_v0 }
  0x12   :  { %1201 = vmatmul.mubr.msk.bf16.vlgmr.msra.gmra.mrb[0].mxu0 %vm12_vm0, %v26_v11 }
  0x13   :  { %258 = vmatpush1.bf16.msra.mxu0 %v1442_v3  ;;  %289 = vmatprep.mubr.bf16.mxu0 %v1412_v1 }
  0x14   :  { %259 = vmatprep.subr.bf16.mxu0 %v1448_v4 }
  0x17   :  { %260 = vmatpush1.bf16.msra.mxu0 %v1455_v5 }
  0x18   :  { %261 = vmatprep.subr.bf16.mxu0 %v1462_v6 }
  0x1b   :  { %262 = vmatpush1.bf16.msra.mxu0 %v1469_v7 }
  0x1c   :  { %263 = vmatprep.subr.bf16.mxu0 %v1476_v8 }
  0x1f   :  { %264 = vmatpush1.bf16.msra.mxu0 %v1483_v9 }
  0x20   :  { %445 = vmatprep.subr.bf16.mxu0 %v1433_v0 }
  0xe5   :  { %v104_v13 = vpop.f32.mrb[0].mxu0 }
  0xe6   :  { %v106_v14 = vpop.f32.mrb[1].mxu0  ;;  %v111_v21 = vadd.f32 %v104_v13, %v23_v20 }
  0xe7   :  { %v112_v15 = vadd.f32 %v106_v14, %v24_v12  ;;  %v108_v16 = vpop.f32.mrb[2].mxu0 }
  0xe8   :  { %v109_v17 = vpop.f32.mrb[3].mxu0  ;;  %v113_v22 = vsub.f32 0.0, %v111_v21 }
  0xe9   :  { %1261 = vtanh.f32 %v112_v15  ;;  %v114_v34 = vsub.f32 0.0, %v112_v15 }
  0xea   :  { %v115_v23 = vmul.f32 1.442695, %v113_v22  ;;  %v1207_v22 = vld [vmem:[%s1811_s0 + $0x28] sm:$0xff] }
  0xeb   :  { %v117_v35 = vmul.f32 1.442695, %v114_v34 }
  0xec   :  { %1263 = vpow2.f32 %v115_v23 }
  0xf3   :  { %v1262_v18 = vpop.eup %1261 }
  0xf4   :  { %133 = vrot.lane.b32.xlu0 %v1262_v18, %s1414_s27 }
  0xf6   :  { %v1264_v24 = vpop.eup %1263 }
  0xf7   :  { %v119_v25 = vadd.f32 1.0, %v1264_v24 }
  0xf8   :  { %128 = vrot.lane.b32.xlu0 %v126_v19, %s1414_s27 }
  0xf9   :  { %1265 = vrcp.f32 %v119_v25 }
 0x103   :  { %v1266_v26 = vpop.eup %1265 }
 0x166   :  { %v134_v27 = vpop.permute.xlu0 %133 }
 0x167   :  { %v136_v28 = vmul.f32 %v1266_v26, %v134_v27 }
 0x169   :  { %138 = vrot.lane.b32.xlu1 %v136_v28, %s1414_s27 }
 0x16a   :  { %v129_v29 = vpop.permute.xlu0 %128 }
 0x16b   :  { %v131_v30 = vmul.f32 %v1266_v26, %v129_v29  ;;  %v1206_v29 = vld [vmem:[%s1811_s0 + $0x20] sm:$0xff] }
 0x1db   :  { %v139_v31 = vpop.permute.xlu1 %138 }
 0x1dc   :  { %v141_v32 = vadd.f32 %v139_v31, %v131_v30 }
 0x1de   :  { %1267 = vtanh.f32 %v141_v32  ;;  %149 = vrot.lane.b32.xlu0 %v141_v32, %s1414_s27 }
 0x1df   :  { %1269 = vpow2.f32 %v117_v35 }
 0x1e8   :  { %v1268_v33 = vpop.eup %1267 }
 0x1e9   :  { %144 = vrot.lane.b32.xlu1 %v1268_v33, %s1414_s27  ;;  %v1270_v36 = vpop.eup %1269 }
 0x1ea   :  { %v120_v37 = vadd.f32 1.0, %v1270_v36 }
 0x1ec   :  { %1271 = vrcp.f32 %v120_v37 }
 0x1f6   :  { %v1272_v40 = vpop.eup %1271 }
 0x250   :  { %v150_v38 = vpop.permute.xlu0 %149 }
 0x251   :  { %152 = vst.msk [vmem:[#allocation3] sm:$0xff] %vm12_vm0, %v150_v38 }
 0x258   :  { %v219_v39 = vld [vmem:[#allocation3] sm:$0xff] }
 0x259   :  { %221 = vrot.lane.b32.xlu0 %v219_v39, %s1414_s27 }
 0x25b   :  { %v145_v41 = vpop.permute.xlu1 %144 }
 0x25c   :  { %v147_v42 = vmul.f32 %v1272_v40, %v145_v41 }
 0x25e   :  { %153 = vst.msk [vmem:[#allocation2] sm:$0xff] %vm12_vm0, %v147_v42  ;;  %154 = vst.msk [vmem:[%s1812_s2] sm:$0xff] %vm12_vm0, %v147_v42 }
 0x265   :  { %v158_v43 = vld [vmem:[#allocation2] sm:$0xff] }
 0x266   :  { %v159_v44 = vpack.c.bf16 %v158_v43, %v158_v43 }
 0x268   :  { %1204 = vmatmul.mubr.msk.bf16.vlgmr.msra.gmra.mrb[0].mxu1 %vm12_vm0, %v159_v44 }
 0x269   :  { %352 = vmatpush1.bf16.msra.mxu1 %v1442_v3  ;;  %383 = vmatprep.mubr.bf16.mxu1 %v1412_v1 }
 0x26a   :  { %353 = vmatprep.subr.bf16.mxu1 %v1448_v4 }
 0x26d   :  { %354 = vmatpush1.bf16.msra.mxu1 %v1455_v5 }
 0x26e   :  { %355 = vmatprep.subr.bf16.mxu1 %v1462_v6 }
 0x271   :  { %356 = vmatpush1.bf16.msra.mxu1 %v1469_v7 }
 0x272   :  { %357 = vmatprep.subr.bf16.mxu1 %v1476_v8 }
 0x275   :  { %358 = vmatpush1.bf16.msra.mxu1 %v1483_v9 }
 0x276   :  { %539 = vmatprep.subr.bf16.mxu1 %v1433_v0 }
 0x2cb   :  { %v222_v61 = vpop.permute.xlu0 %221 }
 0x33b   :  { %v197_v46 = vpop.f32.mrb[0].mxu1 }
 0x33c   :  { %v199_v47 = vpop.f32.mrb[1].mxu1  ;;  %v204_v53 = vadd.f32 %v1202_v52, %v197_v46 }
 0x33d   :  { %v205_v48 = vadd.f32 %v1203_v45, %v199_v47  ;;  %v201_v49 = vpop.f32.mrb[2].mxu1 }
 0x33e   :  { %v202_v50 = vpop.f32.mrb[3].mxu1  ;;  %v206_v54 = vsub.f32 0.0, %v204_v53 }
 0x33f   :  { %1273 = vtanh.f32 %v205_v48  ;;  %v207_v11 = vsub.f32 0.0, %v205_v48 }
 0x340   :  { %v208_v55 = vmul.f32 1.442695, %v206_v54  ;;  %v1211_v54 = vld [vmem:[%s1811_s0 + $0x38] sm:$0xff] }
 0x341   :  { %v210_v12 = vmul.f32 1.442695, %v207_v11 }
 0x342   :  { %1275 = vpow2.f32 %v208_v55 }
 0x349   :  { %v1274_v51 = vpop.eup %1273 }
 0x34a   :  { %226 = vrot.lane.b32.xlu1 %v1274_v51, %s1414_s27 }
 0x34c   :  { %v1276_v56 = vpop.eup %1275 }
 0x34d   :  { %v212_v57 = vadd.f32 1.0, %v1276_v56 }
 0x34f   :  { %1277 = vrcp.f32 %v212_v57 }
 0x359   :  { %v1278_v58 = vpop.eup %1277 }
 0x35a   :  { %v224_v62 = vmul.f32 %v1278_v58, %v222_v61  ;;  %v1210_v61 = vld [vmem:[%s1811_s0 + $0x30] sm:$0xff] }
 0x3bc   :  { %v227_v59 = vpop.permute.xlu1 %226 }
 0x3bd   :  { %v229_v60 = vmul.f32 %v1278_v58, %v227_v59 }
 0x3bf   :  { %231 = vrot.lane.b32.xlu1 %v229_v60, %s1414_s27 }
 0x431   :  { %v232_v63 = vpop.permute.xlu1 %231 }
 0x432   :  { %v234_v2 = vadd.f32 %v232_v63, %v224_v62 }
 0x434   :  { %1279 = vtanh.f32 %v234_v2  ;;  %242 = vrot.lane.b32.xlu1 %v234_v2, %s1414_s27 }
 0x435   :  { %1281 = vpow2.f32 %v210_v12 }
 0x43e   :  { %v1280_v10 = vpop.eup %1279 }
 0x43f   :  { %237 = vrot.lane.b32.xlu0 %v1280_v10, %s1414_s27  ;;  %v1282_v13 = vpop.eup %1281 }
 0x440   :  { %v213_v14 = vadd.f32 1.0, %v1282_v13 }
 0x442   :  { %1283 = vrcp.f32 %v213_v14 }
 0x44c   :  { %v1284_v17 = vpop.eup %1283 }
 0x4a6   :  { %v243_v15 = vpop.permute.xlu1 %242 }
 0x4a7   :  { %245 = vst.msk [vmem:[#allocation3] sm:$0xff] %vm12_vm0, %v243_v15 }
 0x4ae   :  { %v313_v16 = vld [vmem:[#allocation3] sm:$0xff] }
 0x4af   :  { %315 = vrot.lane.b32.xlu1 %v313_v16, %s1414_s27 }
 0x4b1   :  { %v238_v18 = vpop.permute.xlu0 %237 }
 0x4b2   :  { %v240_v19 = vmul.f32 %v1284_v17, %v238_v18 }
 0x4b4   :  { %246 = vst.msk [vmem:[#allocation2] sm:$0xff] %vm12_vm0, %v240_v19  ;;  %1205 = vst.msk [vmem:[%s1812_s2 + $0x8] sm:$0xff] %vm12_vm0, %v240_v19 }
 0x4bb   :  { %v252_v20 = vld [vmem:[#allocation2] sm:$0xff] }
 0x4bc   :  { %v253_v21 = vpack.c.bf16 %v252_v20, %v252_v20 }
 0x4be   :  { %1208 = vmatmul.mubr.msk.bf16.vlgmr.msra.gmra.mrb[4].mxu0 %vm12_vm0, %v253_v21 }
 0x4bf   :  { %446 = vmatpush1.bf16.msra.mxu0 %v1442_v3  ;;  %477 = vmatprep.mubr.bf16.mxu0 %v1412_v1 }
 0x4c0   :  { %447 = vmatprep.subr.bf16.mxu0 %v1448_v4 }
 0x4c3   :  { %448 = vmatpush1.bf16.msra.mxu0 %v1455_v5 }
 0x4c4   :  { %449 = vmatprep.subr.bf16.mxu0 %v1462_v6 }
 0x4c7   :  { %450 = vmatpush1.bf16.msra.mxu0 %v1469_v7 }
 0x4c8   :  { %451 = vmatprep.subr.bf16.mxu0 %v1476_v8 }
 0x4cb   :  { %452 = vmatpush1.bf16.msra.mxu0 %v1483_v9 }
 0x4cc   :  { %633 = vmatprep.subr.bf16.mxu0 %v1433_v0 }
 0x521   :  { %v316_v38 = vpop.permute.xlu1 %315 }
 0x591   :  { %v291_v23 = vpop.f32.mrb[4].mxu0 }
 0x592   :  { %v293_v24 = vpop.f32.mrb[5].mxu0  ;;  %v298_v30 = vadd.f32 %v1206_v29, %v291_v23 }
 0x593   :  { %v299_v25 = vadd.f32 %v1207_v22, %v293_v24  ;;  %v295_v26 = vpop.f32.mrb[6].mxu0 }
 0x594   :  { %v296_v27 = vpop.f32.mrb[7].mxu0  ;;  %v300_v31 = vsub.f32 0.0, %v298_v30 }
 0x595   :  { %1285 = vtanh.f32 %v299_v25  ;;  %v301_v43 = vsub.f32 0.0, %v299_v25 }
 0x596   :  { %v302_v32 = vmul.f32 1.442695, %v300_v31  ;;  %v1215_v31 = vld [vmem:[%s1811_s0 + $0x48] sm:$0xff] }
 0x597   :  { %v304_v44 = vmul.f32 1.442695, %v301_v43 }
 0x598   :  { %1287 = vpow2.f32 %v302_v32 }
 0x59f   :  { %v1286_v28 = vpop.eup %1285 }
 0x5a0   :  { %320 = vrot.lane.b32.xlu0 %v1286_v28, %s1414_s27 }
 0x5a2   :  { %v1288_v33 = vpop.eup %1287 }
 0x5a3   :  { %v306_v34 = vadd.f32 1.0, %v1288_v33 }
 0x5a5   :  { %1289 = vrcp.f32 %v306_v34 }
 0x5af   :  { %v1290_v35 = vpop.eup %1289 }
 0x5b0   :  { %v318_v39 = vmul.f32 %v1290_v35, %v316_v38  ;;  %v1214_v38 = vld [vmem:[%s1811_s0 + $0x40] sm:$0xff] }
 0x612   :  { %v321_v36 = vpop.permute.xlu0 %320 }
 0x613   :  { %v323_v37 = vmul.f32 %v1290_v35, %v321_v36 }
 0x615   :  { %325 = vrot.lane.b32.xlu0 %v323_v37, %s1414_s27 }
 0x687   :  { %v326_v40 = vpop.permute.xlu0 %325 }
 0x688   :  { %v328_v41 = vadd.f32 %v326_v40, %v318_v39 }
 0x68a   :  { %1291 = vtanh.f32 %v328_v41  ;;  %336 = vrot.lane.b32.xlu0 %v328_v41, %s1414_s27 }
 0x68b   :  { %1293 = vpow2.f32 %v304_v44 }
 0x694   :  { %v1292_v42 = vpop.eup %1291 }
 0x695   :  { %331 = vrot.lane.b32.xlu1 %v1292_v42, %s1414_s27  ;;  %v1294_v45 = vpop.eup %1293 }
 0x696   :  { %v307_v46 = vadd.f32 1.0, %v1294_v45 }
 0x698   :  { %1295 = vrcp.f32 %v307_v46 }
 0x6a2   :  { %v1296_v49 = vpop.eup %1295 }
 0x6fc   :  { %v337_v47 = vpop.permute.xlu0 %336 }
 0x6fd   :  { %339 = vst.msk [vmem:[#allocation3] sm:$0xff] %vm12_vm0, %v337_v47 }
 0x704   :  { %v407_v48 = vld [vmem:[#allocation3] sm:$0xff] }
 0x705   :  { %409 = vrot.lane.b32.xlu0 %v407_v48, %s1414_s27 }
 0x707   :  { %v332_v50 = vpop.permute.xlu1 %331 }
 0x708   :  { %v334_v51 = vmul.f32 %v1296_v49, %v332_v50 }
 0x70a   :  { %340 = vst.msk [vmem:[#allocation2] sm:$0xff] %vm12_vm0, %v334_v51  ;;  %1209 = vst.msk [vmem:[%s1812_s2 + $0x10] sm:$0xff] %vm12_vm0, %v334_v51 }
 0x711   :  { %v346_v52 = vld [vmem:[#allocation2] sm:$0xff] }
 0x712   :  { %v347_v53 = vpack.c.bf16 %v346_v52, %v346_v52 }
 0x714   :  { %1212 = vmatmul.mubr.msk.bf16.vlgmr.msra.gmra.mrb[4].mxu1 %vm12_vm0, %v347_v53 }
 0x715   :  { %540 = vmatpush1.bf16.msra.mxu1 %v1442_v3  ;;  %571 = vmatprep.mubr.bf16.mxu1 %v1412_v1 }
 0x716   :  { %541 = vmatprep.subr.bf16.mxu1 %v1448_v4 }
 0x719   :  { %542 = vmatpush1.bf16.msra.mxu1 %v1455_v5 }
 0x71a   :  { %543 = vmatprep.subr.bf16.mxu1 %v1462_v6 }
 0x71d   :  { %544 = vmatpush1.bf16.msra.mxu1 %v1469_v7 }
 0x71e   :  { %545 = vmatprep.subr.bf16.mxu1 %v1476_v8 }
 0x721   :  { %546 = vmatpush1.bf16.msra.mxu1 %v1483_v9 }
 0x722   :  { %727 = vmatprep.subr.bf16.mxu1 %v1433_v0 }
 0x777   :  { %v410_v15 = vpop.permute.xlu0 %409 }
 0x7e7   :  { %v385_v55 = vpop.f32.mrb[4].mxu1 }
 0x7e8   :  { %v387_v56 = vpop.f32.mrb[5].mxu1  ;;  %v392_v62 = vadd.f32 %v1210_v61, %v385_v55 }
 0x7e9   :  { %v393_v57 = vadd.f32 %v1211_v54, %v387_v56  ;;  %v389_v58 = vpop.f32.mrb[6].mxu1 }
 0x7ea   :  { %v390_v59 = vpop.f32.mrb[7].mxu1  ;;  %v394_v63 = vsub.f32 0.0, %v392_v62 }
 0x7eb   :  { %1297 = vtanh.f32 %v393_v57  ;;  %v395_v20 = vsub.f32 0.0, %v393_v57 }
 0x7ec   :  { %v396_v2 = vmul.f32 1.442695, %v394_v63  ;;  %v1219_v63 = vld [vmem:[%s1811_s0 + $0x58] sm:$0xff] }
 0x7ed   :  { %v398_v21 = vmul.f32 1.442695, %v395_v20 }
 0x7ee   :  { %1299 = vpow2.f32 %v396_v2 }
 0x7f5   :  { %v1298_v60 = vpop.eup %1297 }
 0x7f6   :  { %414 = vrot.lane.b32.xlu1 %v1298_v60, %s1414_s27 }
 0x7f8   :  { %v1300_v10 = vpop.eup %1299 }
 0x7f9   :  { %v400_v11 = vadd.f32 1.0, %v1300_v10 }
 0x7fb   :  { %1301 = vrcp.f32 %v400_v11 }
 0x805   :  { %v1302_v12 = vpop.eup %1301 }
 0x806   :  { %v412_v16 = vmul.f32 %v1302_v12, %v410_v15  ;;  %v1218_v15 = vld [vmem:[%s1811_s0 + $0x50] sm:$0xff] }
 0x868   :  { %v415_v13 = vpop.permute.xlu1 %414 }
 0x869   :  { %v417_v14 = vmul.f32 %v1302_v12, %v415_v13 }
 0x86b   :  { %419 = vrot.lane.b32.xlu1 %v417_v14, %s1414_s27 }
 0x8dd   :  { %v420_v17 = vpop.permute.xlu1 %419 }
 0x8de   :  { %v422_v18 = vadd.f32 %v420_v17, %v412_v16 }
 0x8e0   :  { %1303 = vtanh.f32 %v422_v18  ;;  %430 = vrot.lane.b32.xlu1 %v422_v18, %s1414_s27 }
 0x8e1   :  { %1305 = vpow2.f32 %v398_v21 }
 0x8ea   :  { %v1304_v19 = vpop.eup %1303 }
 0x8eb   :  { %425 = vrot.lane.b32.xlu0 %v1304_v19, %s1414_s27  ;;  %v1306_v22 = vpop.eup %1305 }
 0x8ec   :  { %v401_v23 = vadd.f32 1.0, %v1306_v22 }
 0x8ee   :  { %1307 = vrcp.f32 %v401_v23 }
 0x8f8   :  { %v1308_v26 = vpop.eup %1307 }
 0x952   :  { %v431_v24 = vpop.permute.xlu1 %430 }
 0x953   :  { %433 = vst.msk [vmem:[#allocation3] sm:$0xff] %vm12_vm0, %v431_v24 }
 0x95a   :  { %v501_v25 = vld [vmem:[#allocation3] sm:$0xff] }
 0x95b   :  { %503 = vrot.lane.b32.xlu1 %v501_v25, %s1414_s27 }
 0x95d   :  { %v426_v27 = vpop.permute.xlu0 %425 }
 0x95e   :  { %v428_v28 = vmul.f32 %v1308_v26, %v426_v27 }
 0x960   :  { %434 = vst.msk [vmem:[#allocation2] sm:$0xff] %vm12_vm0, %v428_v28  ;;  %1213 = vst.msk [vmem:[%s1812_s2 + $0x18] sm:$0xff] %vm12_vm0, %v428_v28 }
 0x967   :  { %v440_v29 = vld [vmem:[#allocation2] sm:$0xff] }
 0x968   :  { %v441_v30 = vpack.c.bf16 %v440_v29, %v440_v29 }
 0x96a   :  { %1216 = vmatmul.mubr.msk.bf16.vlgmr.msra.gmra.mrb[8].mxu0 %vm12_vm0, %v441_v30 }
 0x96b   :  { %634 = vmatpush1.bf16.msra.mxu0 %v1442_v3  ;;  %665 = vmatprep.mubr.bf16.mxu0 %v1412_v1 }
 0x96c   :  { %635 = vmatprep.subr.bf16.mxu0 %v1448_v4 }
 0x96f   :  { %636 = vmatpush1.bf16.msra.mxu0 %v1455_v5 }
 0x970   :  { %637 = vmatprep.subr.bf16.mxu0 %v1462_v6 }
 0x973   :  { %638 = vmatpush1.bf16.msra.mxu0 %v1469_v7 }
 0x974   :  { %639 = vmatprep.subr.bf16.mxu0 %v1476_v8 }
 0x977   :  { %640 = vmatpush1.bf16.msra.mxu0 %v1483_v9 }
 0x978   :  { %821 = vmatprep.subr.bf16.mxu0 %v1433_v0 }
 0x9cd   :  { %v504_v47 = vpop.permute.xlu1 %503 }
 0xa3d   :  { %v479_v32 = vpop.f32.mrb[8].mxu0 }
 0xa3e   :  { %v481_v33 = vpop.f32.mrb[9].mxu0  ;;  %v486_v39 = vadd.f32 %v1214_v38, %v479_v32 }
 0xa3f   :  { %v487_v34 = vadd.f32 %v1215_v31, %v481_v33  ;;  %v483_v35 = vpop.f32.mrb[10].mxu0 }
 0xa40   :  { %v484_v36 = vpop.f32.mrb[11].mxu0  ;;  %v488_v40 = vsub.f32 0.0, %v486_v39 }
 0xa41   :  { %1309 = vtanh.f32 %v487_v34  ;;  %v489_v52 = vsub.f32 0.0, %v487_v34 }
 0xa42   :  { %v490_v41 = vmul.f32 1.442695, %v488_v40  ;;  %v1223_v40 = vld [vmem:[%s1811_s0 + $0x68] sm:$0xff] }
 0xa43   :  { %v492_v53 = vmul.f32 1.442695, %v489_v52 }
 0xa44   :  { %1311 = vpow2.f32 %v490_v41 }
 0xa4b   :  { %v1310_v37 = vpop.eup %1309 }
 0xa4c   :  { %508 = vrot.lane.b32.xlu0 %v1310_v37, %s1414_s27 }
 0xa4e   :  { %v1312_v42 = vpop.eup %1311 }
 0xa4f   :  { %v494_v43 = vadd.f32 1.0, %v1312_v42 }
 0xa51   :  { %1313 = vrcp.f32 %v494_v43 }
 0xa5b   :  { %v1314_v44 = vpop.eup %1313 }
 0xa5c   :  { %v506_v48 = vmul.f32 %v1314_v44, %v504_v47  ;;  %v1222_v47 = vld [vmem:[%s1811_s0 + $0x60] sm:$0xff] }
 0xabe   :  { %v509_v45 = vpop.permute.xlu0 %508 }
 0xabf   :  { %v511_v46 = vmul.f32 %v1314_v44, %v509_v45 }
 0xac1   :  { %513 = vrot.lane.b32.xlu0 %v511_v46, %s1414_s27 }
 0xb33   :  { %v514_v49 = vpop.permute.xlu0 %513 }
 0xb34   :  { %v516_v50 = vadd.f32 %v514_v49, %v506_v48 }
 0xb36   :  { %1315 = vtanh.f32 %v516_v50  ;;  %524 = vrot.lane.b32.xlu0 %v516_v50, %s1414_s27 }
 0xb37   :  { %1317 = vpow2.f32 %v492_v53 }
 0xb40   :  { %v1316_v51 = vpop.eup %1315 }
 0xb41   :  { %519 = vrot.lane.b32.xlu1 %v1316_v51, %s1414_s27  ;;  %v1318_v54 = vpop.eup %1317 }
 0xb42   :  { %v495_v55 = vadd.f32 1.0, %v1318_v54 }
 0xb44   :  { %1319 = vrcp.f32 %v495_v55 }
 0xb4e   :  { %v1320_v58 = vpop.eup %1319 }
 0xba8   :  { %v525_v56 = vpop.permute.xlu0 %524 }
 0xba9   :  { %527 = vst.msk [vmem:[#allocation3] sm:$0xff] %vm12_vm0, %v525_v56 }
 0xbb0   :  { %v595_v57 = vld [vmem:[#allocation3] sm:$0xff] }
 0xbb1   :  { %597 = vrot.lane.b32.xlu0 %v595_v57, %s1414_s27 }
 0xbb3   :  { %v520_v59 = vpop.permute.xlu1 %519 }
 0xbb4   :  { %v522_v60 = vmul.f32 %v1320_v58, %v520_v59 }
 0xbb6   :  { %528 = vst.msk [vmem:[#allocation2] sm:$0xff] %vm12_vm0, %v522_v60  ;;  %1217 = vst.msk [vmem:[%s1812_s2 + $0x20] sm:$0xff] %vm12_vm0, %v522_v60 }
 0xbbd   :  { %v534_v61 = vld [vmem:[#allocation2] sm:$0xff] }
 0xbbe   :  { %v535_v62 = vpack.c.bf16 %v534_v61, %v534_v61 }
 0xbc0   :  { %1220 = vmatmul.mubr.msk.bf16.vlgmr.msra.gmra.mrb[8].mxu1 %vm12_vm0, %v535_v62 }
 0xbc1   :  { %728 = vmatpush1.bf16.msra.mxu1 %v1442_v3  ;;  %759 = vmatprep.mubr.bf16.mxu1 %v1412_v1 }
 0xbc2   :  { %729 = vmatprep.subr.bf16.mxu1 %v1448_v4 }
 0xbc5   :  { %730 = vmatpush1.bf16.msra.mxu1 %v1455_v5 }
 0xbc6   :  { %731 = vmatprep.subr.bf16.mxu1 %v1462_v6 }
 0xbc9   :  { %732 = vmatpush1.bf16.msra.mxu1 %v1469_v7 }
 0xbca   :  { %733 = vmatprep.subr.bf16.mxu1 %v1476_v8 }
 0xbcd   :  { %734 = vmatpush1.bf16.msra.mxu1 %v1483_v9 }
 0xbce   :  { %915 = vmatprep.subr.bf16.mxu1 %v1433_v0 }
 0xc23   :  { %v598_v24 = vpop.permute.xlu0 %597 }
 0xc93   :  { %v573_v2 = vpop.f32.mrb[8].mxu1 }
 0xc94   :  { %v575_v10 = vpop.f32.mrb[9].mxu1  ;;  %v580_v16 = vadd.f32 %v1218_v15, %v573_v2 }
 0xc95   :  { %v581_v11 = vadd.f32 %v1219_v63, %v575_v10  ;;  %v577_v12 = vpop.f32.mrb[10].mxu1 }
 0xc96   :  { %v578_v13 = vpop.f32.mrb[11].mxu1  ;;  %v582_v17 = vsub.f32 0.0, %v580_v16 }
 0xc97   :  { %1321 = vtanh.f32 %v581_v11  ;;  %v583_v29 = vsub.f32 0.0, %v581_v11 }
 0xc98   :  { %v584_v18 = vmul.f32 1.442695, %v582_v17  ;;  %v1227_v17 = vld [vmem:[%s1811_s0 + $0x78] sm:$0xff] }
 0xc99   :  { %v586_v30 = vmul.f32 1.442695, %v583_v29 }
 0xc9a   :  { %1323 = vpow2.f32 %v584_v18 }
 0xca1   :  { %v1322_v14 = vpop.eup %1321 }
 0xca2   :  { %602 = vrot.lane.b32.xlu1 %v1322_v14, %s1414_s27 }
 0xca4   :  { %v1324_v19 = vpop.eup %1323 }
 0xca5   :  { %v588_v20 = vadd.f32 1.0, %v1324_v19 }
 0xca7   :  { %1325 = vrcp.f32 %v588_v20 }
 0xcb1   :  { %v1326_v21 = vpop.eup %1325 }
 0xcb2   :  { %v600_v25 = vmul.f32 %v1326_v21, %v598_v24  ;;  %v1226_v24 = vld [vmem:[%s1811_s0 + $0x70] sm:$0xff] }
 0xd14   :  { %v603_v22 = vpop.permute.xlu1 %602 }
 0xd15   :  { %v605_v23 = vmul.f32 %v1326_v21, %v603_v22 }
 0xd17   :  { %607 = vrot.lane.b32.xlu1 %v605_v23, %s1414_s27 }
 0xd89   :  { %v608_v26 = vpop.permute.xlu1 %607 }
 0xd8a   :  { %v610_v27 = vadd.f32 %v608_v26, %v600_v25 }
 0xd8c   :  { %1327 = vtanh.f32 %v610_v27  ;;  %618 = vrot.lane.b32.xlu1 %v610_v27, %s1414_s27 }
 0xd8d   :  { %1329 = vpow2.f32 %v586_v30 }
 0xd96   :  { %v1328_v28 = vpop.eup %1327 }
 0xd97   :  { %613 = vrot.lane.b32.xlu0 %v1328_v28, %s1414_s27  ;;  %v1330_v31 = vpop.eup %1329 }
 0xd98   :  { %v589_v32 = vadd.f32 1.0, %v1330_v31 }
 0xd9a   :  { %1331 = vrcp.f32 %v589_v32 }
 0xda4   :  { %v1332_v35 = vpop.eup %1331 }
 0xdfe   :  { %v619_v33 = vpop.permute.xlu1 %618 }
 0xdff   :  { %621 = vst.msk [vmem:[#allocation3] sm:$0xff] %vm12_vm0, %v619_v33 }
 0xe06   :  { %v689_v34 = vld [vmem:[#allocation3] sm:$0xff] }
 0xe07   :  { %691 = vrot.lane.b32.xlu1 %v689_v34, %s1414_s27 }
 0xe09   :  { %v614_v36 = vpop.permute.xlu0 %613 }
 0xe0a   :  { %v616_v37 = vmul.f32 %v1332_v35, %v614_v36 }
 0xe0c   :  { %622 = vst.msk [vmem:[#allocation2] sm:$0xff] %vm12_vm0, %v616_v37  ;;  %1221 = vst.msk [vmem:[%s1812_s2 + $0x28] sm:$0xff] %vm12_vm0, %v616_v37 }
 0xe13   :  { %v628_v38 = vld [vmem:[#allocation2] sm:$0xff] }
 0xe14   :  { %v629_v39 = vpack.c.bf16 %v628_v38, %v628_v38 }
 0xe16   :  { %1224 = vmatmul.mubr.msk.bf16.vlgmr.msra.gmra.mrb[12].mxu0 %vm12_vm0, %v629_v39 }
 0xe17   :  { %822 = vmatpush1.bf16.msra.mxu0 %v1442_v3  ;;  %853 = vmatprep.mubr.bf16.mxu0 %v1412_v1 }
 0xe18   :  { %823 = vmatprep.subr.bf16.mxu0 %v1448_v4 }
 0xe1b   :  { %824 = vmatpush1.bf16.msra.mxu0 %v1455_v5 }
 0xe1c   :  { %825 = vmatprep.subr.bf16.mxu0 %v1462_v6 }
 0xe1f   :  { %826 = vmatpush1.bf16.msra.mxu0 %v1469_v7 }
 0xe20   :  { %827 = vmatprep.subr.bf16.mxu0 %v1476_v8 }
 0xe23   :  { %828 = vmatpush1.bf16.msra.mxu0 %v1483_v9 }
 0xe24   :  { %1009 = vmatprep.subr.bf16.mxu0 %v1433_v0 }
 0xe79   :  { %v692_v56 = vpop.permute.xlu1 %691 }
 0xee9   :  { %v667_v41 = vpop.f32.mrb[12].mxu0 }
 0xeea   :  { %v669_v42 = vpop.f32.mrb[13].mxu0  ;;  %v674_v48 = vadd.f32 %v1222_v47, %v667_v41 }
 0xeeb   :  { %v675_v43 = vadd.f32 %v1223_v40, %v669_v42  ;;  %v671_v44 = vpop.f32.mrb[14].mxu0 }
 0xeec   :  { %v672_v45 = vpop.f32.mrb[15].mxu0  ;;  %v676_v49 = vsub.f32 0.0, %v674_v48  ;;  %v1231_v48 = vld [vmem:[%s1811_s0 + $0x88] sm:$0xff] }
 0xeed   :  { %1333 = vtanh.f32 %v675_v43  ;;  %v677_v61 = vsub.f32 0.0, %v675_v43 }
 0xeee   :  { %v678_v50 = vmul.f32 1.442695, %v676_v49 }
 0xeef   :  { %v680_v62 = vmul.f32 1.442695, %v677_v61 }
 0xef0   :  { %1335 = vpow2.f32 %v678_v50 }
 0xef7   :  { %v1334_v46 = vpop.eup %1333 }
 0xef8   :  { %696 = vrot.lane.b32.xlu0 %v1334_v46, %s1414_s27 }
 0xefa   :  { %v1336_v51 = vpop.eup %1335 }
 0xefb   :  { %v682_v52 = vadd.f32 1.0, %v1336_v51 }
 0xefd   :  { %1337 = vrcp.f32 %v682_v52 }
 0xf07   :  { %v1338_v53 = vpop.eup %1337 }
 0xf08   :  { %v694_v57 = vmul.f32 %v1338_v53, %v692_v56 }
 0xf6a   :  { %v697_v54 = vpop.permute.xlu0 %696 }
 0xf6b   :  { %v699_v55 = vmul.f32 %v1338_v53, %v697_v54 }
 0xf6d   :  { %701 = vrot.lane.b32.xlu0 %v699_v55, %s1414_s27 }
 0xfdf   :  { %v702_v58 = vpop.permute.xlu0 %701 }
 0xfe0   :  { %v704_v59 = vadd.f32 %v702_v58, %v694_v57 }
 0xfe2   :  { %1339 = vtanh.f32 %v704_v59  ;;  %712 = vrot.lane.b32.xlu0 %v704_v59, %s1414_s27 }
 0xfe3   :  { %1341 = vpow2.f32 %v680_v62 }
 0xfec   :  { %v1340_v60 = vpop.eup %1339 }
 0xfed   :  { %707 = vrot.lane.b32.xlu1 %v1340_v60, %s1414_s27  ;;  %v1342_v63 = vpop.eup %1341 }
 0xfee   :  { %v683_v2 = vadd.f32 1.0, %v1342_v63 }
 0xff0   :  { %1343 = vrcp.f32 %v683_v2 }
 0xffa   :  { %v1344_v12 = vpop.eup %1343 }
0x1054   :  { %v713_v10 = vpop.permute.xlu0 %712 }
0x1055   :  { %715 = vst.msk [vmem:[#allocation3] sm:$0xff] %vm12_vm0, %v713_v10 }
0x105c   :  { %v783_v11 = vld [vmem:[#allocation3] sm:$0xff] }
0x105d   :  { %785 = vrot.lane.b32.xlu0 %v783_v11, %s1414_s27 }
0x105f   :  { %v708_v13 = vpop.permute.xlu1 %707 }
0x1060   :  { %v710_v14 = vmul.f32 %v1344_v12, %v708_v13 }
0x1062   :  { %716 = vst.msk [vmem:[#allocation2] sm:$0xff] %vm12_vm0, %v710_v14  ;;  %1225 = vst.msk [vmem:[%s1812_s2 + $0x30] sm:$0xff] %vm12_vm0, %v710_v14 }
0x1069   :  { %v722_v15 = vld [vmem:[#allocation2] sm:$0xff] }
0x106a   :  { %v723_v16 = vpack.c.bf16 %v722_v15, %v722_v15 }
0x106c   :  { %1228 = vmatmul.mubr.msk.bf16.vlgmr.msra.gmra.mrb[12].mxu1 %vm12_vm0, %v723_v16 }
0x106d   :  { %916 = vmatpush1.bf16.msra.mxu1 %v1442_v3  ;;  %947 = vmatprep.mubr.bf16.mxu1 %v1412_v1 }
0x106e   :  { %917 = vmatprep.subr.bf16.mxu1 %v1448_v4 }
0x1071   :  { %918 = vmatpush1.bf16.msra.mxu1 %v1455_v5 }
0x1072   :  { %919 = vmatprep.subr.bf16.mxu1 %v1462_v6 }
0x1075   :  { %920 = vmatpush1.bf16.msra.mxu1 %v1469_v7 }
0x1076   :  { %921 = vmatprep.subr.bf16.mxu1 %v1476_v8 }
0x1079   :  { %922 = vmatpush1.bf16.msra.mxu1 %v1483_v9 }
0x107a   :  { %1103 = vmatprep.subr.bf16.mxu1 %v1433_v0 }
0x10cf   :  { %v786_v32 = vpop.permute.xlu0 %785 }
0x113f   :  { %v761_v18 = vpop.f32.mrb[12].mxu1 }
0x1140   :  { %v763_v19 = vpop.f32.mrb[13].mxu1  ;;  %v768_v25 = vadd.f32 %v1226_v24, %v761_v18  ;;  %v1405_v18 = vld [vmem:[%s1810_s1] ss:$8 sps:$4 sm:$0xff]   ;;  %v1235_v24 = vld [vmem:[%s1811_s0 + $0x98] sm:$0xff] }
0x1141   :  { %v769_v20 = vadd.f32 %v1227_v17, %v763_v19  ;;  %v765_v21 = vpop.f32.mrb[14].mxu1  ;;  %v1406_v19 = vld [vmem:[%s1810_s1 + $0x14] ss:$8 sps:$4 sm:$0xff]  }
0x1142   :  { %v766_v22 = vpop.f32.mrb[15].mxu1  ;;  %v770_v26 = vsub.f32 0.0, %v768_v25  ;;  %v1408_v21 = vld [vmem:[%s1810_s1 + $0x24] ss:$8 sps:$4 sm:$0xff]  }
0x1143   :  { %1345 = vtanh.f32 %v769_v20  ;;  %v771_v37 = vsub.f32 0.0, %v769_v20  ;;  %v1407_v20 = vld [vmem:[%s1810_s1 + $0x10] ss:$8 sps:$4 sm:$0xff]   ;;  %v1409_v22 = vld [vmem:[%s1810_s1 + $0x20] ss:$8 sps:$4 sm:$0xff]  }
0x1144   :  { %v772_v0 = vmul.f32 1.442695, %v770_v26 }
0x1145   :  { %v774_v38 = vmul.f32 1.442695, %v771_v37 }
0x1146   :  { %1347 = vpow2.f32 %v772_v0 }
0x114d   :  { %v1346_v23 = vpop.eup %1345 }
0x114e   :  { %790 = vrot.lane.b32.xlu1 %v1346_v23, %s1414_s27  ;;  %v1411_v23 = vld [vmem:[%s1810_s1 + $0x30] ss:$8 sps:$4 sm:$0xff]  }
0x1150   :  { %v1348_v27 = vpop.eup %1347 }
0x1151   :  { %v776_v28 = vadd.f32 1.0, %v1348_v27 }
0x1153   :  { %1349 = vrcp.f32 %v776_v28 }
0x115d   :  { %v1350_v29 = vpop.eup %1349 }
0x115e   :  { %v788_v33 = vmul.f32 %v1350_v29, %v786_v32 }
0x11c0   :  { %v791_v30 = vpop.permute.xlu1 %790 }
0x11c1   :  { %v793_v31 = vmul.f32 %v1350_v29, %v791_v30  ;;  %v1234_v30 = vld [vmem:[%s1811_s0 + $0x90] sm:$0xff] }
0x11c3   :  { %795 = vrot.lane.b32.xlu1 %v793_v31, %s1414_s27 }
0x1235   :  { %v796_v34 = vpop.permute.xlu1 %795 }
0x1236   :  { %v798_v35 = vadd.f32 %v796_v34, %v788_v33 }
0x1238   :  { %1351 = vtanh.f32 %v798_v35  ;;  %806 = vrot.lane.b32.xlu1 %v798_v35, %s1414_s27 }
0x1239   :  { %1353 = vpow2.f32 %v774_v38 }
0x1242   :  { %v1352_v36 = vpop.eup %1351 }
0x1243   :  { %801 = vrot.lane.b32.xlu0 %v1352_v36, %s1414_s27  ;;  %v1354_v39 = vpop.eup %1353 }
0x1244   :  { %v777_v40 = vadd.f32 1.0, %v1354_v39 }
0x1246   :  { %1355 = vrcp.f32 %v777_v40 }
0x1250   :  { %v1356_v43 = vpop.eup %1355 }
0x12aa   :  { %v807_v41 = vpop.permute.xlu1 %806 }
0x12ab   :  { %809 = vst.msk [vmem:[#allocation3] sm:$0xff] %vm12_vm0, %v807_v41 }
0x12b2   :  { %v877_v42 = vld [vmem:[#allocation3] sm:$0xff] }
0x12b3   :  { %879 = vrot.lane.b32.xlu1 %v877_v42, %s1414_s27 }
0x12b5   :  { %v802_v44 = vpop.permute.xlu0 %801 }
0x12b6   :  { %v804_v45 = vmul.f32 %v1356_v43, %v802_v44 }
0x12b8   :  { %810 = vst.msk [vmem:[#allocation2] sm:$0xff] %vm12_vm0, %v804_v45  ;;  %1229 = vst.msk [vmem:[%s1812_s2 + $0x38] sm:$0xff] %vm12_vm0, %v804_v45 }
0x12bf   :  { %v816_v46 = vld [vmem:[#allocation2] sm:$0xff] }
0x12c0   :  { %v817_v47 = vpack.c.bf16 %v816_v46, %v816_v46 }
0x12c2   :  { %1232 = vmatmul.mubr.msk.bf16.vlgmr.msra.gmra.mrb[16].mxu0 %vm12_vm0, %v817_v47 }
0x12c3   :  { %1010 = vmatpush1.bf16.msra.mxu0 %v1442_v3  ;;  %1041 = vmatprep.mubr.bf16.mxu0 %v1412_v1 }
0x12c4   :  { %1011 = vmatprep.subr.bf16.mxu0 %v1448_v4 }
0x12c7   :  { %1012 = vmatpush1.bf16.msra.mxu0 %v1455_v5  ;;  %v1230_v5 = vld [vmem:[%s1811_s0 + $0x80] sm:$0xff] }
0x12c8   :  { %1013 = vmatprep.subr.bf16.mxu0 %v1462_v6 }
0x12cb   :  { %1014 = vmatpush1.bf16.msra.mxu0 %v1469_v7 }
0x12cc   :  { %1015 = vmatprep.subr.bf16.mxu0 %v1476_v8 }
0x12cf   :  { %1016 = vmatpush1.bf16.msra.mxu0 %v1483_v9 }
0x1325   :  { %v880_v57 = vpop.permute.xlu1 %879 }
0x1395   :  { %v855_v49 = vpop.f32.mrb[16].mxu0 }
0x1396   :  { %v857_v3 = vpop.f32.mrb[17].mxu0  ;;  %v862_v6 = vadd.f32 %v1230_v5, %v855_v49  ;;  %v1239_v5 = vld [vmem:[%s1811_s0 + $0xa8] sm:$0xff] }
0x1397   :  { %v863_v50 = vadd.f32 %v1231_v48, %v857_v3  ;;  %v859_v51 = vpop.f32.mrb[18].mxu0 }
0x1398   :  { %v860_v52 = vpop.f32.mrb[19].mxu0  ;;  %v864_v7 = vsub.f32 0.0, %v862_v6 }
0x1399   :  { %1357 = vtanh.f32 %v863_v50  ;;  %v865_v62 = vsub.f32 0.0, %v863_v50 }
0x139a   :  { %v866_v8 = vmul.f32 1.442695, %v864_v7 }
0x139b   :  { %v868_v63 = vmul.f32 1.442695, %v865_v62 }
0x139c   :  { %1359 = vpow2.f32 %v866_v8 }
0x13a3   :  { %v1358_v4 = vpop.eup %1357 }
0x13a4   :  { %884 = vrot.lane.b32.xlu0 %v1358_v4, %s1414_s27 }
0x13a6   :  { %v1360_v9 = vpop.eup %1359 }
0x13a7   :  { %v870_v53 = vadd.f32 1.0, %v1360_v9 }
0x13a9   :  { %1361 = vrcp.f32 %v870_v53 }
0x13b3   :  { %v1362_v54 = vpop.eup %1361 }
0x13b4   :  { %v882_v58 = vmul.f32 %v1362_v54, %v880_v57 }
0x1416   :  { %v885_v55 = vpop.permute.xlu0 %884 }
0x1417   :  { %v887_v56 = vmul.f32 %v1362_v54, %v885_v55  ;;  %v1238_v55 = vld [vmem:[%s1811_s0 + $0xa0] sm:$0xff] }
0x1419   :  { %889 = vrot.lane.b32.xlu0 %v887_v56, %s1414_s27 }
0x148b   :  { %v890_v59 = vpop.permute.xlu0 %889 }
0x148c   :  { %v892_v60 = vadd.f32 %v890_v59, %v882_v58 }
0x148e   :  { %1363 = vtanh.f32 %v892_v60  ;;  %900 = vrot.lane.b32.xlu0 %v892_v60, %s1414_s27 }
0x148f   :  { %1365 = vpow2.f32 %v868_v63 }
0x1498   :  { %v1364_v61 = vpop.eup %1363 }
0x1499   :  { %895 = vrot.lane.b32.xlu1 %v1364_v61, %s1414_s27  ;;  %v1366_v2 = vpop.eup %1365 }
0x149a   :  { %v871_v10 = vadd.f32 1.0, %v1366_v2 }
0x149c   :  { %1367 = vrcp.f32 %v871_v10 }
0x14a6   :  { %v1368_v13 = vpop.eup %1367 }
0x1500   :  { %v901_v11 = vpop.permute.xlu0 %900 }
0x1501   :  { %903 = vst.msk [vmem:[#allocation3] sm:$0xff] %vm12_vm0, %v901_v11 }
0x1508   :  { %v971_v12 = vld [vmem:[#allocation3] sm:$0xff] }
0x1509   :  { %973 = vrot.lane.b32.xlu0 %v971_v12, %s1414_s27 }
0x150b   :  { %v896_v14 = vpop.permute.xlu1 %895 }
0x150c   :  { %v898_v15 = vmul.f32 %v1368_v13, %v896_v14 }
0x150e   :  { %904 = vst.msk [vmem:[#allocation2] sm:$0xff] %vm12_vm0, %v898_v15  ;;  %1233 = vst.msk [vmem:[%s1812_s2 + $0x40] sm:$0xff] %vm12_vm0, %v898_v15 }
0x1515   :  { %v910_v16 = vld [vmem:[#allocation2] sm:$0xff] }
0x1516   :  { %v911_v17 = vpack.c.bf16 %v910_v16, %v910_v16 }
0x1518   :  { %1236 = vmatmul.mubr.msk.bf16.vlgmr.msra.gmra.mrb[16].mxu1 %vm12_vm0, %v911_v17 }
0x1519   :  { %1104 = vmatpush1.bf16.msra.mxu1 %v1405_v18  ;;  %1135 = vmatprep.mubr.bf16.mxu1 %v1412_v1  ;;  %v1410_v1 = vld [vmem:[%s1810_s1 + $0x34] ss:$8 sps:$4 sm:$0xff]  }
0x151a   :  { %1105 = vmatprep.subr.bf16.mxu1 %v1406_v19 }
0x151d   :  { %1106 = vmatpush1.bf16.msra.mxu1 %v1407_v20 }
0x151e   :  { %1107 = vmatprep.subr.bf16.mxu1 %v1408_v21 }
0x1521   :  { %1108 = vmatpush1.bf16.msra.mxu1 %v1409_v22 }
0x1522   :  { %1109 = vmatprep.subr.bf16.mxu1 %v1410_v1 }
0x1525   :  { %1110 = vmatpush1.bf16.msra.mxu1 %v1411_v23 }
0x157b   :  { %v974_v39 = vpop.permute.xlu0 %973 }
0x15eb   :  { %v949_v25 = vpop.f32.mrb[16].mxu1 }
0x15ec   :  { %v951_v26 = vpop.f32.mrb[17].mxu1  ;;  %v956_v31 = vadd.f32 %v1234_v30, %v949_v25  ;;  %v1242_v30 = vld [vmem:[%s1811_s0 + $0xb0] sm:$0xff] }
0x15ed   :  { %v957_v0 = vadd.f32 %v1235_v24, %v951_v26  ;;  %v953_v27 = vpop.f32.mrb[18].mxu1  ;;  %v1243_v24 = vld [vmem:[%s1811_s0 + $0xb8] sm:$0xff] }
0x15ee   :  { %v954_v28 = vpop.f32.mrb[19].mxu1  ;;  %v958_v32 = vsub.f32 0.0, %v956_v31 }
0x15ef   :  { %1369 = vtanh.f32 %v957_v0  ;;  %v959_v44 = vsub.f32 0.0, %v957_v0 }
0x15f0   :  { %v960_v33 = vmul.f32 1.442695, %v958_v32 }
0x15f1   :  { %v962_v45 = vmul.f32 1.442695, %v959_v44 }
0x15f2   :  { %1371 = vpow2.f32 %v960_v33 }
0x15f9   :  { %v1370_v29 = vpop.eup %1369 }
0x15fa   :  { %978 = vrot.lane.b32.xlu1 %v1370_v29, %s1414_s27 }
0x15fc   :  { %v1372_v34 = vpop.eup %1371 }
0x15fd   :  { %v964_v35 = vadd.f32 1.0, %v1372_v34 }
0x15ff   :  { %1373 = vrcp.f32 %v964_v35 }
0x1609   :  { %v1374_v36 = vpop.eup %1373 }
0x160a   :  { %v976_v40 = vmul.f32 %v1374_v36, %v974_v39 }
0x166c   :  { %v979_v37 = vpop.permute.xlu1 %978 }
0x166d   :  { %v981_v38 = vmul.f32 %v1374_v36, %v979_v37 }
0x166f   :  { %983 = vrot.lane.b32.xlu1 %v981_v38, %s1414_s27 }
0x16e1   :  { %v984_v41 = vpop.permute.xlu1 %983 }
0x16e2   :  { %v986_v42 = vadd.f32 %v984_v41, %v976_v40 }
0x16e4   :  { %1375 = vtanh.f32 %v986_v42  ;;  %994 = vrot.lane.b32.xlu1 %v986_v42, %s1414_s27 }
0x16e5   :  { %1377 = vpow2.f32 %v962_v45 }
0x16ee   :  { %v1376_v43 = vpop.eup %1375 }
0x16ef   :  { %989 = vrot.lane.b32.xlu0 %v1376_v43, %s1414_s27  ;;  %v1378_v46 = vpop.eup %1377 }
0x16f0   :  { %v965_v47 = vadd.f32 1.0, %v1378_v46 }
0x16f2   :  { %1379 = vrcp.f32 %v965_v47 }
0x16fc   :  { %v1380_v3 = vpop.eup %1379 }
0x1756   :  { %v995_v48 = vpop.permute.xlu1 %994 }
0x1757   :  { %997 = vst.msk [vmem:[#allocation3] sm:$0xff] %vm12_vm0, %v995_v48 }
0x175e   :  { %v1065_v49 = vld [vmem:[#allocation3] sm:$0xff] }
0x175f   :  { %1067 = vrot.lane.b32.xlu1 %v1065_v49, %s1414_s27 }
0x1761   :  { %v990_v50 = vpop.permute.xlu0 %989 }
0x1762   :  { %v992_v51 = vmul.f32 %v1380_v3, %v990_v50 }
0x1764   :  { %998 = vst.msk [vmem:[#allocation2] sm:$0xff] %vm12_vm0, %v992_v51  ;;  %1237 = vst.msk [vmem:[%s1812_s2 + $0x48] sm:$0xff] %vm12_vm0, %v992_v51 }
0x176b   :  { %v1004_v52 = vld [vmem:[#allocation2] sm:$0xff] }
0x176c   :  { %v1005_v4 = vpack.c.bf16 %v1004_v52, %v1004_v52 }
0x176e   :  { %1240 = vmatmul.mubr.msk.bf16.vlgmr.msra.gmra.mrb[20].mxu0 %vm12_vm0, %v1005_v4 }
0x17d1   :  { %v1068_v2 = vpop.permute.xlu1 %1067 }
0x1841   :  { %v1043_v6 = vpop.f32.mrb[20].mxu0 }
0x1842   :  { %v1045_v7 = vpop.f32.mrb[21].mxu0  ;;  %v1050_v56 = vadd.f32 %v1238_v55, %v1043_v6 }
0x1843   :  { %v1051_v8 = vadd.f32 %v1239_v5, %v1045_v7  ;;  %v1047_v9 = vpop.f32.mrb[22].mxu0 }
0x1844   :  { %v1048_v53 = vpop.f32.mrb[23].mxu0  ;;  %v1052_v57 = vsub.f32 0.0, %v1050_v56 }
0x1845   :  { %1381 = vtanh.f32 %v1051_v8  ;;  %v1053_v14 = vsub.f32 0.0, %v1051_v8 }
0x1846   :  { %v1054_v58 = vmul.f32 1.442695, %v1052_v57 }
0x1847   :  { %v1056_v15 = vmul.f32 1.442695, %v1053_v14 }
0x1848   :  { %1383 = vpow2.f32 %v1054_v58 }
0x184f   :  { %v1382_v54 = vpop.eup %1381 }
0x1850   :  { %1072 = vrot.lane.b32.xlu0 %v1382_v54, %s1414_s27 }
0x1852   :  { %v1384_v59 = vpop.eup %1383 }
0x1853   :  { %v1058_v60 = vadd.f32 1.0, %v1384_v59 }
0x1855   :  { %1385 = vrcp.f32 %v1058_v60 }
0x185f   :  { %v1386_v61 = vpop.eup %1385 }
0x1860   :  { %v1070_v10 = vmul.f32 %v1386_v61, %v1068_v2 }
0x18c2   :  { %v1073_v62 = vpop.permute.xlu0 %1072 }
0x18c3   :  { %v1075_v63 = vmul.f32 %v1386_v61, %v1073_v62 }
0x18c5   :  { %1077 = vrot.lane.b32.xlu0 %v1075_v63, %s1414_s27 }
0x1937   :  { %v1078_v11 = vpop.permute.xlu0 %1077 }
0x1938   :  { %v1080_v12 = vadd.f32 %v1078_v11, %v1070_v10 }
0x193a   :  { %1387 = vtanh.f32 %v1080_v12  ;;  %1088 = vrot.lane.b32.xlu0 %v1080_v12, %s1414_s27 }
0x193b   :  { %1389 = vpow2.f32 %v1056_v15 }
0x1944   :  { %v1388_v13 = vpop.eup %1387 }
0x1945   :  { %1083 = vrot.lane.b32.xlu1 %v1388_v13, %s1414_s27  ;;  %v1390_v16 = vpop.eup %1389 }
0x1946   :  { %v1059_v17 = vadd.f32 1.0, %v1390_v16 }
0x1948   :  { %1391 = vrcp.f32 %v1059_v17 }
0x1952   :  { %v1392_v20 = vpop.eup %1391 }
0x19ac   :  { %v1089_v18 = vpop.permute.xlu0 %1088 }
0x19ad   :  { %1091 = vst.msk [vmem:[#allocation3] sm:$0xff] %vm12_vm0, %v1089_v18 }
0x19b4   :  { %v1159_v19 = vld [vmem:[#allocation3] sm:$0xff] }
0x19b5   :  { %1161 = vrot.lane.b32.xlu0 %v1159_v19, %s1414_s27 }
0x19b7   :  { %v1084_v21 = vpop.permute.xlu1 %1083 }
0x19b8   :  { %v1086_v22 = vmul.f32 %v1392_v20, %v1084_v21 }
0x19ba   :  { %1092 = vst.msk [vmem:[#allocation2] sm:$0xff] %vm12_vm0, %v1086_v22  ;;  %1241 = vst.msk [vmem:[%s1812_s2 + $0x50] sm:$0xff] %vm12_vm0, %v1086_v22 }
0x19c1   :  { %v1098_v1 = vld [vmem:[#allocation2] sm:$0xff] }
0x19c2   :  { %v1099_v23 = vpack.c.bf16 %v1098_v1, %v1098_v1 }
0x19c4   :  { %1244 = vmatmul.mubr.msk.bf16.vlgmr.msra.gmra.mrb[20].mxu1 %vm12_vm0, %v1099_v23 }
0x1a27   :  { %v1162_v39 = vpop.permute.xlu0 %1161 }
0x1a97   :  { %v1137_v25 = vpop.f32.mrb[20].mxu1 }
0x1a98   :  { %v1139_v26 = vpop.f32.mrb[21].mxu1  ;;  %v1144_v31 = vadd.f32 %v1242_v30, %v1137_v25 }
0x1a99   :  { %v1145_v0 = vadd.f32 %v1243_v24, %v1139_v26  ;;  %v1141_v27 = vpop.f32.mrb[22].mxu1 }
0x1a9a   :  { %v1142_v28 = vpop.f32.mrb[23].mxu1  ;;  %v1146_v32 = vsub.f32 0.0, %v1144_v31 }
0x1a9b   :  { %1393 = vtanh.f32 %v1145_v0  ;;  %v1147_v44 = vsub.f32 0.0, %v1145_v0 }
0x1a9c   :  { %v1148_v33 = vmul.f32 1.442695, %v1146_v32 }
0x1a9d   :  { %v1150_v45 = vmul.f32 1.442695, %v1147_v44 }
0x1a9e   :  { %1395 = vpow2.f32 %v1148_v33 }
0x1aa5   :  { %v1394_v29 = vpop.eup %1393 }
0x1aa6   :  { %1166 = vrot.lane.b32.xlu1 %v1394_v29, %s1414_s27 }
0x1aa8   :  { %v1396_v34 = vpop.eup %1395 }
0x1aa9   :  { %v1152_v35 = vadd.f32 1.0, %v1396_v34 }
0x1aab   :  { %1397 = vrcp.f32 %v1152_v35 }
0x1ab5   :  { %v1398_v36 = vpop.eup %1397 }
0x1ab6   :  { %v1164_v40 = vmul.f32 %v1398_v36, %v1162_v39 }
0x1b18   :  { %v1167_v37 = vpop.permute.xlu1 %1166 }
0x1b19   :  { %v1169_v38 = vmul.f32 %v1398_v36, %v1167_v37 }
0x1b1b   :  { %1171 = vrot.lane.b32.xlu1 %v1169_v38, %s1414_s27 }
0x1b8d   :  { %v1172_v41 = vpop.permute.xlu1 %1171 }
0x1b8e   :  { %v1174_v42 = vadd.f32 %v1172_v41, %v1164_v40 }
0x1b90   :  { %1399 = vtanh.f32 %v1174_v42  ;;  %1182 = vrot.lane.b32.xlu1 %v1174_v42, %s1414_s27 }
0x1b91   :  { %1401 = vpow2.f32 %v1150_v45 }
0x1b9a   :  { %v1400_v43 = vpop.eup %1399 }
0x1b9b   :  { %1177 = vrot.lane.b32.xlu0 %v1400_v43, %s1414_s27  ;;  %v1402_v46 = vpop.eup %1401 }
0x1b9c   :  { %v1153_v47 = vadd.f32 1.0, %v1402_v46 }
0x1b9e   :  { %1403 = vrcp.f32 %v1153_v47 }
0x1ba8   :  { %v1404_v49 = vpop.eup %1403 }
0x1c02   :  { %v1183_v48 = vpop.permute.xlu1 %1182 }
0x1c03   :  { %1185 = vst.msk [vmem:[#allocation3] sm:$0xff] %vm12_vm0, %v1183_v48 }
0x1c0d   :  { %v1178_v3 = vpop.permute.xlu0 %1177 }
0x1c0e   :  { %v1180_v50 = vmul.f32 %v1404_v49, %v1178_v3 }
0x1c10   :  { %1186 = vst.msk [vmem:[#allocation2] sm:$0xff] %vm12_vm0, %v1180_v50  ;;  %1245 = vst.msk [vmem:[%s1812_s2 + $0x58] sm:$0xff] %vm12_vm0, %v1180_v50 }

// kernel: word_rep_forward.3
= control target key start
LH: loop header
LB: loop body
LE: loop exit
PB: predicated region body
PF: predicated region fallthrough
CT: control target
= control target key end

     0   :  { %vm12_vm0 = vcmask 523264   ;;  %v965_v1 = vmov 0   ;;  %v966_v2 = vmov 0.0   ;;  %s967_s26 = smov 64   ;;  %s1241_s1 = inlined_call_operand.vmem [shape: bf16[64,256], index: 1, kind: input, shape index: {}]   ;;  %s1242_s0 = inlined_call_operand.vmem [shape: f32[8,8,256], index: 0, kind: input, shape index: {}]   ;;  %s1243_s2 = inlined_call_operand.vmem [shape: f32[8,8,64], index: 2, kind: output, shape index: {}]  }
   0x1   :  { %v986_v0 = vld [vmem:[%s1241_s1 + $0x4] ss:$8 sps:$4 sm:$0xff]   ;;  %102 = vmatprep.mubr.bf16.mxu0 %v965_v1  ;;  %13 = vst.msk [vmem:[#allocation2] sm:$0xff] %vm12_vm0, %v966_v2  ;;  %14 = vst.msk [vmem:[#allocation3] sm:$0xff] %vm12_vm0, %v966_v2  ;;  %195 = vmatprep.mubr.bf16.mxu1 %v965_v1  ;;  %v995_v3 = vld [vmem:[%s1241_s1] ss:$8 sps:$4 sm:$0xff]  }
   0x2   :  { %70 = vmatprep.subr.bf16.mxu0 %v986_v0  ;;  %v1001_v4 = vld [vmem:[%s1241_s1 + $0x14] ss:$8 sps:$4 sm:$0xff]   ;;  %163 = vmatprep.subr.bf16.mxu1 %v986_v0  ;;  %v1008_v5 = vld [vmem:[%s1241_s1 + $0x10] ss:$8 sps:$4 sm:$0xff]   ;;  %v1015_v6 = vld [vmem:[%s1241_s1 + $0x24] ss:$8 sps:$4 sm:$0xff]  }
   0x3   :  { %71 = vmatpush1.bf16.msra.mxu0 %v995_v3  ;;  %164 = vmatpush1.bf16.msra.mxu1 %v995_v3  ;;  %v1022_v7 = vld [vmem:[%s1241_s1 + $0x20] ss:$8 sps:$4 sm:$0xff]   ;;  %v1029_v8 = vld [vmem:[%s1241_s1 + $0x34] ss:$8 sps:$4 sm:$0xff]   ;;  %v1036_v9 = vld [vmem:[%s1241_s1 + $0x30] ss:$8 sps:$4 sm:$0xff]  }
   0x4   :  { %72 = vmatprep.subr.bf16.mxu0 %v1001_v4  ;;  %165 = vmatprep.subr.bf16.mxu1 %v1001_v4  ;;  %v24_v12 = vld [vmem:[%s1242_s0 + $0x8] sm:$0xff]  ;;  %v23_v20 = vld [vmem:[%s1242_s0] sm:$0xff]  ;;  %v827_v45 = vld [vmem:[%s1242_s0 + $0x18] sm:$0xff] }
   0x5   :  { %v826_v52 = vld [vmem:[%s1242_s0 + $0x10] sm:$0xff] }
   0x7   :  { %73 = vmatpush1.bf16.msra.mxu0 %v1008_v5  ;;  %166 = vmatpush1.bf16.msra.mxu1 %v1008_v5 }
   0x8   :  { %74 = vmatprep.subr.bf16.mxu0 %v1015_v6  ;;  %167 = vmatprep.subr.bf16.mxu1 %v1015_v6  ;;  %v25_v10 = vld [vmem:[#allocation2] sm:$0xff]  ;;  %v126_v19 = vld [vmem:[#allocation3] sm:$0xff] }
   0x9   :  { %v26_v11 = vpack.c.bf16 %v25_v10, %v25_v10 }
   0xb   :  { %75 = vmatpush1.bf16.msra.mxu0 %v1022_v7  ;;  %168 = vmatpush1.bf16.msra.mxu1 %v1022_v7 }
   0xc   :  { %76 = vmatprep.subr.bf16.mxu0 %v1029_v8  ;;  %169 = vmatprep.subr.bf16.mxu1 %v1029_v8 }
   0xf   :  { %77 = vmatpush1.bf16.msra.mxu0 %v1036_v9  ;;  %170 = vmatpush1.bf16.msra.mxu1 %v1036_v9 }
  0x10   :  { %257 = vmatprep.subr.bf16.mxu0 %v986_v0  ;;  %351 = vmatprep.subr.bf16.mxu1 %v986_v0 }
  0x12   :  { %825 = vmatmul.mubr.msk.bf16.vlgmr.msra.gmra.mrb[0].mxu0 %vm12_vm0, %v26_v11 }
  0x13   :  { %258 = vmatpush1.bf16.msra.mxu0 %v995_v3  ;;  %289 = vmatprep.mubr.bf16.mxu0 %v965_v1 }
  0x14   :  { %259 = vmatprep.subr.bf16.mxu0 %v1001_v4 }
  0x17   :  { %260 = vmatpush1.bf16.msra.mxu0 %v1008_v5 }
  0x18   :  { %261 = vmatprep.subr.bf16.mxu0 %v1015_v6 }
  0x1b   :  { %262 = vmatpush1.bf16.msra.mxu0 %v1022_v7 }
  0x1c   :  { %263 = vmatprep.subr.bf16.mxu0 %v1029_v8 }
  0x1f   :  { %264 = vmatpush1.bf16.msra.mxu0 %v1036_v9 }
  0x20   :  { %445 = vmatprep.subr.bf16.mxu0 %v986_v0 }
  0xe5   :  { %v104_v13 = vpop.f32.mrb[0].mxu0 }
  0xe6   :  { %v106_v14 = vpop.f32.mrb[1].mxu0  ;;  %v111_v21 = vadd.f32 %v104_v13, %v23_v20 }
  0xe7   :  { %v112_v15 = vadd.f32 %v106_v14, %v24_v12  ;;  %v108_v16 = vpop.f32.mrb[2].mxu0 }
  0xe8   :  { %v109_v17 = vpop.f32.mrb[3].mxu0  ;;  %v113_v22 = vsub.f32 0.0, %v111_v21 }
  0xe9   :  { %869 = vtanh.f32 %v112_v15  ;;  %v114_v34 = vsub.f32 0.0, %v112_v15 }
  0xea   :  { %v115_v23 = vmul.f32 1.442695, %v113_v22  ;;  %v831_v22 = vld [vmem:[%s1242_s0 + $0x28] sm:$0xff] }
  0xeb   :  { %v117_v35 = vmul.f32 1.442695, %v114_v34 }
  0xec   :  { %871 = vpow2.f32 %v115_v23 }
  0xf3   :  { %v870_v18 = vpop.eup %869 }
  0xf4   :  { %133 = vrot.lane.b32.xlu0 %v870_v18, %s967_s26 }
  0xf6   :  { %v872_v24 = vpop.eup %871 }
  0xf7   :  { %v119_v25 = vadd.f32 1.0, %v872_v24 }
  0xf8   :  { %128 = vrot.lane.b32.xlu0 %v126_v19, %s967_s26 }
  0xf9   :  { %873 = vrcp.f32 %v119_v25 }
 0x103   :  { %v874_v26 = vpop.eup %873 }
 0x166   :  { %v134_v27 = vpop.permute.xlu0 %133 }
 0x167   :  { %v136_v28 = vmul.f32 %v874_v26, %v134_v27 }
 0x169   :  { %138 = vrot.lane.b32.xlu1 %v136_v28, %s967_s26 }
 0x16a   :  { %v129_v29 = vpop.permute.xlu0 %128 }
 0x16b   :  { %v131_v30 = vmul.f32 %v874_v26, %v129_v29  ;;  %v830_v29 = vld [vmem:[%s1242_s0 + $0x20] sm:$0xff] }
 0x1db   :  { %v139_v31 = vpop.permute.xlu1 %138 }
 0x1dc   :  { %v141_v32 = vadd.f32 %v139_v31, %v131_v30 }
 0x1de   :  { %875 = vtanh.f32 %v141_v32  ;;  %149 = vrot.lane.b32.xlu0 %v141_v32, %s967_s26 }
 0x1df   :  { %877 = vpow2.f32 %v117_v35 }
 0x1e8   :  { %v876_v33 = vpop.eup %875 }
 0x1e9   :  { %144 = vrot.lane.b32.xlu1 %v876_v33, %s967_s26  ;;  %v878_v36 = vpop.eup %877 }
 0x1ea   :  { %v120_v37 = vadd.f32 1.0, %v878_v36 }
 0x1ec   :  { %879 = vrcp.f32 %v120_v37 }
 0x1f6   :  { %v880_v40 = vpop.eup %879 }
 0x250   :  { %v150_v38 = vpop.permute.xlu0 %149 }
 0x251   :  { %152 = vst.msk [vmem:[#allocation3] sm:$0xff] %vm12_vm0, %v150_v38 }
 0x258   :  { %v219_v39 = vld [vmem:[#allocation3] sm:$0xff] }
 0x259   :  { %221 = vrot.lane.b32.xlu0 %v219_v39, %s967_s26 }
 0x25b   :  { %v145_v41 = vpop.permute.xlu1 %144 }
 0x25c   :  { %v147_v42 = vmul.f32 %v880_v40, %v145_v41 }
 0x25e   :  { %153 = vst.msk [vmem:[#allocation2] sm:$0xff] %vm12_vm0, %v147_v42  ;;  %154 = vst.msk [vmem:[%s1243_s2] sm:$0xff] %vm12_vm0, %v147_v42 }
 0x265   :  { %v158_v43 = vld [vmem:[#allocation2] sm:$0xff] }
 0x266   :  { %v159_v44 = vpack.c.bf16 %v158_v43, %v158_v43 }
 0x268   :  { %828 = vmatmul.mubr.msk.bf16.vlgmr.msra.gmra.mrb[0].mxu1 %vm12_vm0, %v159_v44 }
 0x269   :  { %352 = vmatpush1.bf16.msra.mxu1 %v995_v3  ;;  %383 = vmatprep.mubr.bf16.mxu1 %v965_v1 }
 0x26a   :  { %353 = vmatprep.subr.bf16.mxu1 %v1001_v4 }
 0x26d   :  { %354 = vmatpush1.bf16.msra.mxu1 %v1008_v5 }
 0x26e   :  { %355 = vmatprep.subr.bf16.mxu1 %v1015_v6 }
 0x271   :  { %356 = vmatpush1.bf16.msra.mxu1 %v1022_v7 }
 0x272   :  { %357 = vmatprep.subr.bf16.mxu1 %v1029_v8 }
 0x275   :  { %358 = vmatpush1.bf16.msra.mxu1 %v1036_v9 }
 0x276   :  { %539 = vmatprep.subr.bf16.mxu1 %v986_v0 }
 0x2cb   :  { %v222_v61 = vpop.permute.xlu0 %221 }
 0x33b   :  { %v197_v46 = vpop.f32.mrb[0].mxu1 }
 0x33c   :  { %v199_v47 = vpop.f32.mrb[1].mxu1  ;;  %v204_v53 = vadd.f32 %v826_v52, %v197_v46 }
 0x33d   :  { %v205_v48 = vadd.f32 %v827_v45, %v199_v47  ;;  %v201_v49 = vpop.f32.mrb[2].mxu1 }
 0x33e   :  { %v202_v50 = vpop.f32.mrb[3].mxu1  ;;  %v206_v54 = vsub.f32 0.0, %v204_v53 }
 0x33f   :  { %881 = vtanh.f32 %v205_v48  ;;  %v207_v11 = vsub.f32 0.0, %v205_v48 }
 0x340   :  { %v208_v55 = vmul.f32 1.442695, %v206_v54  ;;  %v835_v54 = vld [vmem:[%s1242_s0 + $0x38] sm:$0xff] }
 0x341   :  { %v210_v12 = vmul.f32 1.442695, %v207_v11 }
 0x342   :  { %883 = vpow2.f32 %v208_v55 }
 0x349   :  { %v882_v51 = vpop.eup %881 }
 0x34a   :  { %226 = vrot.lane.b32.xlu1 %v882_v51, %s967_s26 }
 0x34c   :  { %v884_v56 = vpop.eup %883 }
 0x34d   :  { %v212_v57 = vadd.f32 1.0, %v884_v56 }
 0x34f   :  { %885 = vrcp.f32 %v212_v57 }
 0x359   :  { %v886_v58 = vpop.eup %885 }
 0x35a   :  { %v224_v62 = vmul.f32 %v886_v58, %v222_v61  ;;  %v834_v61 = vld [vmem:[%s1242_s0 + $0x30] sm:$0xff] }
 0x3bc   :  { %v227_v59 = vpop.permute.xlu1 %226 }
 0x3bd   :  { %v229_v60 = vmul.f32 %v886_v58, %v227_v59 }
 0x3bf   :  { %231 = vrot.lane.b32.xlu1 %v229_v60, %s967_s26 }
 0x431   :  { %v232_v63 = vpop.permute.xlu1 %231 }
 0x432   :  { %v234_v2 = vadd.f32 %v232_v63, %v224_v62 }
 0x434   :  { %887 = vtanh.f32 %v234_v2  ;;  %242 = vrot.lane.b32.xlu1 %v234_v2, %s967_s26 }
 0x435   :  { %889 = vpow2.f32 %v210_v12 }
 0x43e   :  { %v888_v10 = vpop.eup %887 }
 0x43f   :  { %237 = vrot.lane.b32.xlu0 %v888_v10, %s967_s26  ;;  %v890_v13 = vpop.eup %889 }
 0x440   :  { %v213_v14 = vadd.f32 1.0, %v890_v13 }
 0x442   :  { %891 = vrcp.f32 %v213_v14 }
 0x44c   :  { %v892_v17 = vpop.eup %891 }
 0x4a6   :  { %v243_v15 = vpop.permute.xlu1 %242 }
 0x4a7   :  { %245 = vst.msk [vmem:[#allocation3] sm:$0xff] %vm12_vm0, %v243_v15 }
 0x4ae   :  { %v313_v16 = vld [vmem:[#allocation3] sm:$0xff] }
 0x4af   :  { %315 = vrot.lane.b32.xlu1 %v313_v16, %s967_s26 }
 0x4b1   :  { %v238_v18 = vpop.permute.xlu0 %237 }
 0x4b2   :  { %v240_v19 = vmul.f32 %v892_v17, %v238_v18 }
 0x4b4   :  { %246 = vst.msk [vmem:[#allocation2] sm:$0xff] %vm12_vm0, %v240_v19  ;;  %829 = vst.msk [vmem:[%s1243_s2 + $0x8] sm:$0xff] %vm12_vm0, %v240_v19 }
 0x4bb   :  { %v252_v20 = vld [vmem:[#allocation2] sm:$0xff] }
 0x4bc   :  { %v253_v21 = vpack.c.bf16 %v252_v20, %v252_v20 }
 0x4be   :  { %832 = vmatmul.mubr.msk.bf16.vlgmr.msra.gmra.mrb[4].mxu0 %vm12_vm0, %v253_v21 }
 0x4bf   :  { %446 = vmatpush1.bf16.msra.mxu0 %v995_v3  ;;  %477 = vmatprep.mubr.bf16.mxu0 %v965_v1 }
 0x4c0   :  { %447 = vmatprep.subr.bf16.mxu0 %v1001_v4 }
 0x4c3   :  { %448 = vmatpush1.bf16.msra.mxu0 %v1008_v5 }
 0x4c4   :  { %449 = vmatprep.subr.bf16.mxu0 %v1015_v6 }
 0x4c7   :  { %450 = vmatpush1.bf16.msra.mxu0 %v1022_v7 }
 0x4c8   :  { %451 = vmatprep.subr.bf16.mxu0 %v1029_v8 }
 0x4cb   :  { %452 = vmatpush1.bf16.msra.mxu0 %v1036_v9 }
 0x4cc   :  { %633 = vmatprep.subr.bf16.mxu0 %v986_v0 }
 0x521   :  { %v316_v38 = vpop.permute.xlu1 %315 }
 0x591   :  { %v291_v23 = vpop.f32.mrb[4].mxu0 }
 0x592   :  { %v293_v24 = vpop.f32.mrb[5].mxu0  ;;  %v298_v30 = vadd.f32 %v830_v29, %v291_v23 }
 0x593   :  { %v299_v25 = vadd.f32 %v831_v22, %v293_v24  ;;  %v295_v26 = vpop.f32.mrb[6].mxu0 }
 0x594   :  { %v296_v27 = vpop.f32.mrb[7].mxu0  ;;  %v300_v31 = vsub.f32 0.0, %v298_v30  ;;  %v839_v30 = vld [vmem:[%s1242_s0 + $0x48] sm:$0xff] }
 0x595   :  { %893 = vtanh.f32 %v299_v25  ;;  %v301_v43 = vsub.f32 0.0, %v299_v25 }
 0x596   :  { %v302_v32 = vmul.f32 1.442695, %v300_v31 }
 0x597   :  { %v304_v44 = vmul.f32 1.442695, %v301_v43 }
 0x598   :  { %895 = vpow2.f32 %v302_v32 }
 0x59f   :  { %v894_v28 = vpop.eup %893 }
 0x5a0   :  { %320 = vrot.lane.b32.xlu0 %v894_v28, %s967_s26 }
 0x5a2   :  { %v896_v33 = vpop.eup %895 }
 0x5a3   :  { %v306_v34 = vadd.f32 1.0, %v896_v33 }
 0x5a5   :  { %897 = vrcp.f32 %v306_v34 }
 0x5af   :  { %v898_v35 = vpop.eup %897 }
 0x5b0   :  { %v318_v39 = vmul.f32 %v898_v35, %v316_v38 }
 0x612   :  { %v321_v36 = vpop.permute.xlu0 %320 }
 0x613   :  { %v323_v37 = vmul.f32 %v898_v35, %v321_v36 }
 0x615   :  { %325 = vrot.lane.b32.xlu0 %v323_v37, %s967_s26  ;;  %v838_v37 = vld [vmem:[%s1242_s0 + $0x40] sm:$0xff] }
 0x687   :  { %v326_v40 = vpop.permute.xlu0 %325 }
 0x688   :  { %v328_v41 = vadd.f32 %v326_v40, %v318_v39 }
 0x68a   :  { %899 = vtanh.f32 %v328_v41  ;;  %336 = vrot.lane.b32.xlu0 %v328_v41, %s967_s26 }
 0x68b   :  { %901 = vpow2.f32 %v304_v44 }
 0x694   :  { %v900_v42 = vpop.eup %899 }
 0x695   :  { %331 = vrot.lane.b32.xlu1 %v900_v42, %s967_s26  ;;  %v902_v45 = vpop.eup %901 }
 0x696   :  { %v307_v46 = vadd.f32 1.0, %v902_v45 }
 0x698   :  { %903 = vrcp.f32 %v307_v46 }
 0x6a2   :  { %v904_v49 = vpop.eup %903 }
 0x6fc   :  { %v337_v47 = vpop.permute.xlu0 %336 }
 0x6fd   :  { %339 = vst.msk [vmem:[#allocation3] sm:$0xff] %vm12_vm0, %v337_v47 }
 0x704   :  { %v407_v48 = vld [vmem:[#allocation3] sm:$0xff] }
 0x705   :  { %409 = vrot.lane.b32.xlu0 %v407_v48, %s967_s26 }
 0x707   :  { %v332_v50 = vpop.permute.xlu1 %331 }
 0x708   :  { %v334_v51 = vmul.f32 %v904_v49, %v332_v50 }
 0x70a   :  { %340 = vst.msk [vmem:[#allocation2] sm:$0xff] %vm12_vm0, %v334_v51  ;;  %833 = vst.msk [vmem:[%s1243_s2 + $0x10] sm:$0xff] %vm12_vm0, %v334_v51 }
 0x711   :  { %v346_v52 = vld [vmem:[#allocation2] sm:$0xff] }
 0x712   :  { %v347_v53 = vpack.c.bf16 %v346_v52, %v346_v52 }
 0x714   :  { %836 = vmatmul.mubr.msk.bf16.vlgmr.msra.gmra.mrb[4].mxu1 %vm12_vm0, %v347_v53 }
 0x715   :  { %540 = vmatpush1.bf16.msra.mxu1 %v995_v3  ;;  %571 = vmatprep.mubr.bf16.mxu1 %v965_v1 }
 0x716   :  { %541 = vmatprep.subr.bf16.mxu1 %v1001_v4 }
 0x719   :  { %542 = vmatpush1.bf16.msra.mxu1 %v1008_v5 }
 0x71a   :  { %543 = vmatprep.subr.bf16.mxu1 %v1015_v6 }
 0x71d   :  { %544 = vmatpush1.bf16.msra.mxu1 %v1022_v7 }
 0x71e   :  { %545 = vmatprep.subr.bf16.mxu1 %v1029_v8 }
 0x721   :  { %546 = vmatpush1.bf16.msra.mxu1 %v1036_v9 }
 0x722   :  { %727 = vmatprep.subr.bf16.mxu1 %v986_v0 }
 0x777   :  { %v410_v14 = vpop.permute.xlu0 %409 }
 0x7e7   :  { %v385_v55 = vpop.f32.mrb[4].mxu1 }
 0x7e8   :  { %v387_v56 = vpop.f32.mrb[5].mxu1  ;;  %v392_v62 = vadd.f32 %v834_v61, %v385_v55 }
 0x7e9   :  { %v393_v57 = vadd.f32 %v835_v54, %v387_v56  ;;  %v389_v58 = vpop.f32.mrb[6].mxu1 }
 0x7ea   :  { %v390_v59 = vpop.f32.mrb[7].mxu1  ;;  %v394_v63 = vsub.f32 0.0, %v392_v62  ;;  %v843_v62 = vld [vmem:[%s1242_s0 + $0x58] sm:$0xff] }
 0x7eb   :  { %905 = vtanh.f32 %v393_v57  ;;  %v395_v19 = vsub.f32 0.0, %v393_v57 }
 0x7ec   :  { %v396_v0 = vmul.f32 1.442695, %v394_v63 }
 0x7ed   :  { %v398_v20 = vmul.f32 1.442695, %v395_v19 }
 0x7ee   :  { %907 = vpow2.f32 %v396_v0 }
 0x7f5   :  { %v906_v60 = vpop.eup %905 }
 0x7f6   :  { %414 = vrot.lane.b32.xlu1 %v906_v60, %s967_s26 }
 0x7f8   :  { %v908_v2 = vpop.eup %907 }
 0x7f9   :  { %v400_v10 = vadd.f32 1.0, %v908_v2 }
 0x7fb   :  { %909 = vrcp.f32 %v400_v10 }
 0x805   :  { %v910_v11 = vpop.eup %909 }
 0x806   :  { %v412_v15 = vmul.f32 %v910_v11, %v410_v14 }
 0x868   :  { %v415_v12 = vpop.permute.xlu1 %414 }
 0x869   :  { %v417_v13 = vmul.f32 %v910_v11, %v415_v12 }
 0x86b   :  { %419 = vrot.lane.b32.xlu1 %v417_v13, %s967_s26 }
 0x8dd   :  { %v420_v16 = vpop.permute.xlu1 %419 }
 0x8de   :  { %v422_v17 = vadd.f32 %v420_v16, %v412_v15 }
 0x8e0   :  { %911 = vtanh.f32 %v422_v17  ;;  %430 = vrot.lane.b32.xlu1 %v422_v17, %s967_s26 }
 0x8e1   :  { %913 = vpow2.f32 %v398_v20 }
 0x8ea   :  { %v912_v18 = vpop.eup %911 }
 0x8eb   :  { %425 = vrot.lane.b32.xlu0 %v912_v18, %s967_s26  ;;  %v914_v21 = vpop.eup %913 }
 0x8ec   :  { %v401_v22 = vadd.f32 1.0, %v914_v21 }
 0x8ee   :  { %915 = vrcp.f32 %v401_v22 }
 0x8f8   :  { %v916_v25 = vpop.eup %915 }
 0x952   :  { %v431_v23 = vpop.permute.xlu1 %430 }
 0x953   :  { %433 = vst.msk [vmem:[#allocation3] sm:$0xff] %vm12_vm0, %v431_v23 }
 0x95a   :  { %v501_v24 = vld [vmem:[#allocation3] sm:$0xff] }
 0x95b   :  { %503 = vrot.lane.b32.xlu1 %v501_v24, %s967_s26 }
 0x95d   :  { %v426_v26 = vpop.permute.xlu0 %425 }
 0x95e   :  { %v428_v27 = vmul.f32 %v916_v25, %v426_v26 }
 0x960   :  { %434 = vst.msk [vmem:[#allocation2] sm:$0xff] %vm12_vm0, %v428_v27  ;;  %837 = vst.msk [vmem:[%s1243_s2 + $0x18] sm:$0xff] %vm12_vm0, %v428_v27 }
 0x967   :  { %v440_v28 = vld [vmem:[#allocation2] sm:$0xff] }
 0x968   :  { %v441_v29 = vpack.c.bf16 %v440_v28, %v440_v28 }
 0x96a   :  { %840 = vmatmul.mubr.msk.bf16.vlgmr.msra.gmra.mrb[8].mxu0 %vm12_vm0, %v441_v29 }
 0x96b   :  { %634 = vmatpush1.bf16.msra.mxu0 %v995_v3  ;;  %665 = vmatprep.mubr.bf16.mxu0 %v965_v1 }
 0x96c   :  { %635 = vmatprep.subr.bf16.mxu0 %v1001_v4 }
 0x96f   :  { %636 = vmatpush1.bf16.msra.mxu0 %v1008_v5 }
 0x970   :  { %637 = vmatprep.subr.bf16.mxu0 %v1015_v6 }
 0x973   :  { %638 = vmatpush1.bf16.msra.mxu0 %v1022_v7 }
 0x974   :  { %639 = vmatprep.subr.bf16.mxu0 %v1029_v8 }
 0x977   :  { %640 = vmatpush1.bf16.msra.mxu0 %v1036_v9 }
 0x9cd   :  { %v504_v46 = vpop.permute.xlu1 %503 }
 0xa3d   :  { %v479_v31 = vpop.f32.mrb[8].mxu0 }
 0xa3e   :  { %v481_v32 = vpop.f32.mrb[9].mxu0  ;;  %v486_v38 = vadd.f32 %v838_v37, %v479_v31  ;;  %v846_v37 = vld [vmem:[%s1242_s0 + $0x60] sm:$0xff] }
 0xa3f   :  { %v487_v33 = vadd.f32 %v839_v30, %v481_v32  ;;  %v483_v34 = vpop.f32.mrb[10].mxu0  ;;  %v847_v30 = vld [vmem:[%s1242_s0 + $0x68] sm:$0xff] }
 0xa40   :  { %v484_v35 = vpop.f32.mrb[11].mxu0  ;;  %v488_v39 = vsub.f32 0.0, %v486_v38 }
 0xa41   :  { %917 = vtanh.f32 %v487_v33  ;;  %v489_v51 = vsub.f32 0.0, %v487_v33 }
 0xa42   :  { %v490_v40 = vmul.f32 1.442695, %v488_v39 }
 0xa43   :  { %v492_v52 = vmul.f32 1.442695, %v489_v51 }
 0xa44   :  { %919 = vpow2.f32 %v490_v40 }
 0xa4b   :  { %v918_v36 = vpop.eup %917 }
 0xa4c   :  { %508 = vrot.lane.b32.xlu0 %v918_v36, %s967_s26 }
 0xa4e   :  { %v920_v41 = vpop.eup %919 }
 0xa4f   :  { %v494_v42 = vadd.f32 1.0, %v920_v41 }
 0xa51   :  { %921 = vrcp.f32 %v494_v42 }
 0xa5b   :  { %v922_v43 = vpop.eup %921 }
 0xa5c   :  { %v506_v47 = vmul.f32 %v922_v43, %v504_v46 }
 0xabe   :  { %v509_v44 = vpop.permute.xlu0 %508 }
 0xabf   :  { %v511_v45 = vmul.f32 %v922_v43, %v509_v44 }
 0xac1   :  { %513 = vrot.lane.b32.xlu0 %v511_v45, %s967_s26 }
 0xb33   :  { %v514_v48 = vpop.permute.xlu0 %513 }
 0xb34   :  { %v516_v49 = vadd.f32 %v514_v48, %v506_v47 }
 0xb36   :  { %923 = vtanh.f32 %v516_v49  ;;  %524 = vrot.lane.b32.xlu0 %v516_v49, %s967_s26 }
 0xb37   :  { %925 = vpow2.f32 %v492_v52 }
 0xb40   :  { %v924_v50 = vpop.eup %923 }
 0xb41   :  { %519 = vrot.lane.b32.xlu1 %v924_v50, %s967_s26  ;;  %v926_v53 = vpop.eup %925 }
 0xb42   :  { %v495_v54 = vadd.f32 1.0, %v926_v53 }
 0xb44   :  { %927 = vrcp.f32 %v495_v54 }
 0xb4e   :  { %v928_v57 = vpop.eup %927 }
 0xba8   :  { %v525_v55 = vpop.permute.xlu0 %524 }
 0xba9   :  { %527 = vst.msk [vmem:[#allocation3] sm:$0xff] %vm12_vm0, %v525_v55 }
 0xbb0   :  { %v595_v56 = vld [vmem:[#allocation3] sm:$0xff] }
 0xbb1   :  { %597 = vrot.lane.b32.xlu0 %v595_v56, %s967_s26 }
 0xbb3   :  { %v520_v58 = vpop.permute.xlu1 %519 }
 0xbb4   :  { %v522_v59 = vmul.f32 %v928_v57, %v520_v58 }
 0xbb6   :  { %528 = vst.msk [vmem:[#allocation2] sm:$0xff] %vm12_vm0, %v522_v59  ;;  %841 = vst.msk [vmem:[%s1243_s2 + $0x20] sm:$0xff] %vm12_vm0, %v522_v59 }
 0xbbd   :  { %v534_v60 = vld [vmem:[#allocation2] sm:$0xff] }
 0xbbe   :  { %v535_v61 = vpack.c.bf16 %v534_v60, %v534_v60 }
 0xbc0   :  { %844 = vmatmul.mubr.msk.bf16.vlgmr.msra.gmra.mrb[8].mxu1 %vm12_vm0, %v535_v61 }
 0xbc1   :  { %728 = vmatpush1.bf16.msra.mxu1 %v995_v3  ;;  %759 = vmatprep.mubr.bf16.mxu1 %v965_v1 }
 0xbc2   :  { %729 = vmatprep.subr.bf16.mxu1 %v1001_v4 }
 0xbc5   :  { %730 = vmatpush1.bf16.msra.mxu1 %v1008_v5  ;;  %v842_v5 = vld [vmem:[%s1242_s0 + $0x50] sm:$0xff] }
 0xbc6   :  { %731 = vmatprep.subr.bf16.mxu1 %v1015_v6 }
 0xbc9   :  { %732 = vmatpush1.bf16.msra.mxu1 %v1022_v7 }
 0xbca   :  { %733 = vmatprep.subr.bf16.mxu1 %v1029_v8 }
 0xbcd   :  { %734 = vmatpush1.bf16.msra.mxu1 %v1036_v9 }
 0xc23   :  { %v598_v14 = vpop.permute.xlu0 %597 }
 0xc93   :  { %v573_v63 = vpop.f32.mrb[8].mxu1 }
 0xc94   :  { %v575_v3 = vpop.f32.mrb[9].mxu1  ;;  %v580_v6 = vadd.f32 %v842_v5, %v573_v63  ;;  %v850_v5 = vld [vmem:[%s1242_s0 + $0x70] sm:$0xff] }
 0xc95   :  { %v581_v0 = vadd.f32 %v843_v62, %v575_v3  ;;  %v577_v1 = vpop.f32.mrb[10].mxu1  ;;  %v851_v62 = vld [vmem:[%s1242_s0 + $0x78] sm:$0xff] }
 0xc96   :  { %v578_v2 = vpop.f32.mrb[11].mxu1  ;;  %v582_v7 = vsub.f32 0.0, %v580_v6 }
 0xc97   :  { %929 = vtanh.f32 %v581_v0  ;;  %v583_v19 = vsub.f32 0.0, %v581_v0 }
 0xc98   :  { %v584_v8 = vmul.f32 1.442695, %v582_v7 }
 0xc99   :  { %v586_v20 = vmul.f32 1.442695, %v583_v19 }
 0xc9a   :  { %931 = vpow2.f32 %v584_v8 }
 0xca1   :  { %v930_v4 = vpop.eup %929 }
 0xca2   :  { %602 = vrot.lane.b32.xlu1 %v930_v4, %s967_s26 }
 0xca4   :  { %v932_v9 = vpop.eup %931 }
 0xca5   :  { %v588_v10 = vadd.f32 1.0, %v932_v9 }
 0xca7   :  { %933 = vrcp.f32 %v588_v10 }
 0xcb1   :  { %v934_v11 = vpop.eup %933 }
 0xcb2   :  { %v600_v15 = vmul.f32 %v934_v11, %v598_v14 }
 0xd14   :  { %v603_v12 = vpop.permute.xlu1 %602 }
 0xd15   :  { %v605_v13 = vmul.f32 %v934_v11, %v603_v12 }
 0xd17   :  { %607 = vrot.lane.b32.xlu1 %v605_v13, %s967_s26 }
 0xd89   :  { %v608_v16 = vpop.permute.xlu1 %607 }
 0xd8a   :  { %v610_v17 = vadd.f32 %v608_v16, %v600_v15 }
 0xd8c   :  { %935 = vtanh.f32 %v610_v17  ;;  %618 = vrot.lane.b32.xlu1 %v610_v17, %s967_s26 }
 0xd8d   :  { %937 = vpow2.f32 %v586_v20 }
 0xd96   :  { %v936_v18 = vpop.eup %935 }
 0xd97   :  { %613 = vrot.lane.b32.xlu0 %v936_v18, %s967_s26  ;;  %v938_v21 = vpop.eup %937 }
 0xd98   :  { %v589_v22 = vadd.f32 1.0, %v938_v21 }
 0xd9a   :  { %939 = vrcp.f32 %v589_v22 }
 0xda4   :  { %v940_v25 = vpop.eup %939 }
 0xdfe   :  { %v619_v23 = vpop.permute.xlu1 %618 }
 0xdff   :  { %621 = vst.msk [vmem:[#allocation3] sm:$0xff] %vm12_vm0, %v619_v23 }
 0xe06   :  { %v689_v24 = vld [vmem:[#allocation3] sm:$0xff] }
 0xe07   :  { %691 = vrot.lane.b32.xlu1 %v689_v24, %s967_s26 }
 0xe09   :  { %v614_v26 = vpop.permute.xlu0 %613 }
 0xe0a   :  { %v616_v27 = vmul.f32 %v940_v25, %v614_v26 }
 0xe0c   :  { %622 = vst.msk [vmem:[#allocation2] sm:$0xff] %vm12_vm0, %v616_v27  ;;  %845 = vst.msk [vmem:[%s1243_s2 + $0x28] sm:$0xff] %vm12_vm0, %v616_v27 }
 0xe13   :  { %v628_v28 = vld [vmem:[#allocation2] sm:$0xff] }
 0xe14   :  { %v629_v29 = vpack.c.bf16 %v628_v28, %v628_v28 }
 0xe16   :  { %848 = vmatmul.mubr.msk.bf16.vlgmr.msra.gmra.mrb[12].mxu0 %vm12_vm0, %v629_v29 }
 0xe79   :  { %v692_v46 = vpop.permute.xlu1 %691 }
 0xee9   :  { %v667_v31 = vpop.f32.mrb[12].mxu0 }
 0xeea   :  { %v669_v32 = vpop.f32.mrb[13].mxu0  ;;  %v674_v38 = vadd.f32 %v846_v37, %v667_v31 }
 0xeeb   :  { %v675_v33 = vadd.f32 %v847_v30, %v669_v32  ;;  %v671_v34 = vpop.f32.mrb[14].mxu0 }
 0xeec   :  { %v672_v35 = vpop.f32.mrb[15].mxu0  ;;  %v676_v39 = vsub.f32 0.0, %v674_v38 }
 0xeed   :  { %941 = vtanh.f32 %v675_v33  ;;  %v677_v51 = vsub.f32 0.0, %v675_v33 }
 0xeee   :  { %v678_v40 = vmul.f32 1.442695, %v676_v39 }
 0xeef   :  { %v680_v52 = vmul.f32 1.442695, %v677_v51 }
 0xef0   :  { %943 = vpow2.f32 %v678_v40 }
 0xef7   :  { %v942_v36 = vpop.eup %941 }
 0xef8   :  { %696 = vrot.lane.b32.xlu0 %v942_v36, %s967_s26 }
 0xefa   :  { %v944_v41 = vpop.eup %943 }
 0xefb   :  { %v682_v42 = vadd.f32 1.0, %v944_v41 }
 0xefd   :  { %945 = vrcp.f32 %v682_v42 }
 0xf07   :  { %v946_v43 = vpop.eup %945 }
 0xf08   :  { %v694_v47 = vmul.f32 %v946_v43, %v692_v46 }
 0xf6a   :  { %v697_v44 = vpop.permute.xlu0 %696 }
 0xf6b   :  { %v699_v45 = vmul.f32 %v946_v43, %v697_v44 }
 0xf6d   :  { %701 = vrot.lane.b32.xlu0 %v699_v45, %s967_s26 }
 0xfdf   :  { %v702_v48 = vpop.permute.xlu0 %701 }
 0xfe0   :  { %v704_v49 = vadd.f32 %v702_v48, %v694_v47 }
 0xfe2   :  { %947 = vtanh.f32 %v704_v49  ;;  %712 = vrot.lane.b32.xlu0 %v704_v49, %s967_s26 }
 0xfe3   :  { %949 = vpow2.f32 %v680_v52 }
 0xfec   :  { %v948_v50 = vpop.eup %947 }
 0xfed   :  { %707 = vrot.lane.b32.xlu1 %v948_v50, %s967_s26  ;;  %v950_v53 = vpop.eup %949 }
 0xfee   :  { %v683_v54 = vadd.f32 1.0, %v950_v53 }
 0xff0   :  { %951 = vrcp.f32 %v683_v54 }
 0xffa   :  { %v952_v57 = vpop.eup %951 }
0x1054   :  { %v713_v55 = vpop.permute.xlu0 %712 }
0x1055   :  { %715 = vst.msk [vmem:[#allocation3] sm:$0xff] %vm12_vm0, %v713_v55 }
0x105c   :  { %v783_v56 = vld [vmem:[#allocation3] sm:$0xff] }
0x105d   :  { %785 = vrot.lane.b32.xlu0 %v783_v56, %s967_s26 }
0x105f   :  { %v708_v58 = vpop.permute.xlu1 %707 }
0x1060   :  { %v710_v59 = vmul.f32 %v952_v57, %v708_v58 }
0x1062   :  { %716 = vst.msk [vmem:[#allocation2] sm:$0xff] %vm12_vm0, %v710_v59  ;;  %849 = vst.msk [vmem:[%s1243_s2 + $0x30] sm:$0xff] %vm12_vm0, %v710_v59 }
0x1069   :  { %v722_v60 = vld [vmem:[#allocation2] sm:$0xff] }
0x106a   :  { %v723_v61 = vpack.c.bf16 %v722_v60, %v722_v60 }
0x106c   :  { %852 = vmatmul.mubr.msk.bf16.vlgmr.msra.gmra.mrb[12].mxu1 %vm12_vm0, %v723_v61 }
0x10cf   :  { %v786_v14 = vpop.permute.xlu0 %785 }
0x113f   :  { %v761_v63 = vpop.f32.mrb[12].mxu1 }
0x1140   :  { %v763_v3 = vpop.f32.mrb[13].mxu1  ;;  %v768_v6 = vadd.f32 %v850_v5, %v761_v63 }
0x1141   :  { %v769_v0 = vadd.f32 %v851_v62, %v763_v3  ;;  %v765_v1 = vpop.f32.mrb[14].mxu1 }
0x1142   :  { %v766_v2 = vpop.f32.mrb[15].mxu1  ;;  %v770_v7 = vsub.f32 0.0, %v768_v6 }
0x1143   :  { %953 = vtanh.f32 %v769_v0  ;;  %v771_v19 = vsub.f32 0.0, %v769_v0 }
0x1144   :  { %v772_v8 = vmul.f32 1.442695, %v770_v7 }
0x1145   :  { %v774_v20 = vmul.f32 1.442695, %v771_v19 }
0x1146   :  { %955 = vpow2.f32 %v772_v8 }
0x114d   :  { %v954_v4 = vpop.eup %953 }
0x114e   :  { %790 = vrot.lane.b32.xlu1 %v954_v4, %s967_s26 }
0x1150   :  { %v956_v9 = vpop.eup %955 }
0x1151   :  { %v776_v10 = vadd.f32 1.0, %v956_v9 }
0x1153   :  { %957 = vrcp.f32 %v776_v10 }
0x115d   :  { %v958_v11 = vpop.eup %957 }
0x115e   :  { %v788_v15 = vmul.f32 %v958_v11, %v786_v14 }
0x11c0   :  { %v791_v12 = vpop.permute.xlu1 %790 }
0x11c1   :  { %v793_v13 = vmul.f32 %v958_v11, %v791_v12 }
0x11c3   :  { %795 = vrot.lane.b32.xlu1 %v793_v13, %s967_s26 }
0x1235   :  { %v796_v16 = vpop.permute.xlu1 %795 }
0x1236   :  { %v798_v17 = vadd.f32 %v796_v16, %v788_v15 }
0x1238   :  { %959 = vtanh.f32 %v798_v17  ;;  %806 = vrot.lane.b32.xlu1 %v798_v17, %s967_s26 }
0x1239   :  { %961 = vpow2.f32 %v774_v20 }
0x1242   :  { %v960_v18 = vpop.eup %959 }
0x1243   :  { %801 = vrot.lane.b32.xlu0 %v960_v18, %s967_s26  ;;  %v962_v21 = vpop.eup %961 }
0x1244   :  { %v777_v22 = vadd.f32 1.0, %v962_v21 }
0x1246   :  { %963 = vrcp.f32 %v777_v22 }
0x1250   :  { %v964_v24 = vpop.eup %963 }
0x12aa   :  { %v807_v23 = vpop.permute.xlu1 %806 }
0x12ab   :  { %809 = vst.msk [vmem:[#allocation3] sm:$0xff] %vm12_vm0, %v807_v23 }
0x12b5   :  { %v802_v25 = vpop.permute.xlu0 %801 }
0x12b6   :  { %v804_v26 = vmul.f32 %v964_v24, %v802_v25 }
0x12b8   :  { %810 = vst.msk [vmem:[#allocation2] sm:$0xff] %vm12_vm0, %v804_v26  ;;  %853 = vst.msk [vmem:[%s1243_s2 + $0x38] sm:$0xff] %vm12_vm0, %v804_v26 }

</bundles_post_ra>
